<compile_context>
chip_gen: v7x
topology: tpu7x:2x2x1
jax: 0.10.0
libtpu: 0.0.40
codegen_flags: <defaults>
</compile_context>

<pallas_src>
import functools

import jax
import jax.numpy as jnp
from jax import lax
from jax.experimental import pallas as pl
from jax.experimental.pallas import tpu as pltpu


# ---------------------------------------------------------------------------
# small helpers
# ---------------------------------------------------------------------------
def _round_up(x, m):
    return (x + m - 1) // m * m


def _pad_axis(a, axis, new_size):
    pad = new_size - a.shape[axis]
    if pad == 0:
        return a
    cfg = [(0, 0)] * a.ndim
    cfg[axis] = (0, pad)
    return jnp.pad(a, cfg)


def _pad_gate_dim(a, axis, h, h_pad):
    """Pad a 4H axis (gate order [i,f,g,o]) to 4*h_pad, per-gate (interleaved)."""
    if h == h_pad:
        return a
    shape = a.shape
    a = a.reshape(shape[:axis] + (4, h) + shape[axis + 1:])
    a = _pad_axis(a, axis + 1, h_pad)
    return a.reshape(shape[:axis] + (4 * h_pad,) + shape[axis + 1:])


def _tpu_config():
    """Per-generation sizing, from device_kind sniffing (safe defaults otherwise)."""
    try:
        kind = jax.devices()[0].device_kind.lower()
    except Exception:
        kind = ""
    is_v7x = "v7" in kind
    two_cores = is_v7x or ("v4" in kind) or ("v5p" in kind)   # 2 TCs per device
    is_v5e = ("v5e" in kind) or ("v5 lite" in kind) or ("v5lite" in kind)
    vmem_cap = (48 << 20) if is_v7x else (96 << 20)           # leave headroom
    b_cap = 128 if (is_v5e or is_v7x) else 256                # MXU M-fill vs VMEM
    t_block_default = 16 if is_v7x else 32
    return two_cores, b_cap, vmem_cap, t_block_default


# ---------------------------------------------------------------------------
# Pallas kernel: serial LSTM recurrence over one (batch_block, time_block) tile.
# ---------------------------------------------------------------------------
def _lstm_recurrence_kernel(pg_ref, whh_ref, out_ref, h_scr, c_scr, *,
                            hidden_pad, t_block, n_sub, apply_relu):
    t_blk = pl.program_id(1)          # time-block index ("arbitrary" axis)

    # Zero the carried state at the first time block of each batch block.
    @pl.when(t_blk == 0)
    def _():
        h_scr[...] = jnp.zeros_like(h_scr)
        c_scr[...] = jnp.zeros_like(c_scr)

    H = hidden_pad
    b_blk = h_scr.shape[0]
    sb = b_blk // n_sub               # batch sub-block (independent ILP chains)

    def _sig(x):                      # sigmoid via one EUP tanh
        return 0.5 * jnp.tanh(0.5 * x) + 0.5

    # Initial carries per sub-block (f32, from VMEM scratch).
    carry0 = []
    for si in range(n_sub):
        r0 = si * sb
        carry0 += [h_scr[r0:r0 + sb, :], c_scr[r0:r0 + sb, :]]

    def step(tt, carry):
        hs, cs = carry[0::2], carry[1::2]
        # (1) Independent recurrent matmuls for all sub-blocks first, so the
        #     scheduler can overlap sub-block B's MXU push with A's EUP work.
        hgs = [jnp.dot(h.astype(whh_ref.dtype), whh_ref[...],
                       preferred_element_type=jnp.float32) for h in hs]
        new = []
        for si in range(n_sub):
            r0, hg, c_prev = si * sb, hgs[si], cs[si]

            def pre(gi, _r0=r0):      # per-gate pregate load (bf16->f32 upcast)
                return pg_ref[tt, _r0:_r0 + sb,
                              gi * H:(gi + 1) * H].astype(jnp.float32)

            # Per-128-aligned gate slice; never materialize a full (sb, 4H) gates.
            i_g = _sig(pre(0) + hg[:, 0 * H:1 * H])
            f_g = _sig(pre(1) + hg[:, 1 * H:2 * H])
            g_g = jnp.tanh(pre(2) + hg[:, 2 * H:3 * H])
            o_g = _sig(pre(3) + hg[:, 3 * H:4 * H])

            c = f_g * c_prev + i_g * g_g
            h = o_g * jnp.tanh(c)
            out = jnp.maximum(h, 0.0) if apply_relu else h    # fused final ReLU
            out_ref[tt, r0:r0 + sb, :] = out.astype(out_ref.dtype)
            new += [h, c]
        return tuple(new)

    carry = lax.fori_loop(0, t_block, step, tuple(carry0), unroll=True)

    for si in range(n_sub):
        r0 = si * sb
        h_scr[r0:r0 + sb, :] = carry[2 * si]
        c_scr[r0:r0 + sb, :] = carry[2 * si + 1]


# ---------------------------------------------------------------------------
# One LSTM layer: hoisted input projection (XLA) + Pallas recurrence.
# ---------------------------------------------------------------------------
def _run_lstm_layer(x_tbd, w_ih_T, w_hh_T, bias, *, apply_relu, compute_dtype,
                    t_block, b_block, vmem_cap):
    """x_tbd: (T, B_pad, D_in) time-major f32, B_pad a multiple of b_block.
    Weights in original (unpadded) transposed form: w_ih_T (D_orig, 4H),
    w_hh_T (H, 4H), bias (1, 4H) (= b_ih + b_hh).  Returns (T_pad, B_pad, H_pad) f32."""
    T, B, d_in = x_tbd.shape
    H = w_hh_T.shape[0]
    H_pad = max(128, _round_up(H, 128))
    four_h_pad = 4 * H_pad

    # ---- pad parameters (gate-blocked on the 4H axis) --------------------
    w_ih_T = _pad_gate_dim(w_ih_T, 1, H, H_pad)     # (D_orig, 4*H_pad)
    w_ih_T = _pad_axis(w_ih_T, 0, d_in)             # match (possibly padded) input feat
    w_hh_T = _pad_gate_dim(w_hh_T, 1, H, H_pad)
    w_hh_T = _pad_axis(w_hh_T, 0, H_pad)            # (H_pad, 4*H_pad)
    bias = _pad_gate_dim(bias, 1, H, H_pad)         # (1, 4*H_pad)

    # ---- hoisted, time-parallel input projection (one big MXU matmul) ----
    # Pregates stored in bf16 (when compute_dtype != f32): dominant HBM stream.
    pg_dtype = (jnp.float32
                if jnp.dtype(compute_dtype) == jnp.dtype(jnp.float32)
                else jnp.bfloat16)
    x2 = x_tbd.reshape(T * B, d_in).astype(compute_dtype)
    pg = jnp.dot(x2, w_ih_T.astype(compute_dtype),
                 preferred_element_type=jnp.float32)
    pg = (pg + bias).astype(pg_dtype).reshape(T, B, four_h_pad)

    # ---- VMEM-budgeted time-block selection -------------------------------
    pg_bytes = jnp.dtype(pg_dtype).itemsize
    w_bytes = jnp.dtype(compute_dtype).itemsize
    whh_tile_bytes = H_pad * four_h_pad * w_bytes
    whh_buffers = 1 if whh_tile_bytes >= (8 << 20) else 2   # single-buffer big W_hh

    def _need(tb_):
        return (2 * tb_ * b_block * four_h_pad * pg_bytes    # pregate double buffer
                + 2 * tb_ * b_block * H_pad * 4              # output double buffer
                + whh_buffers * whh_tile_bytes               # resident W_hh
                + 2 * b_block * H_pad * 4)                   # h/c scratch

    tb = max(1, min(t_block, _round_up(T, 8)))
    budget = vmem_cap - (4 << 20)
    while tb > 1 and _need(tb) > budget:
        tb //= 2
    # TODO(synk): if W_hh alone exceeds ~16 MiB (very large H), N-tile it with an
    # inner pltpu.emit_pipeline instead of shrinking tb further.

    T_pad = _round_up(T, tb)
    pg = _pad_axis(pg, 0, T_pad)
    n_tb = T_pad // tb
    assert B % b_block == 0
    n_bb = B // b_block
    n_sub = 2 if (b_block >= 16 and b_block % 16 == 0) else 1

    whh = w_hh_T.astype(compute_dtype)               # resident recurrent weight
    if whh_buffers == 1:
        # Constant index map -> single buffer is enough; frees whh_tile_bytes VMEM.
        whh_spec = pl.BlockSpec((H_pad, four_h_pad), lambda b, t: (0, 0),
                                pipeline_mode=pl.Buffered(1))
    else:
        whh_spec = pl.BlockSpec((H_pad, four_h_pad), lambda b, t: (0, 0))

    vmem_limit = int(min(vmem_cap, max(32 << 20, _need(tb) + (4 << 20))))

    kernel = functools.partial(
        _lstm_recurrence_kernel,
        hidden_pad=H_pad, t_block=tb, n_sub=n_sub, apply_relu=apply_relu)

    return pl.pallas_call(
        kernel,
        out_shape=jax.ShapeDtypeStruct((T_pad, B, H_pad), jnp.float32),
        grid_spec=pltpu.PrefetchScalarGridSpec(
            num_scalar_prefetch=0,
            grid=(n_bb, n_tb),                        # batch (parallel), time (carry)
            in_specs=[
                pl.BlockSpec((tb, b_block, four_h_pad),
                             lambda b, t: (t, b, 0)),          # pregates tile
                whh_spec,                                      # W_hh^T (resident)
            ],
            out_specs=pl.BlockSpec((tb, b_block, H_pad),
                                   lambda b, t: (t, b, 0)),
            scratch_shapes=[
                pltpu.VMEM((b_block, H_pad), jnp.float32),     # h carry
                pltpu.VMEM((b_block, H_pad), jnp.float32),     # c carry
            ],
        ),
        compiler_params=pltpu.CompilerParams(
            dimension_semantics=("parallel", "arbitrary"),
            vmem_limit_bytes=vmem_limit,
        ),
    )(pg, whh)


# ---------------------------------------------------------------------------
# Parameter init (deterministic, PyTorch-style U(-1/sqrt(H), 1/sqrt(H))).
# Params stored pre-transposed for x @ W^T form, biases folded.
# ---------------------------------------------------------------------------
def init_lstm_params(key, input_dim, hidden_dim, num_layers):
    params = []
    bound = 1.0 / jnp.sqrt(jnp.float32(hidden_dim))
    for layer in range(num_layers):
        d_in = input_dim if layer == 0 else hidden_dim
        key, k1, k2, k3, k4 = jax.random.split(key, 5)
        w_ih = jax.random.uniform(k1, (4 * hidden_dim, d_in),
                                  jnp.float32, -bound, bound)
        w_hh = jax.random.uniform(k2, (4 * hidden_dim, hidden_dim),
                                  jnp.float32, -bound, bound)
        b_ih = jax.random.uniform(k3, (4 * hidden_dim,),
                                  jnp.float32, -bound, bound)
        b_hh = jax.random.uniform(k4, (4 * hidden_dim,),
                                  jnp.float32, -bound, bound)
        params.append((w_ih.T, w_hh.T, (b_ih + b_hh)[None, :]))
    return params


# ---------------------------------------------------------------------------
# Full model forward: stacked LSTM + ReLU (matches LSTM_model.forward).
# ---------------------------------------------------------------------------
def lstm_model_forward(x_btd, params, *, compute_dtype=jnp.bfloat16, t_block=None):
    """x_btd: (B, T, input_dim) float32, batch_first like the PyTorch module."""
    B, T, _ = x_btd.shape
    H_out = params[-1][1].shape[0]
    two_cores, b_cap, vmem_cap, t_block_default = _tpu_config()
    if t_block is None:
        t_block = t_block_default

    h = jnp.transpose(x_btd, (1, 0, 2)).astype(jnp.float32)   # (T, B, D)

    # Batch padding / blocking: sublane multiple of 8; on 2-core parts make sure
    # the "parallel" batch axis has at least 2 blocks so both cores are used.
    B_pad = _round_up(B, 8)
    if two_cores and B_pad >= 16:
        b_block = min(b_cap, max(8, _round_up(B_pad // 2, 8)))
    else:
        b_block = min(B_pad, b_cap)
    B_pad = _round_up(B_pad, b_block)
    h = _pad_axis(h, 1, B_pad)

    n_layers = len(params)
    for li, (w_ih_T, w_hh_T, b) in enumerate(params):
        h = _run_lstm_layer(h, w_ih_T, w_hh_T, b,
                            apply_relu=(li == n_layers - 1),
                            compute_dtype=compute_dtype,
                            t_block=t_block, b_block=b_block,
                            vmem_cap=vmem_cap)

    # (T_pad, B_pad, H_pad) -> strip padding, back to batch_first.
    return jnp.transpose(h[:T, :B, :H_out], (1, 0, 2))


# ---------------------------------------------------------------------------
# Pure-JAX reference for correctness checking.
# ---------------------------------------------------------------------------
def lstm_model_reference(x_btd, params):
    h_seq = x_btd
    for (w_ih_T, w_hh_T, b) in params:
        B = h_seq.shape[0]
        H = w_hh_T.shape[0]

        def step(carry, x_t, w_ih_T=w_ih_T, w_hh_T=w_hh_T, b=b, H=H):
            h_prev, c_prev = carry
            gates = x_t @ w_ih_T + h_prev @ w_hh_T + b
            i = jax.nn.sigmoid(gates[:, 0 * H:1 * H])
            f = jax.nn.sigmoid(gates[:, 1 * H:2 * H])
            g = jnp.tanh(gates[:, 2 * H:3 * H])
            o = jax.nn.sigmoid(gates[:, 3 * H:4 * H])
            c = f * c_prev + i * g
            hh = o * jnp.tanh(c)
            return (hh, c), hh

        init = (jnp.zeros((B, H), jnp.float32), jnp.zeros((B, H), jnp.float32))
        _, hs = lax.scan(step, init, jnp.transpose(h_seq, (1, 0, 2)))
        h_seq = jnp.transpose(hs, (1, 0, 2))
    return jnp.maximum(h_seq, 0.0)


if __name__ == "__main__":
    # Small shapes consistent with the module: x is (batch, seq, input_dim).
    batch, seq, input_dim, hidden_dim, num_layers = 2, 8, 16, 32, 2

    key = jax.random.PRNGKey(0)
    k_x, k_p = jax.random.split(key)
    x = jax.random.normal(k_x, (batch, seq, input_dim), jnp.float32)
    params = init_lstm_params(k_p, input_dim, hidden_dim, num_layers)

    ref = jax.block_until_ready(lstm_model_reference(x, params))

    # f32 path: tight correctness check against the pure-JAX reference.
    fwd_f32 = jax.jit(functools.partial(lstm_model_forward,
                                        compute_dtype=jnp.float32))
    out_f32 = jax.block_until_ready(fwd_f32(x, params))
    assert out_f32.shape == (batch, seq, hidden_dim)
    assert jnp.allclose(out_f32, ref, rtol=1e-4, atol=1e-4), "f32 mismatch vs reference"

    # bf16-matmul + bf16-pregate path (recommended on all generations incl. v5e):
    # relaxed-tolerance accuracy check vs the f32 reference.
    fwd_bf16 = jax.jit(functools.partial(lstm_model_forward,
                                         compute_dtype=jnp.bfloat16))
    out_bf16 = jax.block_until_ready(fwd_bf16(x, params))
    assert out_bf16.shape == (batch, seq, hidden_dim)
    assert bool(jnp.all(jnp.isfinite(out_bf16)))
    assert jnp.allclose(out_bf16, ref, rtol=5e-2, atol=5e-2), "bf16 drift too large"

    print("KERNEL_OK")
</pallas_src>

<mosaic_0001>
module attributes {stable_mosaic.version = 11 : i64} {
  func.func @_lstm_recurrence_kernel(%arg0: i32, %arg1: i32, %arg2: memref<8x8x512xf32, #tpu.memory_space<vmem>>, %arg3: memref<128x512xf32, #tpu.memory_space<vmem>>, %arg4: memref<8x8x128xf32, #tpu.memory_space<vmem>>, %arg5: memref<8x128xf32, #tpu.memory_space<vmem>>, %arg6: memref<8x128xf32, #tpu.memory_space<vmem>>) attributes {dimension_semantics = [#tpu.dimension_semantics<parallel>, #tpu.dimension_semantics<arbitrary>], iteration_bounds = array<i64: 1, 1>, scalar_prefetch = 0 : i64, scratch_operands = 2 : i64, tpu.core_type = #tpu.core_type<tc>, window_params = [{transform_indices = @transform_0, window_bounds = array<i64: 8, 8, 512>}, {pipeline_mode = #tpu.pipeline_mode<synchronous>, transform_indices = @transform_1, window_bounds = array<i64: 128, 512>}, {transform_indices = @transform_2, window_bounds = array<i64: 8, 8, 128>}]} {
    %c0_i32 = arith.constant 0 : i32
    %0 = arith.cmpi eq, %arg1, %c0_i32 : i32
    %1 = arith.extui %0 : i1 to i32
    %c0_i32_0 = arith.constant 0 : i32
    %2 = arith.cmpi ne, %1, %c0_i32_0 : i32
    scf.if %2 {
      %cst_181 = arith.constant 0.000000e+00 : f32
      %431 = vector.broadcast %cst_181 : f32 to vector<8x128xf32>
      %c0_182 = arith.constant 0 : index
      %c0_183 = arith.constant 0 : index
      %432 = vector.load %arg5[%c0_182, %c0_183] : memref<8x128xf32, #tpu.memory_space<vmem>>, vector<8x128xf32>
      tpu.vector_store %arg5[%c0_182, %c0_183], %431 {strides = array<i32>} : memref<8x128xf32, #tpu.memory_space<vmem>>, vector<8x128xf32>,
      %cst_184 = arith.constant 0.000000e+00 : f32
      %433 = vector.broadcast %cst_184 : f32 to vector<8x128xf32>
      %c0_185 = arith.constant 0 : index
      %c0_186 = arith.constant 0 : index
      %434 = vector.load %arg6[%c0_185, %c0_186] : memref<8x128xf32, #tpu.memory_space<vmem>>, vector<8x128xf32>
      tpu.vector_store %arg6[%c0_185, %c0_186], %433 {strides = array<i32>} : memref<8x128xf32, #tpu.memory_space<vmem>>, vector<8x128xf32>,
    } else {
    }
    %c0 = arith.constant 0 : index
    %c0_1 = arith.constant 0 : index
    %3 = vector.load %arg5[%c0, %c0_1] : memref<8x128xf32, #tpu.memory_space<vmem>>, vector<8x128xf32>
    %c0_2 = arith.constant 0 : index
    %c0_3 = arith.constant 0 : index
    %4 = vector.load %arg6[%c0_2, %c0_3] : memref<8x128xf32, #tpu.memory_space<vmem>>, vector<8x128xf32>
    %c0_i32_4 = arith.constant 0 : i32
    %c0_5 = arith.constant 0 : index
    %c0_6 = arith.constant 0 : index
    %5 = vector.load %arg3[%c0_5, %c0_6] : memref<128x512xf32, #tpu.memory_space<vmem>>, vector<128x512xf32>
    %cst = arith.constant dense<0.000000e+00> : vector<8x512xf32>
    %6 = tpu.matmul %3, %5, %cst {dimension_numbers = #tpu.dot_dimension_numbers<[1], [0], [0], [1], [0, 0, 1, 1], [], []>} : vector<8x128xf32>, vector<128x512xf32>, vector<8x512xf32> -> vector<8x512xf32>
    %7 = arith.index_cast %c0_i32_4 : i32 to index
    %c0_7 = arith.constant 0 : index
    %c0_8 = arith.constant 0 : index
    %8 = vector.load %arg2[%7, %c0_7, %c0_8] : memref<8x8x512xf32, #tpu.memory_space<vmem>>, vector<1x8x128xf32>
    %9 = vector.shape_cast %8 : vector<1x8x128xf32> to vector<8x128xf32>
    %10 = vector.extract_strided_slice %6 {offsets = [0, 0], sizes = [8, 128], strides = [1, 1]} : vector<8x512xf32> to vector<8x128xf32>
    %11 = arith.addf %9, %10 : vector<8x128xf32>
    %cst_9 = arith.constant 5.000000e-01 : f32
    %12 = vector.broadcast %cst_9 : f32 to vector<8x128xf32>
    %13 = arith.mulf %12, %11 : vector<8x128xf32>
    %14 = math.tanh %13 : vector<8x128xf32>
    %cst_10 = arith.constant 5.000000e-01 : f32
    %15 = vector.broadcast %cst_10 : f32 to vector<8x128xf32>
    %16 = arith.mulf %15, %14 : vector<8x128xf32>
    %cst_11 = arith.constant 5.000000e-01 : f32
    %17 = vector.broadcast %cst_11 : f32 to vector<8x128xf32>
    %18 = arith.addf %16, %17 : vector<8x128xf32>
    %19 = arith.index_cast %c0_i32_4 : i32 to index
    %c0_12 = arith.constant 0 : index
    %c128 = arith.constant 128 : index
    %20 = vector.load %arg2[%19, %c0_12, %c128] : memref<8x8x512xf32, #tpu.memory_space<vmem>>, vector<1x8x128xf32>
    %21 = vector.shape_cast %20 : vector<1x8x128xf32> to vector<8x128xf32>
    %22 = vector.extract_strided_slice %6 {offsets = [0, 128], sizes = [8, 128], strides = [1, 1]} : vector<8x512xf32> to vector<8x128xf32>
    %23 = arith.addf %21, %22 : vector<8x128xf32>
    %cst_13 = arith.constant 5.000000e-01 : f32
    %24 = vector.broadcast %cst_13 : f32 to vector<8x128xf32>
    %25 = arith.mulf %24, %23 : vector<8x128xf32>
    %26 = math.tanh %25 : vector<8x128xf32>
    %cst_14 = arith.constant 5.000000e-01 : f32
    %27 = vector.broadcast %cst_14 : f32 to vector<8x128xf32>
    %28 = arith.mulf %27, %26 : vector<8x128xf32>
    %cst_15 = arith.constant 5.000000e-01 : f32
    %29 = vector.broadcast %cst_15 : f32 to vector<8x128xf32>
    %30 = arith.addf %28, %29 : vector<8x128xf32>
    %31 = arith.index_cast %c0_i32_4 : i32 to index
    %c0_16 = arith.constant 0 : index
    %c256 = arith.constant 256 : index
    %32 = vector.load %arg2[%31, %c0_16, %c256] : memref<8x8x512xf32, #tpu.memory_space<vmem>>, vector<1x8x128xf32>
    %33 = vector.shape_cast %32 : vector<1x8x128xf32> to vector<8x128xf32>
    %34 = vector.extract_strided_slice %6 {offsets = [0, 256], sizes = [8, 128], strides = [1, 1]} : vector<8x512xf32> to vector<8x128xf32>
    %35 = arith.addf %33, %34 : vector<8x128xf32>
    %36 = math.tanh %35 : vector<8x128xf32>
    %37 = arith.index_cast %c0_i32_4 : i32 to index
    %c0_17 = arith.constant 0 : index
    %c384 = arith.constant 384 : index
    %38 = vector.load %arg2[%37, %c0_17, %c384] : memref<8x8x512xf32, #tpu.memory_space<vmem>>, vector<1x8x128xf32>
    %39 = vector.shape_cast %38 : vector<1x8x128xf32> to vector<8x128xf32>
    %40 = vector.extract_strided_slice %6 {offsets = [0, 384], sizes = [8, 128], strides = [1, 1]} : vector<8x512xf32> to vector<8x128xf32>
    %41 = arith.addf %39, %40 : vector<8x128xf32>
    %cst_18 = arith.constant 5.000000e-01 : f32
    %42 = vector.broadcast %cst_18 : f32 to vector<8x128xf32>
    %43 = arith.mulf %42, %41 : vector<8x128xf32>
    %44 = math.tanh %43 : vector<8x128xf32>
    %cst_19 = arith.constant 5.000000e-01 : f32
    %45 = vector.broadcast %cst_19 : f32 to vector<8x128xf32>
    %46 = arith.mulf %45, %44 : vector<8x128xf32>
    %cst_20 = arith.constant 5.000000e-01 : f32
    %47 = vector.broadcast %cst_20 : f32 to vector<8x128xf32>
    %48 = arith.addf %46, %47 : vector<8x128xf32>
    %49 = arith.mulf %30, %4 : vector<8x128xf32>
    %50 = arith.mulf %18, %36 : vector<8x128xf32>
    %51 = arith.addf %49, %50 : vector<8x128xf32>
    %52 = math.tanh %51 : vector<8x128xf32>
    %53 = arith.mulf %48, %52 : vector<8x128xf32>
    %54 = arith.index_cast %c0_i32_4 : i32 to index
    %c0_21 = arith.constant 0 : index
    %c0_22 = arith.constant 0 : index
    %55 = vector.load %arg4[%54, %c0_21, %c0_22] : memref<8x8x128xf32, #tpu.memory_space<vmem>>, vector<1x8x128xf32>
    %56 = vector.shape_cast %55 : vector<1x8x128xf32> to vector<8x128xf32>
    %57 = vector.shape_cast %53 : vector<8x128xf32> to vector<1x8x128xf32>
    tpu.vector_store %arg4[%54, %c0_21, %c0_22], %57 {strides = array<i32>} : memref<8x8x128xf32, #tpu.memory_space<vmem>>, vector<1x8x128xf32>,
    %c1_i32 = arith.constant 1 : i32
    %c0_23 = arith.constant 0 : index
    %c0_24 = arith.constant 0 : index
    %58 = vector.load %arg3[%c0_23, %c0_24] : memref<128x512xf32, #tpu.memory_space<vmem>>, vector<128x512xf32>
    %cst_25 = arith.constant dense<0.000000e+00> : vector<8x512xf32>
    %59 = tpu.matmul %53, %58, %cst_25 {dimension_numbers = #tpu.dot_dimension_numbers<[1], [0], [0], [1], [0, 0, 1, 1], [], []>} : vector<8x128xf32>, vector<128x512xf32>, vector<8x512xf32> -> vector<8x512xf32>
    %60 = arith.index_cast %c1_i32 : i32 to index
    %c0_26 = arith.constant 0 : index
    %c0_27 = arith.constant 0 : index
    %61 = vector.load %arg2[%60, %c0_26, %c0_27] : memref<8x8x512xf32, #tpu.memory_space<vmem>>, vector<1x8x128xf32>
    %62 = vector.shape_cast %61 : vector<1x8x128xf32> to vector<8x128xf32>
    %63 = vector.extract_strided_slice %59 {offsets = [0, 0], sizes = [8, 128], strides = [1, 1]} : vector<8x512xf32> to vector<8x128xf32>
    %64 = arith.addf %62, %63 : vector<8x128xf32>
    %cst_28 = arith.constant 5.000000e-01 : f32
    %65 = vector.broadcast %cst_28 : f32 to vector<8x128xf32>
    %66 = arith.mulf %65, %64 : vector<8x128xf32>
    %67 = math.tanh %66 : vector<8x128xf32>
    %cst_29 = arith.constant 5.000000e-01 : f32
    %68 = vector.broadcast %cst_29 : f32 to vector<8x128xf32>
    %69 = arith.mulf %68, %67 : vector<8x128xf32>
    %cst_30 = arith.constant 5.000000e-01 : f32
    %70 = vector.broadcast %cst_30 : f32 to vector<8x128xf32>
    %71 = arith.addf %69, %70 : vector<8x128xf32>
    %72 = arith.index_cast %c1_i32 : i32 to index
    %c0_31 = arith.constant 0 : index
    %c128_32 = arith.constant 128 : index
    %73 = vector.load %arg2[%72, %c0_31, %c128_32] : memref<8x8x512xf32, #tpu.memory_space<vmem>>, vector<1x8x128xf32>
    %74 = vector.shape_cast %73 : vector<1x8x128xf32> to vector<8x128xf32>
    %75 = vector.extract_strided_slice %59 {offsets = [0, 128], sizes = [8, 128], strides = [1, 1]} : vector<8x512xf32> to vector<8x128xf32>
    %76 = arith.addf %74, %75 : vector<8x128xf32>
    %cst_33 = arith.constant 5.000000e-01 : f32
    %77 = vector.broadcast %cst_33 : f32 to vector<8x128xf32>
    %78 = arith.mulf %77, %76 : vector<8x128xf32>
    %79 = math.tanh %78 : vector<8x128xf32>
    %cst_34 = arith.constant 5.000000e-01 : f32
    %80 = vector.broadcast %cst_34 : f32 to vector<8x128xf32>
    %81 = arith.mulf %80, %79 : vector<8x128xf32>
    %cst_35 = arith.constant 5.000000e-01 : f32
    %82 = vector.broadcast %cst_35 : f32 to vector<8x128xf32>
    %83 = arith.addf %81, %82 : vector<8x128xf32>
    %84 = arith.index_cast %c1_i32 : i32 to index
    %c0_36 = arith.constant 0 : index
    %c256_37 = arith.constant 256 : index
    %85 = vector.load %arg2[%84, %c0_36, %c256_37] : memref<8x8x512xf32, #tpu.memory_space<vmem>>, vector<1x8x128xf32>
    %86 = vector.shape_cast %85 : vector<1x8x128xf32> to vector<8x128xf32>
    %87 = vector.extract_strided_slice %59 {offsets = [0, 256], sizes = [8, 128], strides = [1, 1]} : vector<8x512xf32> to vector<8x128xf32>
    %88 = arith.addf %86, %87 : vector<8x128xf32>
    %89 = math.tanh %88 : vector<8x128xf32>
    %90 = arith.index_cast %c1_i32 : i32 to index
    %c0_38 = arith.constant 0 : index
    %c384_39 = arith.constant 384 : index
    %91 = vector.load %arg2[%90, %c0_38, %c384_39] : memref<8x8x512xf32, #tpu.memory_space<vmem>>, vector<1x8x128xf32>
    %92 = vector.shape_cast %91 : vector<1x8x128xf32> to vector<8x128xf32>
    %93 = vector.extract_strided_slice %59 {offsets = [0, 384], sizes = [8, 128], strides = [1, 1]} : vector<8x512xf32> to vector<8x128xf32>
    %94 = arith.addf %92, %93 : vector<8x128xf32>
    %cst_40 = arith.constant 5.000000e-01 : f32
    %95 = vector.broadcast %cst_40 : f32 to vector<8x128xf32>
    %96 = arith.mulf %95, %94 : vector<8x128xf32>
    %97 = math.tanh %96 : vector<8x128xf32>
    %cst_41 = arith.constant 5.000000e-01 : f32
    %98 = vector.broadcast %cst_41 : f32 to vector<8x128xf32>
    %99 = arith.mulf %98, %97 : vector<8x128xf32>
    %cst_42 = arith.constant 5.000000e-01 : f32
    %100 = vector.broadcast %cst_42 : f32 to vector<8x128xf32>
    %101 = arith.addf %99, %100 : vector<8x128xf32>
    %102 = arith.mulf %83, %51 : vector<8x128xf32>
    %103 = arith.mulf %71, %89 : vector<8x128xf32>
    %104 = arith.addf %102, %103 : vector<8x128xf32>
    %105 = math.tanh %104 : vector<8x128xf32>
    %106 = arith.mulf %101, %105 : vector<8x128xf32>
    %107 = arith.index_cast %c1_i32 : i32 to index
    %c0_43 = arith.constant 0 : index
    %c0_44 = arith.constant 0 : index
    %108 = vector.load %arg4[%107, %c0_43, %c0_44] : memref<8x8x128xf32, #tpu.memory_space<vmem>>, vector<1x8x128xf32>
    %109 = vector.shape_cast %108 : vector<1x8x128xf32> to vector<8x128xf32>
    %110 = vector.shape_cast %106 : vector<8x128xf32> to vector<1x8x128xf32>
    tpu.vector_store %arg4[%107, %c0_43, %c0_44], %110 {strides = array<i32>} : memref<8x8x128xf32, #tpu.memory_space<vmem>>, vector<1x8x128xf32>,
    %c2_i32 = arith.constant 2 : i32
    %c0_45 = arith.constant 0 : index
    %c0_46 = arith.constant 0 : index
    %111 = vector.load %arg3[%c0_45, %c0_46] : memref<128x512xf32, #tpu.memory_space<vmem>>, vector<128x512xf32>
    %cst_47 = arith.constant dense<0.000000e+00> : vector<8x512xf32>
    %112 = tpu.matmul %106, %111, %cst_47 {dimension_numbers = #tpu.dot_dimension_numbers<[1], [0], [0], [1], [0, 0, 1, 1], [], []>} : vector<8x128xf32>, vector<128x512xf32>, vector<8x512xf32> -> vector<8x512xf32>
    %113 = arith.index_cast %c2_i32 : i32 to index
    %c0_48 = arith.constant 0 : index
    %c0_49 = arith.constant 0 : index
    %114 = vector.load %arg2[%113, %c0_48, %c0_49] : memref<8x8x512xf32, #tpu.memory_space<vmem>>, vector<1x8x128xf32>
    %115 = vector.shape_cast %114 : vector<1x8x128xf32> to vector<8x128xf32>
    %116 = vector.extract_strided_slice %112 {offsets = [0, 0], sizes = [8, 128], strides = [1, 1]} : vector<8x512xf32> to vector<8x128xf32>
    %117 = arith.addf %115, %116 : vector<8x128xf32>
    %cst_50 = arith.constant 5.000000e-01 : f32
    %118 = vector.broadcast %cst_50 : f32 to vector<8x128xf32>
    %119 = arith.mulf %118, %117 : vector<8x128xf32>
    %120 = math.tanh %119 : vector<8x128xf32>
    %cst_51 = arith.constant 5.000000e-01 : f32
    %121 = vector.broadcast %cst_51 : f32 to vector<8x128xf32>
    %122 = arith.mulf %121, %120 : vector<8x128xf32>
    %cst_52 = arith.constant 5.000000e-01 : f32
    %123 = vector.broadcast %cst_52 : f32 to vector<8x128xf32>
    %124 = arith.addf %122, %123 : vector<8x128xf32>
    %125 = arith.index_cast %c2_i32 : i32 to index
    %c0_53 = arith.constant 0 : index
    %c128_54 = arith.constant 128 : index
    %126 = vector.load %arg2[%125, %c0_53, %c128_54] : memref<8x8x512xf32, #tpu.memory_space<vmem>>, vector<1x8x128xf32>
    %127 = vector.shape_cast %126 : vector<1x8x128xf32> to vector<8x128xf32>
    %128 = vector.extract_strided_slice %112 {offsets = [0, 128], sizes = [8, 128], strides = [1, 1]} : vector<8x512xf32> to vector<8x128xf32>
    %129 = arith.addf %127, %128 : vector<8x128xf32>
    %cst_55 = arith.constant 5.000000e-01 : f32
    %130 = vector.broadcast %cst_55 : f32 to vector<8x128xf32>
    %131 = arith.mulf %130, %129 : vector<8x128xf32>
    %132 = math.tanh %131 : vector<8x128xf32>
    %cst_56 = arith.constant 5.000000e-01 : f32
    %133 = vector.broadcast %cst_56 : f32 to vector<8x128xf32>
    %134 = arith.mulf %133, %132 : vector<8x128xf32>
    %cst_57 = arith.constant 5.000000e-01 : f32
    %135 = vector.broadcast %cst_57 : f32 to vector<8x128xf32>
    %136 = arith.addf %134, %135 : vector<8x128xf32>
    %137 = arith.index_cast %c2_i32 : i32 to index
    %c0_58 = arith.constant 0 : index
    %c256_59 = arith.constant 256 : index
    %138 = vector.load %arg2[%137, %c0_58, %c256_59] : memref<8x8x512xf32, #tpu.memory_space<vmem>>, vector<1x8x128xf32>
    %139 = vector.shape_cast %138 : vector<1x8x128xf32> to vector<8x128xf32>
    %140 = vector.extract_strided_slice %112 {offsets = [0, 256], sizes = [8, 128], strides = [1, 1]} : vector<8x512xf32> to vector<8x128xf32>
    %141 = arith.addf %139, %140 : vector<8x128xf32>
    %142 = math.tanh %141 : vector<8x128xf32>
    %143 = arith.index_cast %c2_i32 : i32 to index
    %c0_60 = arith.constant 0 : index
    %c384_61 = arith.constant 384 : index
    %144 = vector.load %arg2[%143, %c0_60, %c384_61] : memref<8x8x512xf32, #tpu.memory_space<vmem>>, vector<1x8x128xf32>
    %145 = vector.shape_cast %144 : vector<1x8x128xf32> to vector<8x128xf32>
    %146 = vector.extract_strided_slice %112 {offsets = [0, 384], sizes = [8, 128], strides = [1, 1]} : vector<8x512xf32> to vector<8x128xf32>
    %147 = arith.addf %145, %146 : vector<8x128xf32>
    %cst_62 = arith.constant 5.000000e-01 : f32
    %148 = vector.broadcast %cst_62 : f32 to vector<8x128xf32>
    %149 = arith.mulf %148, %147 : vector<8x128xf32>
    %150 = math.tanh %149 : vector<8x128xf32>
    %cst_63 = arith.constant 5.000000e-01 : f32
    %151 = vector.broadcast %cst_63 : f32 to vector<8x128xf32>
    %152 = arith.mulf %151, %150 : vector<8x128xf32>
    %cst_64 = arith.constant 5.000000e-01 : f32
    %153 = vector.broadcast %cst_64 : f32 to vector<8x128xf32>
    %154 = arith.addf %152, %153 : vector<8x128xf32>
    %155 = arith.mulf %136, %104 : vector<8x128xf32>
    %156 = arith.mulf %124, %142 : vector<8x128xf32>
    %157 = arith.addf %155, %156 : vector<8x128xf32>
    %158 = math.tanh %157 : vector<8x128xf32>
    %159 = arith.mulf %154, %158 : vector<8x128xf32>
    %160 = arith.index_cast %c2_i32 : i32 to index
    %c0_65 = arith.constant 0 : index
    %c0_66 = arith.constant 0 : index
    %161 = vector.load %arg4[%160, %c0_65, %c0_66] : memref<8x8x128xf32, #tpu.memory_space<vmem>>, vector<1x8x128xf32>
    %162 = vector.shape_cast %161 : vector<1x8x128xf32> to vector<8x128xf32>
    %163 = vector.shape_cast %159 : vector<8x128xf32> to vector<1x8x128xf32>
    tpu.vector_store %arg4[%160, %c0_65, %c0_66], %163 {strides = array<i32>} : memref<8x8x128xf32, #tpu.memory_space<vmem>>, vector<1x8x128xf32>,
    %c3_i32 = arith.constant 3 : i32
    %c0_67 = arith.constant 0 : index
    %c0_68 = arith.constant 0 : index
    %164 = vector.load %arg3[%c0_67, %c0_68] : memref<128x512xf32, #tpu.memory_space<vmem>>, vector<128x512xf32>
    %cst_69 = arith.constant dense<0.000000e+00> : vector<8x512xf32>
    %165 = tpu.matmul %159, %164, %cst_69 {dimension_numbers = #tpu.dot_dimension_numbers<[1], [0], [0], [1], [0, 0, 1, 1], [], []>} : vector<8x128xf32>, vector<128x512xf32>, vector<8x512xf32> -> vector<8x512xf32>
    %166 = arith.index_cast %c3_i32 : i32 to index
    %c0_70 = arith.constant 0 : index
    %c0_71 = arith.constant 0 : index
    %167 = vector.load %arg2[%166, %c0_70, %c0_71] : memref<8x8x512xf32, #tpu.memory_space<vmem>>, vector<1x8x128xf32>
    %168 = vector.shape_cast %167 : vector<1x8x128xf32> to vector<8x128xf32>
    %169 = vector.extract_strided_slice %165 {offsets = [0, 0], sizes = [8, 128], strides = [1, 1]} : vector<8x512xf32> to vector<8x128xf32>
    %170 = arith.addf %168, %169 : vector<8x128xf32>
    %cst_72 = arith.constant 5.000000e-01 : f32
    %171 = vector.broadcast %cst_72 : f32 to vector<8x128xf32>
    %172 = arith.mulf %171, %170 : vector<8x128xf32>
    %173 = math.tanh %172 : vector<8x128xf32>
    %cst_73 = arith.constant 5.000000e-01 : f32
    %174 = vector.broadcast %cst_73 : f32 to vector<8x128xf32>
    %175 = arith.mulf %174, %173 : vector<8x128xf32>
    %cst_74 = arith.constant 5.000000e-01 : f32
    %176 = vector.broadcast %cst_74 : f32 to vector<8x128xf32>
    %177 = arith.addf %175, %176 : vector<8x128xf32>
    %178 = arith.index_cast %c3_i32 : i32 to index
    %c0_75 = arith.constant 0 : index
    %c128_76 = arith.constant 128 : index
    %179 = vector.load %arg2[%178, %c0_75, %c128_76] : memref<8x8x512xf32, #tpu.memory_space<vmem>>, vector<1x8x128xf32>
    %180 = vector.shape_cast %179 : vector<1x8x128xf32> to vector<8x128xf32>
    %181 = vector.extract_strided_slice %165 {offsets = [0, 128], sizes = [8, 128], strides = [1, 1]} : vector<8x512xf32> to vector<8x128xf32>
    %182 = arith.addf %180, %181 : vector<8x128xf32>
    %cst_77 = arith.constant 5.000000e-01 : f32
    %183 = vector.broadcast %cst_77 : f32 to vector<8x128xf32>
    %184 = arith.mulf %183, %182 : vector<8x128xf32>
    %185 = math.tanh %184 : vector<8x128xf32>
    %cst_78 = arith.constant 5.000000e-01 : f32
    %186 = vector.broadcast %cst_78 : f32 to vector<8x128xf32>
    %187 = arith.mulf %186, %185 : vector<8x128xf32>
    %cst_79 = arith.constant 5.000000e-01 : f32
    %188 = vector.broadcast %cst_79 : f32 to vector<8x128xf32>
    %189 = arith.addf %187, %188 : vector<8x128xf32>
    %190 = arith.index_cast %c3_i32 : i32 to index
    %c0_80 = arith.constant 0 : index
    %c256_81 = arith.constant 256 : index
    %191 = vector.load %arg2[%190, %c0_80, %c256_81] : memref<8x8x512xf32, #tpu.memory_space<vmem>>, vector<1x8x128xf32>
    %192 = vector.shape_cast %191 : vector<1x8x128xf32> to vector<8x128xf32>
    %193 = vector.extract_strided_slice %165 {offsets = [0, 256], sizes = [8, 128], strides = [1, 1]} : vector<8x512xf32> to vector<8x128xf32>
    %194 = arith.addf %192, %193 : vector<8x128xf32>
    %195 = math.tanh %194 : vector<8x128xf32>
    %196 = arith.index_cast %c3_i32 : i32 to index
    %c0_82 = arith.constant 0 : index
    %c384_83 = arith.constant 384 : index
    %197 = vector.load %arg2[%196, %c0_82, %c384_83] : memref<8x8x512xf32, #tpu.memory_space<vmem>>, vector<1x8x128xf32>
    %198 = vector.shape_cast %197 : vector<1x8x128xf32> to vector<8x128xf32>
    %199 = vector.extract_strided_slice %165 {offsets = [0, 384], sizes = [8, 128], strides = [1, 1]} : vector<8x512xf32> to vector<8x128xf32>
    %200 = arith.addf %198, %199 : vector<8x128xf32>
    %cst_84 = arith.constant 5.000000e-01 : f32
    %201 = vector.broadcast %cst_84 : f32 to vector<8x128xf32>
    %202 = arith.mulf %201, %200 : vector<8x128xf32>
    %203 = math.tanh %202 : vector<8x128xf32>
    %cst_85 = arith.constant 5.000000e-01 : f32
    %204 = vector.broadcast %cst_85 : f32 to vector<8x128xf32>
    %205 = arith.mulf %204, %203 : vector<8x128xf32>
    %cst_86 = arith.constant 5.000000e-01 : f32
    %206 = vector.broadcast %cst_86 : f32 to vector<8x128xf32>
    %207 = arith.addf %205, %206 : vector<8x128xf32>
    %208 = arith.mulf %189, %157 : vector<8x128xf32>
    %209 = arith.mulf %177, %195 : vector<8x128xf32>
    %210 = arith.addf %208, %209 : vector<8x128xf32>
    %211 = math.tanh %210 : vector<8x128xf32>
    %212 = arith.mulf %207, %211 : vector<8x128xf32>
    %213 = arith.index_cast %c3_i32 : i32 to index
    %c0_87 = arith.constant 0 : index
    %c0_88 = arith.constant 0 : index
    %214 = vector.load %arg4[%213, %c0_87, %c0_88] : memref<8x8x128xf32, #tpu.memory_space<vmem>>, vector<1x8x128xf32>
    %215 = vector.shape_cast %214 : vector<1x8x128xf32> to vector<8x128xf32>
    %216 = vector.shape_cast %212 : vector<8x128xf32> to vector<1x8x128xf32>
    tpu.vector_store %arg4[%213, %c0_87, %c0_88], %216 {strides = array<i32>} : memref<8x8x128xf32, #tpu.memory_space<vmem>>, vector<1x8x128xf32>,
    %c4_i32 = arith.constant 4 : i32
    %c0_89 = arith.constant 0 : index
    %c0_90 = arith.constant 0 : index
    %217 = vector.load %arg3[%c0_89, %c0_90] : memref<128x512xf32, #tpu.memory_space<vmem>>, vector<128x512xf32>
    %cst_91 = arith.constant dense<0.000000e+00> : vector<8x512xf32>
    %218 = tpu.matmul %212, %217, %cst_91 {dimension_numbers = #tpu.dot_dimension_numbers<[1], [0], [0], [1], [0, 0, 1, 1], [], []>} : vector<8x128xf32>, vector<128x512xf32>, vector<8x512xf32> -> vector<8x512xf32>
    %219 = arith.index_cast %c4_i32 : i32 to index
    %c0_92 = arith.constant 0 : index
    %c0_93 = arith.constant 0 : index
    %220 = vector.load %arg2[%219, %c0_92, %c0_93] : memref<8x8x512xf32, #tpu.memory_space<vmem>>, vector<1x8x128xf32>
    %221 = vector.shape_cast %220 : vector<1x8x128xf32> to vector<8x128xf32>
    %222 = vector.extract_strided_slice %218 {offsets = [0, 0], sizes = [8, 128], strides = [1, 1]} : vector<8x512xf32> to vector<8x128xf32>
    %223 = arith.addf %221, %222 : vector<8x128xf32>
    %cst_94 = arith.constant 5.000000e-01 : f32
    %224 = vector.broadcast %cst_94 : f32 to vector<8x128xf32>
    %225 = arith.mulf %224, %223 : vector<8x128xf32>
    %226 = math.tanh %225 : vector<8x128xf32>
    %cst_95 = arith.constant 5.000000e-01 : f32
    %227 = vector.broadcast %cst_95 : f32 to vector<8x128xf32>
    %228 = arith.mulf %227, %226 : vector<8x128xf32>
    %cst_96 = arith.constant 5.000000e-01 : f32
    %229 = vector.broadcast %cst_96 : f32 to vector<8x128xf32>
    %230 = arith.addf %228, %229 : vector<8x128xf32>
    %231 = arith.index_cast %c4_i32 : i32 to index
    %c0_97 = arith.constant 0 : index
    %c128_98 = arith.constant 128 : index
    %232 = vector.load %arg2[%231, %c0_97, %c128_98] : memref<8x8x512xf32, #tpu.memory_space<vmem>>, vector<1x8x128xf32>
    %233 = vector.shape_cast %232 : vector<1x8x128xf32> to vector<8x128xf32>
    %234 = vector.extract_strided_slice %218 {offsets = [0, 128], sizes = [8, 128], strides = [1, 1]} : vector<8x512xf32> to vector<8x128xf32>
    %235 = arith.addf %233, %234 : vector<8x128xf32>
    %cst_99 = arith.constant 5.000000e-01 : f32
    %236 = vector.broadcast %cst_99 : f32 to vector<8x128xf32>
    %237 = arith.mulf %236, %235 : vector<8x128xf32>
    %238 = math.tanh %237 : vector<8x128xf32>
    %cst_100 = arith.constant 5.000000e-01 : f32
    %239 = vector.broadcast %cst_100 : f32 to vector<8x128xf32>
    %240 = arith.mulf %239, %238 : vector<8x128xf32>
    %cst_101 = arith.constant 5.000000e-01 : f32
    %241 = vector.broadcast %cst_101 : f32 to vector<8x128xf32>
    %242 = arith.addf %240, %241 : vector<8x128xf32>
    %243 = arith.index_cast %c4_i32 : i32 to index
    %c0_102 = arith.constant 0 : index
    %c256_103 = arith.constant 256 : index
    %244 = vector.load %arg2[%243, %c0_102, %c256_103] : memref<8x8x512xf32, #tpu.memory_space<vmem>>, vector<1x8x128xf32>
    %245 = vector.shape_cast %244 : vector<1x8x128xf32> to vector<8x128xf32>
    %246 = vector.extract_strided_slice %218 {offsets = [0, 256], sizes = [8, 128], strides = [1, 1]} : vector<8x512xf32> to vector<8x128xf32>
    %247 = arith.addf %245, %246 : vector<8x128xf32>
    %248 = math.tanh %247 : vector<8x128xf32>
    %249 = arith.index_cast %c4_i32 : i32 to index
    %c0_104 = arith.constant 0 : index
    %c384_105 = arith.constant 384 : index
    %250 = vector.load %arg2[%249, %c0_104, %c384_105] : memref<8x8x512xf32, #tpu.memory_space<vmem>>, vector<1x8x128xf32>
    %251 = vector.shape_cast %250 : vector<1x8x128xf32> to vector<8x128xf32>
    %252 = vector.extract_strided_slice %218 {offsets = [0, 384], sizes = [8, 128], strides = [1, 1]} : vector<8x512xf32> to vector<8x128xf32>
    %253 = arith.addf %251, %252 : vector<8x128xf32>
    %cst_106 = arith.constant 5.000000e-01 : f32
    %254 = vector.broadcast %cst_106 : f32 to vector<8x128xf32>
    %255 = arith.mulf %254, %253 : vector<8x128xf32>
    %256 = math.tanh %255 : vector<8x128xf32>
    %cst_107 = arith.constant 5.000000e-01 : f32
    %257 = vector.broadcast %cst_107 : f32 to vector<8x128xf32>
    %258 = arith.mulf %257, %256 : vector<8x128xf32>
    %cst_108 = arith.constant 5.000000e-01 : f32
    %259 = vector.broadcast %cst_108 : f32 to vector<8x128xf32>
    %260 = arith.addf %258, %259 : vector<8x128xf32>
    %261 = arith.mulf %242, %210 : vector<8x128xf32>
    %262 = arith.mulf %230, %248 : vector<8x128xf32>
    %263 = arith.addf %261, %262 : vector<8x128xf32>
    %264 = math.tanh %263 : vector<8x128xf32>
    %265 = arith.mulf %260, %264 : vector<8x128xf32>
    %266 = arith.index_cast %c4_i32 : i32 to index
    %c0_109 = arith.constant 0 : index
    %c0_110 = arith.constant 0 : index
    %267 = vector.load %arg4[%266, %c0_109, %c0_110] : memref<8x8x128xf32, #tpu.memory_space<vmem>>, vector<1x8x128xf32>
    %268 = vector.shape_cast %267 : vector<1x8x128xf32> to vector<8x128xf32>
    %269 = vector.shape_cast %265 : vector<8x128xf32> to vector<1x8x128xf32>
    tpu.vector_store %arg4[%266, %c0_109, %c0_110], %269 {strides = array<i32>} : memref<8x8x128xf32, #tpu.memory_space<vmem>>, vector<1x8x128xf32>,
    %c5_i32 = arith.constant 5 : i32
    %c0_111 = arith.constant 0 : index
    %c0_112 = arith.constant 0 : index
    %270 = vector.load %arg3[%c0_111, %c0_112] : memref<128x512xf32, #tpu.memory_space<vmem>>, vector<128x512xf32>
    %cst_113 = arith.constant dense<0.000000e+00> : vector<8x512xf32>
    %271 = tpu.matmul %265, %270, %cst_113 {dimension_numbers = #tpu.dot_dimension_numbers<[1], [0], [0], [1], [0, 0, 1, 1], [], []>} : vector<8x128xf32>, vector<128x512xf32>, vector<8x512xf32> -> vector<8x512xf32>
    %272 = arith.index_cast %c5_i32 : i32 to index
    %c0_114 = arith.constant 0 : index
    %c0_115 = arith.constant 0 : index
    %273 = vector.load %arg2[%272, %c0_114, %c0_115] : memref<8x8x512xf32, #tpu.memory_space<vmem>>, vector<1x8x128xf32>
    %274 = vector.shape_cast %273 : vector<1x8x128xf32> to vector<8x128xf32>
    %275 = vector.extract_strided_slice %271 {offsets = [0, 0], sizes = [8, 128], strides = [1, 1]} : vector<8x512xf32> to vector<8x128xf32>
    %276 = arith.addf %274, %275 : vector<8x128xf32>
    %cst_116 = arith.constant 5.000000e-01 : f32
    %277 = vector.broadcast %cst_116 : f32 to vector<8x128xf32>
    %278 = arith.mulf %277, %276 : vector<8x128xf32>
    %279 = math.tanh %278 : vector<8x128xf32>
    %cst_117 = arith.constant 5.000000e-01 : f32
    %280 = vector.broadcast %cst_117 : f32 to vector<8x128xf32>
    %281 = arith.mulf %280, %279 : vector<8x128xf32>
    %cst_118 = arith.constant 5.000000e-01 : f32
    %282 = vector.broadcast %cst_118 : f32 to vector<8x128xf32>
    %283 = arith.addf %281, %282 : vector<8x128xf32>
    %284 = arith.index_cast %c5_i32 : i32 to index
    %c0_119 = arith.constant 0 : index
    %c128_120 = arith.constant 128 : index
    %285 = vector.load %arg2[%284, %c0_119, %c128_120] : memref<8x8x512xf32, #tpu.memory_space<vmem>>, vector<1x8x128xf32>
    %286 = vector.shape_cast %285 : vector<1x8x128xf32> to vector<8x128xf32>
    %287 = vector.extract_strided_slice %271 {offsets = [0, 128], sizes = [8, 128], strides = [1, 1]} : vector<8x512xf32> to vector<8x128xf32>
    %288 = arith.addf %286, %287 : vector<8x128xf32>
    %cst_121 = arith.constant 5.000000e-01 : f32
    %289 = vector.broadcast %cst_121 : f32 to vector<8x128xf32>
    %290 = arith.mulf %289, %288 : vector<8x128xf32>
    %291 = math.tanh %290 : vector<8x128xf32>
    %cst_122 = arith.constant 5.000000e-01 : f32
    %292 = vector.broadcast %cst_122 : f32 to vector<8x128xf32>
    %293 = arith.mulf %292, %291 : vector<8x128xf32>
    %cst_123 = arith.constant 5.000000e-01 : f32
    %294 = vector.broadcast %cst_123 : f32 to vector<8x128xf32>
    %295 = arith.addf %293, %294 : vector<8x128xf32>
    %296 = arith.index_cast %c5_i32 : i32 to index
    %c0_124 = arith.constant 0 : index
    %c256_125 = arith.constant 256 : index
    %297 = vector.load %arg2[%296, %c0_124, %c256_125] : memref<8x8x512xf32, #tpu.memory_space<vmem>>, vector<1x8x128xf32>
    %298 = vector.shape_cast %297 : vector<1x8x128xf32> to vector<8x128xf32>
    %299 = vector.extract_strided_slice %271 {offsets = [0, 256], sizes = [8, 128], strides = [1, 1]} : vector<8x512xf32> to vector<8x128xf32>
    %300 = arith.addf %298, %299 : vector<8x128xf32>
    %301 = math.tanh %300 : vector<8x128xf32>
    %302 = arith.index_cast %c5_i32 : i32 to index
    %c0_126 = arith.constant 0 : index
    %c384_127 = arith.constant 384 : index
    %303 = vector.load %arg2[%302, %c0_126, %c384_127] : memref<8x8x512xf32, #tpu.memory_space<vmem>>, vector<1x8x128xf32>
    %304 = vector.shape_cast %303 : vector<1x8x128xf32> to vector<8x128xf32>
    %305 = vector.extract_strided_slice %271 {offsets = [0, 384], sizes = [8, 128], strides = [1, 1]} : vector<8x512xf32> to vector<8x128xf32>
    %306 = arith.addf %304, %305 : vector<8x128xf32>
    %cst_128 = arith.constant 5.000000e-01 : f32
    %307 = vector.broadcast %cst_128 : f32 to vector<8x128xf32>
    %308 = arith.mulf %307, %306 : vector<8x128xf32>
    %309 = math.tanh %308 : vector<8x128xf32>
    %cst_129 = arith.constant 5.000000e-01 : f32
    %310 = vector.broadcast %cst_129 : f32 to vector<8x128xf32>
    %311 = arith.mulf %310, %309 : vector<8x128xf32>
    %cst_130 = arith.constant 5.000000e-01 : f32
    %312 = vector.broadcast %cst_130 : f32 to vector<8x128xf32>
    %313 = arith.addf %311, %312 : vector<8x128xf32>
    %314 = arith.mulf %295, %263 : vector<8x128xf32>
    %315 = arith.mulf %283, %301 : vector<8x128xf32>
    %316 = arith.addf %314, %315 : vector<8x128xf32>
    %317 = math.tanh %316 : vector<8x128xf32>
    %318 = arith.mulf %313, %317 : vector<8x128xf32>
    %319 = arith.index_cast %c5_i32 : i32 to index
    %c0_131 = arith.constant 0 : index
    %c0_132 = arith.constant 0 : index
    %320 = vector.load %arg4[%319, %c0_131, %c0_132] : memref<8x8x128xf32, #tpu.memory_space<vmem>>, vector<1x8x128xf32>
    %321 = vector.shape_cast %320 : vector<1x8x128xf32> to vector<8x128xf32>
    %322 = vector.shape_cast %318 : vector<8x128xf32> to vector<1x8x128xf32>
    tpu.vector_store %arg4[%319, %c0_131, %c0_132], %322 {strides = array<i32>} : memref<8x8x128xf32, #tpu.memory_space<vmem>>, vector<1x8x128xf32>,
    %c6_i32 = arith.constant 6 : i32
    %c0_133 = arith.constant 0 : index
    %c0_134 = arith.constant 0 : index
    %323 = vector.load %arg3[%c0_133, %c0_134] : memref<128x512xf32, #tpu.memory_space<vmem>>, vector<128x512xf32>
    %cst_135 = arith.constant dense<0.000000e+00> : vector<8x512xf32>
    %324 = tpu.matmul %318, %323, %cst_135 {dimension_numbers = #tpu.dot_dimension_numbers<[1], [0], [0], [1], [0, 0, 1, 1], [], []>} : vector<8x128xf32>, vector<128x512xf32>, vector<8x512xf32> -> vector<8x512xf32>
    %325 = arith.index_cast %c6_i32 : i32 to index
    %c0_136 = arith.constant 0 : index
    %c0_137 = arith.constant 0 : index
    %326 = vector.load %arg2[%325, %c0_136, %c0_137] : memref<8x8x512xf32, #tpu.memory_space<vmem>>, vector<1x8x128xf32>
    %327 = vector.shape_cast %326 : vector<1x8x128xf32> to vector<8x128xf32>
    %328 = vector.extract_strided_slice %324 {offsets = [0, 0], sizes = [8, 128], strides = [1, 1]} : vector<8x512xf32> to vector<8x128xf32>
    %329 = arith.addf %327, %328 : vector<8x128xf32>
    %cst_138 = arith.constant 5.000000e-01 : f32
    %330 = vector.broadcast %cst_138 : f32 to vector<8x128xf32>
    %331 = arith.mulf %330, %329 : vector<8x128xf32>
    %332 = math.tanh %331 : vector<8x128xf32>
    %cst_139 = arith.constant 5.000000e-01 : f32
    %333 = vector.broadcast %cst_139 : f32 to vector<8x128xf32>
    %334 = arith.mulf %333, %332 : vector<8x128xf32>
    %cst_140 = arith.constant 5.000000e-01 : f32
    %335 = vector.broadcast %cst_140 : f32 to vector<8x128xf32>
    %336 = arith.addf %334, %335 : vector<8x128xf32>
    %337 = arith.index_cast %c6_i32 : i32 to index
    %c0_141 = arith.constant 0 : index
    %c128_142 = arith.constant 128 : index
    %338 = vector.load %arg2[%337, %c0_141, %c128_142] : memref<8x8x512xf32, #tpu.memory_space<vmem>>, vector<1x8x128xf32>
    %339 = vector.shape_cast %338 : vector<1x8x128xf32> to vector<8x128xf32>
    %340 = vector.extract_strided_slice %324 {offsets = [0, 128], sizes = [8, 128], strides = [1, 1]} : vector<8x512xf32> to vector<8x128xf32>
    %341 = arith.addf %339, %340 : vector<8x128xf32>
    %cst_143 = arith.constant 5.000000e-01 : f32
    %342 = vector.broadcast %cst_143 : f32 to vector<8x128xf32>
    %343 = arith.mulf %342, %341 : vector<8x128xf32>
    %344 = math.tanh %343 : vector<8x128xf32>
    %cst_144 = arith.constant 5.000000e-01 : f32
    %345 = vector.broadcast %cst_144 : f32 to vector<8x128xf32>
    %346 = arith.mulf %345, %344 : vector<8x128xf32>
    %cst_145 = arith.constant 5.000000e-01 : f32
    %347 = vector.broadcast %cst_145 : f32 to vector<8x128xf32>
    %348 = arith.addf %346, %347 : vector<8x128xf32>
    %349 = arith.index_cast %c6_i32 : i32 to index
    %c0_146 = arith.constant 0 : index
    %c256_147 = arith.constant 256 : index
    %350 = vector.load %arg2[%349, %c0_146, %c256_147] : memref<8x8x512xf32, #tpu.memory_space<vmem>>, vector<1x8x128xf32>
    %351 = vector.shape_cast %350 : vector<1x8x128xf32> to vector<8x128xf32>
    %352 = vector.extract_strided_slice %324 {offsets = [0, 256], sizes = [8, 128], strides = [1, 1]} : vector<8x512xf32> to vector<8x128xf32>
    %353 = arith.addf %351, %352 : vector<8x128xf32>
    %354 = math.tanh %353 : vector<8x128xf32>
    %355 = arith.index_cast %c6_i32 : i32 to index
    %c0_148 = arith.constant 0 : index
    %c384_149 = arith.constant 384 : index
    %356 = vector.load %arg2[%355, %c0_148, %c384_149] : memref<8x8x512xf32, #tpu.memory_space<vmem>>, vector<1x8x128xf32>
    %357 = vector.shape_cast %356 : vector<1x8x128xf32> to vector<8x128xf32>
    %358 = vector.extract_strided_slice %324 {offsets = [0, 384], sizes = [8, 128], strides = [1, 1]} : vector<8x512xf32> to vector<8x128xf32>
    %359 = arith.addf %357, %358 : vector<8x128xf32>
    %cst_150 = arith.constant 5.000000e-01 : f32
    %360 = vector.broadcast %cst_150 : f32 to vector<8x128xf32>
    %361 = arith.mulf %360, %359 : vector<8x128xf32>
    %362 = math.tanh %361 : vector<8x128xf32>
    %cst_151 = arith.constant 5.000000e-01 : f32
    %363 = vector.broadcast %cst_151 : f32 to vector<8x128xf32>
    %364 = arith.mulf %363, %362 : vector<8x128xf32>
    %cst_152 = arith.constant 5.000000e-01 : f32
    %365 = vector.broadcast %cst_152 : f32 to vector<8x128xf32>
    %366 = arith.addf %364, %365 : vector<8x128xf32>
    %367 = arith.mulf %348, %316 : vector<8x128xf32>
    %368 = arith.mulf %336, %354 : vector<8x128xf32>
    %369 = arith.addf %367, %368 : vector<8x128xf32>
    %370 = math.tanh %369 : vector<8x128xf32>
    %371 = arith.mulf %366, %370 : vector<8x128xf32>
    %372 = arith.index_cast %c6_i32 : i32 to index
    %c0_153 = arith.constant 0 : index
    %c0_154 = arith.constant 0 : index
    %373 = vector.load %arg4[%372, %c0_153, %c0_154] : memref<8x8x128xf32, #tpu.memory_space<vmem>>, vector<1x8x128xf32>
    %374 = vector.shape_cast %373 : vector<1x8x128xf32> to vector<8x128xf32>
    %375 = vector.shape_cast %371 : vector<8x128xf32> to vector<1x8x128xf32>
    tpu.vector_store %arg4[%372, %c0_153, %c0_154], %375 {strides = array<i32>} : memref<8x8x128xf32, #tpu.memory_space<vmem>>, vector<1x8x128xf32>,
    %c7_i32 = arith.constant 7 : i32
    %c0_155 = arith.constant 0 : index
    %c0_156 = arith.constant 0 : index
    %376 = vector.load %arg3[%c0_155, %c0_156] : memref<128x512xf32, #tpu.memory_space<vmem>>, vector<128x512xf32>
    %cst_157 = arith.constant dense<0.000000e+00> : vector<8x512xf32>
    %377 = tpu.matmul %371, %376, %cst_157 {dimension_numbers = #tpu.dot_dimension_numbers<[1], [0], [0], [1], [0, 0, 1, 1], [], []>} : vector<8x128xf32>, vector<128x512xf32>, vector<8x512xf32> -> vector<8x512xf32>
    %378 = arith.index_cast %c7_i32 : i32 to index
    %c0_158 = arith.constant 0 : index
    %c0_159 = arith.constant 0 : index
    %379 = vector.load %arg2[%378, %c0_158, %c0_159] : memref<8x8x512xf32, #tpu.memory_space<vmem>>, vector<1x8x128xf32>
    %380 = vector.shape_cast %379 : vector<1x8x128xf32> to vector<8x128xf32>
    %381 = vector.extract_strided_slice %377 {offsets = [0, 0], sizes = [8, 128], strides = [1, 1]} : vector<8x512xf32> to vector<8x128xf32>
    %382 = arith.addf %380, %381 : vector<8x128xf32>
    %cst_160 = arith.constant 5.000000e-01 : f32
    %383 = vector.broadcast %cst_160 : f32 to vector<8x128xf32>
    %384 = arith.mulf %383, %382 : vector<8x128xf32>
    %385 = math.tanh %384 : vector<8x128xf32>
    %cst_161 = arith.constant 5.000000e-01 : f32
    %386 = vector.broadcast %cst_161 : f32 to vector<8x128xf32>
    %387 = arith.mulf %386, %385 : vector<8x128xf32>
    %cst_162 = arith.constant 5.000000e-01 : f32
    %388 = vector.broadcast %cst_162 : f32 to vector<8x128xf32>
    %389 = arith.addf %387, %388 : vector<8x128xf32>
    %390 = arith.index_cast %c7_i32 : i32 to index
    %c0_163 = arith.constant 0 : index
    %c128_164 = arith.constant 128 : index
    %391 = vector.load %arg2[%390, %c0_163, %c128_164] : memref<8x8x512xf32, #tpu.memory_space<vmem>>, vector<1x8x128xf32>
    %392 = vector.shape_cast %391 : vector<1x8x128xf32> to vector<8x128xf32>
    %393 = vector.extract_strided_slice %377 {offsets = [0, 128], sizes = [8, 128], strides = [1, 1]} : vector<8x512xf32> to vector<8x128xf32>
    %394 = arith.addf %392, %393 : vector<8x128xf32>
    %cst_165 = arith.constant 5.000000e-01 : f32
    %395 = vector.broadcast %cst_165 : f32 to vector<8x128xf32>
    %396 = arith.mulf %395, %394 : vector<8x128xf32>
    %397 = math.tanh %396 : vector<8x128xf32>
    %cst_166 = arith.constant 5.000000e-01 : f32
    %398 = vector.broadcast %cst_166 : f32 to vector<8x128xf32>
    %399 = arith.mulf %398, %397 : vector<8x128xf32>
    %cst_167 = arith.constant 5.000000e-01 : f32
    %400 = vector.broadcast %cst_167 : f32 to vector<8x128xf32>
    %401 = arith.addf %399, %400 : vector<8x128xf32>
    %402 = arith.index_cast %c7_i32 : i32 to index
    %c0_168 = arith.constant 0 : index
    %c256_169 = arith.constant 256 : index
    %403 = vector.load %arg2[%402, %c0_168, %c256_169] : memref<8x8x512xf32, #tpu.memory_space<vmem>>, vector<1x8x128xf32>
    %404 = vector.shape_cast %403 : vector<1x8x128xf32> to vector<8x128xf32>
    %405 = vector.extract_strided_slice %377 {offsets = [0, 256], sizes = [8, 128], strides = [1, 1]} : vector<8x512xf32> to vector<8x128xf32>
    %406 = arith.addf %404, %405 : vector<8x128xf32>
    %407 = math.tanh %406 : vector<8x128xf32>
    %408 = arith.index_cast %c7_i32 : i32 to index
    %c0_170 = arith.constant 0 : index
    %c384_171 = arith.constant 384 : index
    %409 = vector.load %arg2[%408, %c0_170, %c384_171] : memref<8x8x512xf32, #tpu.memory_space<vmem>>, vector<1x8x128xf32>
    %410 = vector.shape_cast %409 : vector<1x8x128xf32> to vector<8x128xf32>
    %411 = vector.extract_strided_slice %377 {offsets = [0, 384], sizes = [8, 128], strides = [1, 1]} : vector<8x512xf32> to vector<8x128xf32>
    %412 = arith.addf %410, %411 : vector<8x128xf32>
    %cst_172 = arith.constant 5.000000e-01 : f32
    %413 = vector.broadcast %cst_172 : f32 to vector<8x128xf32>
    %414 = arith.mulf %413, %412 : vector<8x128xf32>
    %415 = math.tanh %414 : vector<8x128xf32>
    %cst_173 = arith.constant 5.000000e-01 : f32
    %416 = vector.broadcast %cst_173 : f32 to vector<8x128xf32>
    %417 = arith.mulf %416, %415 : vector<8x128xf32>
    %cst_174 = arith.constant 5.000000e-01 : f32
    %418 = vector.broadcast %cst_174 : f32 to vector<8x128xf32>
    %419 = arith.addf %417, %418 : vector<8x128xf32>
    %420 = arith.mulf %401, %369 : vector<8x128xf32>
    %421 = arith.mulf %389, %407 : vector<8x128xf32>
    %422 = arith.addf %420, %421 : vector<8x128xf32>
    %423 = math.tanh %422 : vector<8x128xf32>
    %424 = arith.mulf %419, %423 : vector<8x128xf32>
    %425 = arith.index_cast %c7_i32 : i32 to index
    %c0_175 = arith.constant 0 : index
    %c0_176 = arith.constant 0 : index
    %426 = vector.load %arg4[%425, %c0_175, %c0_176] : memref<8x8x128xf32, #tpu.memory_space<vmem>>, vector<1x8x128xf32>
    %427 = vector.shape_cast %426 : vector<1x8x128xf32> to vector<8x128xf32>
    %428 = vector.shape_cast %424 : vector<8x128xf32> to vector<1x8x128xf32>
    tpu.vector_store %arg4[%425, %c0_175, %c0_176], %428 {strides = array<i32>} : memref<8x8x128xf32, #tpu.memory_space<vmem>>, vector<1x8x128xf32>,
    %c8_i32 = arith.constant 8 : i32
    %c0_177 = arith.constant 0 : index
    %c0_178 = arith.constant 0 : index
    %429 = vector.load %arg5[%c0_177, %c0_178] : memref<8x128xf32, #tpu.memory_space<vmem>>, vector<8x128xf32>
    tpu.vector_store %arg5[%c0_177, %c0_178], %424 {strides = array<i32>} : memref<8x128xf32, #tpu.memory_space<vmem>>, vector<8x128xf32>,
    %c0_179 = arith.constant 0 : index
    %c0_180 = arith.constant 0 : index
    %430 = vector.load %arg6[%c0_179, %c0_180] : memref<8x128xf32, #tpu.memory_space<vmem>>, vector<8x128xf32>
    tpu.vector_store %arg6[%c0_179, %c0_180], %422 {strides = array<i32>} : memref<8x128xf32, #tpu.memory_space<vmem>>, vector<8x128xf32>,
    return
  }
  func.func @transform_0(%arg0: i32, %arg1: i32) -> (i32, i32, i32) {
    %c0_i32 = arith.constant 0 : i32
    %c0_i32_0 = arith.constant 0 : i32
    return %arg1, %arg0, %c0_i32 : i32, i32, i32
  }
  func.func @transform_1(%arg0: i32, %arg1: i32) -> (i32, i32) {
    %c0_i32 = arith.constant 0 : i32
    %c0_i32_0 = arith.constant 0 : i32
    %c0_i32_1 = arith.constant 0 : i32
    return %c0_i32, %c0_i32_0 : i32, i32
  }
  func.func @transform_2(%arg0: i32, %arg1: i32) -> (i32, i32, i32) {
    %c0_i32 = arith.constant 0 : i32
    %c0_i32_0 = arith.constant 0 : i32
    return %arg1, %arg0, %c0_i32 : i32, i32, i32
  }
}

module attributes {stable_mosaic.version = 11 : i64} {
  func.func @_lstm_recurrence_kernel(%arg0: i32, %arg1: i32, %arg2: memref<8x8x512xf32, #tpu.memory_space<vmem>>, %arg3: memref<128x512xf32, #tpu.memory_space<vmem>>, %arg4: memref<8x8x128xf32, #tpu.memory_space<vmem>>, %arg5: memref<8x128xf32, #tpu.memory_space<vmem>>, %arg6: memref<8x128xf32, #tpu.memory_space<vmem>>) attributes {dimension_semantics = [#tpu.dimension_semantics<parallel>, #tpu.dimension_semantics<arbitrary>], iteration_bounds = array<i64: 1, 1>, scalar_prefetch = 0 : i64, scratch_operands = 2 : i64, tpu.core_type = #tpu.core_type<tc>, window_params = [{transform_indices = @transform_0, window_bounds = array<i64: 8, 8, 512>}, {pipeline_mode = #tpu.pipeline_mode<synchronous>, transform_indices = @transform_1, window_bounds = array<i64: 128, 512>}, {transform_indices = @transform_2, window_bounds = array<i64: 8, 8, 128>}]} {
    %c0_i32 = arith.constant 0 : i32
    %0 = arith.cmpi eq, %arg1, %c0_i32 : i32
    %1 = arith.extui %0 : i1 to i32
    %c0_i32_0 = arith.constant 0 : i32
    %2 = arith.cmpi ne, %1, %c0_i32_0 : i32
    scf.if %2 {
      %cst_189 = arith.constant 0.000000e+00 : f32
      %447 = vector.broadcast %cst_189 : f32 to vector<8x128xf32>
      %c0_190 = arith.constant 0 : index
      %c0_191 = arith.constant 0 : index
      %448 = vector.load %arg5[%c0_190, %c0_191] : memref<8x128xf32, #tpu.memory_space<vmem>>, vector<8x128xf32>
      tpu.vector_store %arg5[%c0_190, %c0_191], %447 {strides = array<i32>} : memref<8x128xf32, #tpu.memory_space<vmem>>, vector<8x128xf32>,
      %cst_192 = arith.constant 0.000000e+00 : f32
      %449 = vector.broadcast %cst_192 : f32 to vector<8x128xf32>
      %c0_193 = arith.constant 0 : index
      %c0_194 = arith.constant 0 : index
      %450 = vector.load %arg6[%c0_193, %c0_194] : memref<8x128xf32, #tpu.memory_space<vmem>>, vector<8x128xf32>
      tpu.vector_store %arg6[%c0_193, %c0_194], %449 {strides = array<i32>} : memref<8x128xf32, #tpu.memory_space<vmem>>, vector<8x128xf32>,
    } else {
    }
    %c0 = arith.constant 0 : index
    %c0_1 = arith.constant 0 : index
    %3 = vector.load %arg5[%c0, %c0_1] : memref<8x128xf32, #tpu.memory_space<vmem>>, vector<8x128xf32>
    %c0_2 = arith.constant 0 : index
    %c0_3 = arith.constant 0 : index
    %4 = vector.load %arg6[%c0_2, %c0_3] : memref<8x128xf32, #tpu.memory_space<vmem>>, vector<8x128xf32>
    %c0_i32_4 = arith.constant 0 : i32
    %c0_5 = arith.constant 0 : index
    %c0_6 = arith.constant 0 : index
    %5 = vector.load %arg3[%c0_5, %c0_6] : memref<128x512xf32, #tpu.memory_space<vmem>>, vector<128x512xf32>
    %cst = arith.constant dense<0.000000e+00> : vector<8x512xf32>
    %6 = tpu.matmul %3, %5, %cst {dimension_numbers = #tpu.dot_dimension_numbers<[1], [0], [0], [1], [0, 0, 1, 1], [], []>} : vector<8x128xf32>, vector<128x512xf32>, vector<8x512xf32> -> vector<8x512xf32>
    %7 = arith.index_cast %c0_i32_4 : i32 to index
    %c0_7 = arith.constant 0 : index
    %c0_8 = arith.constant 0 : index
    %8 = vector.load %arg2[%7, %c0_7, %c0_8] : memref<8x8x512xf32, #tpu.memory_space<vmem>>, vector<1x8x128xf32>
    %9 = vector.shape_cast %8 : vector<1x8x128xf32> to vector<8x128xf32>
    %10 = vector.extract_strided_slice %6 {offsets = [0, 0], sizes = [8, 128], strides = [1, 1]} : vector<8x512xf32> to vector<8x128xf32>
    %11 = arith.addf %9, %10 : vector<8x128xf32>
    %cst_9 = arith.constant 5.000000e-01 : f32
    %12 = vector.broadcast %cst_9 : f32 to vector<8x128xf32>
    %13 = arith.mulf %12, %11 : vector<8x128xf32>
    %14 = math.tanh %13 : vector<8x128xf32>
    %cst_10 = arith.constant 5.000000e-01 : f32
    %15 = vector.broadcast %cst_10 : f32 to vector<8x128xf32>
    %16 = arith.mulf %15, %14 : vector<8x128xf32>
    %cst_11 = arith.constant 5.000000e-01 : f32
    %17 = vector.broadcast %cst_11 : f32 to vector<8x128xf32>
    %18 = arith.addf %16, %17 : vector<8x128xf32>
    %19 = arith.index_cast %c0_i32_4 : i32 to index
    %c0_12 = arith.constant 0 : index
    %c128 = arith.constant 128 : index
    %20 = vector.load %arg2[%19, %c0_12, %c128] : memref<8x8x512xf32, #tpu.memory_space<vmem>>, vector<1x8x128xf32>
    %21 = vector.shape_cast %20 : vector<1x8x128xf32> to vector<8x128xf32>
    %22 = vector.extract_strided_slice %6 {offsets = [0, 128], sizes = [8, 128], strides = [1, 1]} : vector<8x512xf32> to vector<8x128xf32>
    %23 = arith.addf %21, %22 : vector<8x128xf32>
    %cst_13 = arith.constant 5.000000e-01 : f32
    %24 = vector.broadcast %cst_13 : f32 to vector<8x128xf32>
    %25 = arith.mulf %24, %23 : vector<8x128xf32>
    %26 = math.tanh %25 : vector<8x128xf32>
    %cst_14 = arith.constant 5.000000e-01 : f32
    %27 = vector.broadcast %cst_14 : f32 to vector<8x128xf32>
    %28 = arith.mulf %27, %26 : vector<8x128xf32>
    %cst_15 = arith.constant 5.000000e-01 : f32
    %29 = vector.broadcast %cst_15 : f32 to vector<8x128xf32>
    %30 = arith.addf %28, %29 : vector<8x128xf32>
    %31 = arith.index_cast %c0_i32_4 : i32 to index
    %c0_16 = arith.constant 0 : index
    %c256 = arith.constant 256 : index
    %32 = vector.load %arg2[%31, %c0_16, %c256] : memref<8x8x512xf32, #tpu.memory_space<vmem>>, vector<1x8x128xf32>
    %33 = vector.shape_cast %32 : vector<1x8x128xf32> to vector<8x128xf32>
    %34 = vector.extract_strided_slice %6 {offsets = [0, 256], sizes = [8, 128], strides = [1, 1]} : vector<8x512xf32> to vector<8x128xf32>
    %35 = arith.addf %33, %34 : vector<8x128xf32>
    %36 = math.tanh %35 : vector<8x128xf32>
    %37 = arith.index_cast %c0_i32_4 : i32 to index
    %c0_17 = arith.constant 0 : index
    %c384 = arith.constant 384 : index
    %38 = vector.load %arg2[%37, %c0_17, %c384] : memref<8x8x512xf32, #tpu.memory_space<vmem>>, vector<1x8x128xf32>
    %39 = vector.shape_cast %38 : vector<1x8x128xf32> to vector<8x128xf32>
    %40 = vector.extract_strided_slice %6 {offsets = [0, 384], sizes = [8, 128], strides = [1, 1]} : vector<8x512xf32> to vector<8x128xf32>
    %41 = arith.addf %39, %40 : vector<8x128xf32>
    %cst_18 = arith.constant 5.000000e-01 : f32
    %42 = vector.broadcast %cst_18 : f32 to vector<8x128xf32>
    %43 = arith.mulf %42, %41 : vector<8x128xf32>
    %44 = math.tanh %43 : vector<8x128xf32>
    %cst_19 = arith.constant 5.000000e-01 : f32
    %45 = vector.broadcast %cst_19 : f32 to vector<8x128xf32>
    %46 = arith.mulf %45, %44 : vector<8x128xf32>
    %cst_20 = arith.constant 5.000000e-01 : f32
    %47 = vector.broadcast %cst_20 : f32 to vector<8x128xf32>
    %48 = arith.addf %46, %47 : vector<8x128xf32>
    %49 = arith.mulf %30, %4 : vector<8x128xf32>
    %50 = arith.mulf %18, %36 : vector<8x128xf32>
    %51 = arith.addf %49, %50 : vector<8x128xf32>
    %52 = math.tanh %51 : vector<8x128xf32>
    %53 = arith.mulf %48, %52 : vector<8x128xf32>
    %cst_21 = arith.constant 0.000000e+00 : f32
    %54 = vector.broadcast %cst_21 : f32 to vector<8x128xf32>
    %55 = arith.maximumf %53, %54 : vector<8x128xf32>
    %56 = arith.index_cast %c0_i32_4 : i32 to index
    %c0_22 = arith.constant 0 : index
    %c0_23 = arith.constant 0 : index
    %57 = vector.load %arg4[%56, %c0_22, %c0_23] : memref<8x8x128xf32, #tpu.memory_space<vmem>>, vector<1x8x128xf32>
    %58 = vector.shape_cast %57 : vector<1x8x128xf32> to vector<8x128xf32>
    %59 = vector.shape_cast %55 : vector<8x128xf32> to vector<1x8x128xf32>
    tpu.vector_store %arg4[%56, %c0_22, %c0_23], %59 {strides = array<i32>} : memref<8x8x128xf32, #tpu.memory_space<vmem>>, vector<1x8x128xf32>,
    %c1_i32 = arith.constant 1 : i32
    %c0_24 = arith.constant 0 : index
    %c0_25 = arith.constant 0 : index
    %60 = vector.load %arg3[%c0_24, %c0_25] : memref<128x512xf32, #tpu.memory_space<vmem>>, vector<128x512xf32>
    %cst_26 = arith.constant dense<0.000000e+00> : vector<8x512xf32>
    %61 = tpu.matmul %53, %60, %cst_26 {dimension_numbers = #tpu.dot_dimension_numbers<[1], [0], [0], [1], [0, 0, 1, 1], [], []>} : vector<8x128xf32>, vector<128x512xf32>, vector<8x512xf32> -> vector<8x512xf32>
    %62 = arith.index_cast %c1_i32 : i32 to index
    %c0_27 = arith.constant 0 : index
    %c0_28 = arith.constant 0 : index
    %63 = vector.load %arg2[%62, %c0_27, %c0_28] : memref<8x8x512xf32, #tpu.memory_space<vmem>>, vector<1x8x128xf32>
    %64 = vector.shape_cast %63 : vector<1x8x128xf32> to vector<8x128xf32>
    %65 = vector.extract_strided_slice %61 {offsets = [0, 0], sizes = [8, 128], strides = [1, 1]} : vector<8x512xf32> to vector<8x128xf32>
    %66 = arith.addf %64, %65 : vector<8x128xf32>
    %cst_29 = arith.constant 5.000000e-01 : f32
    %67 = vector.broadcast %cst_29 : f32 to vector<8x128xf32>
    %68 = arith.mulf %67, %66 : vector<8x128xf32>
    %69 = math.tanh %68 : vector<8x128xf32>
    %cst_30 = arith.constant 5.000000e-01 : f32
    %70 = vector.broadcast %cst_30 : f32 to vector<8x128xf32>
    %71 = arith.mulf %70, %69 : vector<8x128xf32>
    %cst_31 = arith.constant 5.000000e-01 : f32
    %72 = vector.broadcast %cst_31 : f32 to vector<8x128xf32>
    %73 = arith.addf %71, %72 : vector<8x128xf32>
    %74 = arith.index_cast %c1_i32 : i32 to index
    %c0_32 = arith.constant 0 : index
    %c128_33 = arith.constant 128 : index
    %75 = vector.load %arg2[%74, %c0_32, %c128_33] : memref<8x8x512xf32, #tpu.memory_space<vmem>>, vector<1x8x128xf32>
    %76 = vector.shape_cast %75 : vector<1x8x128xf32> to vector<8x128xf32>
    %77 = vector.extract_strided_slice %61 {offsets = [0, 128], sizes = [8, 128], strides = [1, 1]} : vector<8x512xf32> to vector<8x128xf32>
    %78 = arith.addf %76, %77 : vector<8x128xf32>
    %cst_34 = arith.constant 5.000000e-01 : f32
    %79 = vector.broadcast %cst_34 : f32 to vector<8x128xf32>
    %80 = arith.mulf %79, %78 : vector<8x128xf32>
    %81 = math.tanh %80 : vector<8x128xf32>
    %cst_35 = arith.constant 5.000000e-01 : f32
    %82 = vector.broadcast %cst_35 : f32 to vector<8x128xf32>
    %83 = arith.mulf %82, %81 : vector<8x128xf32>
    %cst_36 = arith.constant 5.000000e-01 : f32
    %84 = vector.broadcast %cst_36 : f32 to vector<8x128xf32>
    %85 = arith.addf %83, %84 : vector<8x128xf32>
    %86 = arith.index_cast %c1_i32 : i32 to index
    %c0_37 = arith.constant 0 : index
    %c256_38 = arith.constant 256 : index
    %87 = vector.load %arg2[%86, %c0_37, %c256_38] : memref<8x8x512xf32, #tpu.memory_space<vmem>>, vector<1x8x128xf32>
    %88 = vector.shape_cast %87 : vector<1x8x128xf32> to vector<8x128xf32>
    %89 = vector.extract_strided_slice %61 {offsets = [0, 256], sizes = [8, 128], strides = [1, 1]} : vector<8x512xf32> to vector<8x128xf32>
    %90 = arith.addf %88, %89 : vector<8x128xf32>
    %91 = math.tanh %90 : vector<8x128xf32>
    %92 = arith.index_cast %c1_i32 : i32 to index
    %c0_39 = arith.constant 0 : index
    %c384_40 = arith.constant 384 : index
    %93 = vector.load %arg2[%92, %c0_39, %c384_40] : memref<8x8x512xf32, #tpu.memory_space<vmem>>, vector<1x8x128xf32>
    %94 = vector.shape_cast %93 : vector<1x8x128xf32> to vector<8x128xf32>
    %95 = vector.extract_strided_slice %61 {offsets = [0, 384], sizes = [8, 128], strides = [1, 1]} : vector<8x512xf32> to vector<8x128xf32>
    %96 = arith.addf %94, %95 : vector<8x128xf32>
    %cst_41 = arith.constant 5.000000e-01 : f32
    %97 = vector.broadcast %cst_41 : f32 to vector<8x128xf32>
    %98 = arith.mulf %97, %96 : vector<8x128xf32>
    %99 = math.tanh %98 : vector<8x128xf32>
    %cst_42 = arith.constant 5.000000e-01 : f32
    %100 = vector.broadcast %cst_42 : f32 to vector<8x128xf32>
    %101 = arith.mulf %100, %99 : vector<8x128xf32>
    %cst_43 = arith.constant 5.000000e-01 : f32
    %102 = vector.broadcast %cst_43 : f32 to vector<8x128xf32>
    %103 = arith.addf %101, %102 : vector<8x128xf32>
    %104 = arith.mulf %85, %51 : vector<8x128xf32>
    %105 = arith.mulf %73, %91 : vector<8x128xf32>
    %106 = arith.addf %104, %105 : vector<8x128xf32>
    %107 = math.tanh %106 : vector<8x128xf32>
    %108 = arith.mulf %103, %107 : vector<8x128xf32>
    %cst_44 = arith.constant 0.000000e+00 : f32
    %109 = vector.broadcast %cst_44 : f32 to vector<8x128xf32>
    %110 = arith.maximumf %108, %109 : vector<8x128xf32>
    %111 = arith.index_cast %c1_i32 : i32 to index
    %c0_45 = arith.constant 0 : index
    %c0_46 = arith.constant 0 : index
    %112 = vector.load %arg4[%111, %c0_45, %c0_46] : memref<8x8x128xf32, #tpu.memory_space<vmem>>, vector<1x8x128xf32>
    %113 = vector.shape_cast %112 : vector<1x8x128xf32> to vector<8x128xf32>
    %114 = vector.shape_cast %110 : vector<8x128xf32> to vector<1x8x128xf32>
    tpu.vector_store %arg4[%111, %c0_45, %c0_46], %114 {strides = array<i32>} : memref<8x8x128xf32, #tpu.memory_space<vmem>>, vector<1x8x128xf32>,
    %c2_i32 = arith.constant 2 : i32
    %c0_47 = arith.constant 0 : index
    %c0_48 = arith.constant 0 : index
    %115 = vector.load %arg3[%c0_47, %c0_48] : memref<128x512xf32, #tpu.memory_space<vmem>>, vector<128x512xf32>
    %cst_49 = arith.constant dense<0.000000e+00> : vector<8x512xf32>
    %116 = tpu.matmul %108, %115, %cst_49 {dimension_numbers = #tpu.dot_dimension_numbers<[1], [0], [0], [1], [0, 0, 1, 1], [], []>} : vector<8x128xf32>, vector<128x512xf32>, vector<8x512xf32> -> vector<8x512xf32>
    %117 = arith.index_cast %c2_i32 : i32 to index
    %c0_50 = arith.constant 0 : index
    %c0_51 = arith.constant 0 : index
    %118 = vector.load %arg2[%117, %c0_50, %c0_51] : memref<8x8x512xf32, #tpu.memory_space<vmem>>, vector<1x8x128xf32>
    %119 = vector.shape_cast %118 : vector<1x8x128xf32> to vector<8x128xf32>
    %120 = vector.extract_strided_slice %116 {offsets = [0, 0], sizes = [8, 128], strides = [1, 1]} : vector<8x512xf32> to vector<8x128xf32>
    %121 = arith.addf %119, %120 : vector<8x128xf32>
    %cst_52 = arith.constant 5.000000e-01 : f32
    %122 = vector.broadcast %cst_52 : f32 to vector<8x128xf32>
    %123 = arith.mulf %122, %121 : vector<8x128xf32>
    %124 = math.tanh %123 : vector<8x128xf32>
    %cst_53 = arith.constant 5.000000e-01 : f32
    %125 = vector.broadcast %cst_53 : f32 to vector<8x128xf32>
    %126 = arith.mulf %125, %124 : vector<8x128xf32>
    %cst_54 = arith.constant 5.000000e-01 : f32
    %127 = vector.broadcast %cst_54 : f32 to vector<8x128xf32>
    %128 = arith.addf %126, %127 : vector<8x128xf32>
    %129 = arith.index_cast %c2_i32 : i32 to index
    %c0_55 = arith.constant 0 : index
    %c128_56 = arith.constant 128 : index
    %130 = vector.load %arg2[%129, %c0_55, %c128_56] : memref<8x8x512xf32, #tpu.memory_space<vmem>>, vector<1x8x128xf32>
    %131 = vector.shape_cast %130 : vector<1x8x128xf32> to vector<8x128xf32>
    %132 = vector.extract_strided_slice %116 {offsets = [0, 128], sizes = [8, 128], strides = [1, 1]} : vector<8x512xf32> to vector<8x128xf32>
    %133 = arith.addf %131, %132 : vector<8x128xf32>
    %cst_57 = arith.constant 5.000000e-01 : f32
    %134 = vector.broadcast %cst_57 : f32 to vector<8x128xf32>
    %135 = arith.mulf %134, %133 : vector<8x128xf32>
    %136 = math.tanh %135 : vector<8x128xf32>
    %cst_58 = arith.constant 5.000000e-01 : f32
    %137 = vector.broadcast %cst_58 : f32 to vector<8x128xf32>
    %138 = arith.mulf %137, %136 : vector<8x128xf32>
    %cst_59 = arith.constant 5.000000e-01 : f32
    %139 = vector.broadcast %cst_59 : f32 to vector<8x128xf32>
    %140 = arith.addf %138, %139 : vector<8x128xf32>
    %141 = arith.index_cast %c2_i32 : i32 to index
    %c0_60 = arith.constant 0 : index
    %c256_61 = arith.constant 256 : index
    %142 = vector.load %arg2[%141, %c0_60, %c256_61] : memref<8x8x512xf32, #tpu.memory_space<vmem>>, vector<1x8x128xf32>
    %143 = vector.shape_cast %142 : vector<1x8x128xf32> to vector<8x128xf32>
    %144 = vector.extract_strided_slice %116 {offsets = [0, 256], sizes = [8, 128], strides = [1, 1]} : vector<8x512xf32> to vector<8x128xf32>
    %145 = arith.addf %143, %144 : vector<8x128xf32>
    %146 = math.tanh %145 : vector<8x128xf32>
    %147 = arith.index_cast %c2_i32 : i32 to index
    %c0_62 = arith.constant 0 : index
    %c384_63 = arith.constant 384 : index
    %148 = vector.load %arg2[%147, %c0_62, %c384_63] : memref<8x8x512xf32, #tpu.memory_space<vmem>>, vector<1x8x128xf32>
    %149 = vector.shape_cast %148 : vector<1x8x128xf32> to vector<8x128xf32>
    %150 = vector.extract_strided_slice %116 {offsets = [0, 384], sizes = [8, 128], strides = [1, 1]} : vector<8x512xf32> to vector<8x128xf32>
    %151 = arith.addf %149, %150 : vector<8x128xf32>
    %cst_64 = arith.constant 5.000000e-01 : f32
    %152 = vector.broadcast %cst_64 : f32 to vector<8x128xf32>
    %153 = arith.mulf %152, %151 : vector<8x128xf32>
    %154 = math.tanh %153 : vector<8x128xf32>
    %cst_65 = arith.constant 5.000000e-01 : f32
    %155 = vector.broadcast %cst_65 : f32 to vector<8x128xf32>
    %156 = arith.mulf %155, %154 : vector<8x128xf32>
    %cst_66 = arith.constant 5.000000e-01 : f32
    %157 = vector.broadcast %cst_66 : f32 to vector<8x128xf32>
    %158 = arith.addf %156, %157 : vector<8x128xf32>
    %159 = arith.mulf %140, %106 : vector<8x128xf32>
    %160 = arith.mulf %128, %146 : vector<8x128xf32>
    %161 = arith.addf %159, %160 : vector<8x128xf32>
    %162 = math.tanh %161 : vector<8x128xf32>
    %163 = arith.mulf %158, %162 : vector<8x128xf32>
    %cst_67 = arith.constant 0.000000e+00 : f32
    %164 = vector.broadcast %cst_67 : f32 to vector<8x128xf32>
    %165 = arith.maximumf %163, %164 : vector<8x128xf32>
    %166 = arith.index_cast %c2_i32 : i32 to index
    %c0_68 = arith.constant 0 : index
    %c0_69 = arith.constant 0 : index
    %167 = vector.load %arg4[%166, %c0_68, %c0_69] : memref<8x8x128xf32, #tpu.memory_space<vmem>>, vector<1x8x128xf32>
    %168 = vector.shape_cast %167 : vector<1x8x128xf32> to vector<8x128xf32>
    %169 = vector.shape_cast %165 : vector<8x128xf32> to vector<1x8x128xf32>
    tpu.vector_store %arg4[%166, %c0_68, %c0_69], %169 {strides = array<i32>} : memref<8x8x128xf32, #tpu.memory_space<vmem>>, vector<1x8x128xf32>,
    %c3_i32 = arith.constant 3 : i32
    %c0_70 = arith.constant 0 : index
    %c0_71 = arith.constant 0 : index
    %170 = vector.load %arg3[%c0_70, %c0_71] : memref<128x512xf32, #tpu.memory_space<vmem>>, vector<128x512xf32>
    %cst_72 = arith.constant dense<0.000000e+00> : vector<8x512xf32>
    %171 = tpu.matmul %163, %170, %cst_72 {dimension_numbers = #tpu.dot_dimension_numbers<[1], [0], [0], [1], [0, 0, 1, 1], [], []>} : vector<8x128xf32>, vector<128x512xf32>, vector<8x512xf32> -> vector<8x512xf32>
    %172 = arith.index_cast %c3_i32 : i32 to index
    %c0_73 = arith.constant 0 : index
    %c0_74 = arith.constant 0 : index
    %173 = vector.load %arg2[%172, %c0_73, %c0_74] : memref<8x8x512xf32, #tpu.memory_space<vmem>>, vector<1x8x128xf32>
    %174 = vector.shape_cast %173 : vector<1x8x128xf32> to vector<8x128xf32>
    %175 = vector.extract_strided_slice %171 {offsets = [0, 0], sizes = [8, 128], strides = [1, 1]} : vector<8x512xf32> to vector<8x128xf32>
    %176 = arith.addf %174, %175 : vector<8x128xf32>
    %cst_75 = arith.constant 5.000000e-01 : f32
    %177 = vector.broadcast %cst_75 : f32 to vector<8x128xf32>
    %178 = arith.mulf %177, %176 : vector<8x128xf32>
    %179 = math.tanh %178 : vector<8x128xf32>
    %cst_76 = arith.constant 5.000000e-01 : f32
    %180 = vector.broadcast %cst_76 : f32 to vector<8x128xf32>
    %181 = arith.mulf %180, %179 : vector<8x128xf32>
    %cst_77 = arith.constant 5.000000e-01 : f32
    %182 = vector.broadcast %cst_77 : f32 to vector<8x128xf32>
    %183 = arith.addf %181, %182 : vector<8x128xf32>
    %184 = arith.index_cast %c3_i32 : i32 to index
    %c0_78 = arith.constant 0 : index
    %c128_79 = arith.constant 128 : index
    %185 = vector.load %arg2[%184, %c0_78, %c128_79] : memref<8x8x512xf32, #tpu.memory_space<vmem>>, vector<1x8x128xf32>
    %186 = vector.shape_cast %185 : vector<1x8x128xf32> to vector<8x128xf32>
    %187 = vector.extract_strided_slice %171 {offsets = [0, 128], sizes = [8, 128], strides = [1, 1]} : vector<8x512xf32> to vector<8x128xf32>
    %188 = arith.addf %186, %187 : vector<8x128xf32>
    %cst_80 = arith.constant 5.000000e-01 : f32
    %189 = vector.broadcast %cst_80 : f32 to vector<8x128xf32>
    %190 = arith.mulf %189, %188 : vector<8x128xf32>
    %191 = math.tanh %190 : vector<8x128xf32>
    %cst_81 = arith.constant 5.000000e-01 : f32
    %192 = vector.broadcast %cst_81 : f32 to vector<8x128xf32>
    %193 = arith.mulf %192, %191 : vector<8x128xf32>
    %cst_82 = arith.constant 5.000000e-01 : f32
    %194 = vector.broadcast %cst_82 : f32 to vector<8x128xf32>
    %195 = arith.addf %193, %194 : vector<8x128xf32>
    %196 = arith.index_cast %c3_i32 : i32 to index
    %c0_83 = arith.constant 0 : index
    %c256_84 = arith.constant 256 : index
    %197 = vector.load %arg2[%196, %c0_83, %c256_84] : memref<8x8x512xf32, #tpu.memory_space<vmem>>, vector<1x8x128xf32>
    %198 = vector.shape_cast %197 : vector<1x8x128xf32> to vector<8x128xf32>
    %199 = vector.extract_strided_slice %171 {offsets = [0, 256], sizes = [8, 128], strides = [1, 1]} : vector<8x512xf32> to vector<8x128xf32>
    %200 = arith.addf %198, %199 : vector<8x128xf32>
    %201 = math.tanh %200 : vector<8x128xf32>
    %202 = arith.index_cast %c3_i32 : i32 to index
    %c0_85 = arith.constant 0 : index
    %c384_86 = arith.constant 384 : index
    %203 = vector.load %arg2[%202, %c0_85, %c384_86] : memref<8x8x512xf32, #tpu.memory_space<vmem>>, vector<1x8x128xf32>
    %204 = vector.shape_cast %203 : vector<1x8x128xf32> to vector<8x128xf32>
    %205 = vector.extract_strided_slice %171 {offsets = [0, 384], sizes = [8, 128], strides = [1, 1]} : vector<8x512xf32> to vector<8x128xf32>
    %206 = arith.addf %204, %205 : vector<8x128xf32>
    %cst_87 = arith.constant 5.000000e-01 : f32
    %207 = vector.broadcast %cst_87 : f32 to vector<8x128xf32>
    %208 = arith.mulf %207, %206 : vector<8x128xf32>
    %209 = math.tanh %208 : vector<8x128xf32>
    %cst_88 = arith.constant 5.000000e-01 : f32
    %210 = vector.broadcast %cst_88 : f32 to vector<8x128xf32>
    %211 = arith.mulf %210, %209 : vector<8x128xf32>
    %cst_89 = arith.constant 5.000000e-01 : f32
    %212 = vector.broadcast %cst_89 : f32 to vector<8x128xf32>
    %213 = arith.addf %211, %212 : vector<8x128xf32>
    %214 = arith.mulf %195, %161 : vector<8x128xf32>
    %215 = arith.mulf %183, %201 : vector<8x128xf32>
    %216 = arith.addf %214, %215 : vector<8x128xf32>
    %217 = math.tanh %216 : vector<8x128xf32>
    %218 = arith.mulf %213, %217 : vector<8x128xf32>
    %cst_90 = arith.constant 0.000000e+00 : f32
    %219 = vector.broadcast %cst_90 : f32 to vector<8x128xf32>
    %220 = arith.maximumf %218, %219 : vector<8x128xf32>
    %221 = arith.index_cast %c3_i32 : i32 to index
    %c0_91 = arith.constant 0 : index
    %c0_92 = arith.constant 0 : index
    %222 = vector.load %arg4[%221, %c0_91, %c0_92] : memref<8x8x128xf32, #tpu.memory_space<vmem>>, vector<1x8x128xf32>
    %223 = vector.shape_cast %222 : vector<1x8x128xf32> to vector<8x128xf32>
    %224 = vector.shape_cast %220 : vector<8x128xf32> to vector<1x8x128xf32>
    tpu.vector_store %arg4[%221, %c0_91, %c0_92], %224 {strides = array<i32>} : memref<8x8x128xf32, #tpu.memory_space<vmem>>, vector<1x8x128xf32>,
    %c4_i32 = arith.constant 4 : i32
    %c0_93 = arith.constant 0 : index
    %c0_94 = arith.constant 0 : index
    %225 = vector.load %arg3[%c0_93, %c0_94] : memref<128x512xf32, #tpu.memory_space<vmem>>, vector<128x512xf32>
    %cst_95 = arith.constant dense<0.000000e+00> : vector<8x512xf32>
    %226 = tpu.matmul %218, %225, %cst_95 {dimension_numbers = #tpu.dot_dimension_numbers<[1], [0], [0], [1], [0, 0, 1, 1], [], []>} : vector<8x128xf32>, vector<128x512xf32>, vector<8x512xf32> -> vector<8x512xf32>
    %227 = arith.index_cast %c4_i32 : i32 to index
    %c0_96 = arith.constant 0 : index
    %c0_97 = arith.constant 0 : index
    %228 = vector.load %arg2[%227, %c0_96, %c0_97] : memref<8x8x512xf32, #tpu.memory_space<vmem>>, vector<1x8x128xf32>
    %229 = vector.shape_cast %228 : vector<1x8x128xf32> to vector<8x128xf32>
    %230 = vector.extract_strided_slice %226 {offsets = [0, 0], sizes = [8, 128], strides = [1, 1]} : vector<8x512xf32> to vector<8x128xf32>
    %231 = arith.addf %229, %230 : vector<8x128xf32>
    %cst_98 = arith.constant 5.000000e-01 : f32
    %232 = vector.broadcast %cst_98 : f32 to vector<8x128xf32>
    %233 = arith.mulf %232, %231 : vector<8x128xf32>
    %234 = math.tanh %233 : vector<8x128xf32>
    %cst_99 = arith.constant 5.000000e-01 : f32
    %235 = vector.broadcast %cst_99 : f32 to vector<8x128xf32>
    %236 = arith.mulf %235, %234 : vector<8x128xf32>
    %cst_100 = arith.constant 5.000000e-01 : f32
    %237 = vector.broadcast %cst_100 : f32 to vector<8x128xf32>
    %238 = arith.addf %236, %237 : vector<8x128xf32>
    %239 = arith.index_cast %c4_i32 : i32 to index
    %c0_101 = arith.constant 0 : index
    %c128_102 = arith.constant 128 : index
    %240 = vector.load %arg2[%239, %c0_101, %c128_102] : memref<8x8x512xf32, #tpu.memory_space<vmem>>, vector<1x8x128xf32>
    %241 = vector.shape_cast %240 : vector<1x8x128xf32> to vector<8x128xf32>
    %242 = vector.extract_strided_slice %226 {offsets = [0, 128], sizes = [8, 128], strides = [1, 1]} : vector<8x512xf32> to vector<8x128xf32>
    %243 = arith.addf %241, %242 : vector<8x128xf32>
    %cst_103 = arith.constant 5.000000e-01 : f32
    %244 = vector.broadcast %cst_103 : f32 to vector<8x128xf32>
    %245 = arith.mulf %244, %243 : vector<8x128xf32>
    %246 = math.tanh %245 : vector<8x128xf32>
    %cst_104 = arith.constant 5.000000e-01 : f32
    %247 = vector.broadcast %cst_104 : f32 to vector<8x128xf32>
    %248 = arith.mulf %247, %246 : vector<8x128xf32>
    %cst_105 = arith.constant 5.000000e-01 : f32
    %249 = vector.broadcast %cst_105 : f32 to vector<8x128xf32>
    %250 = arith.addf %248, %249 : vector<8x128xf32>
    %251 = arith.index_cast %c4_i32 : i32 to index
    %c0_106 = arith.constant 0 : index
    %c256_107 = arith.constant 256 : index
    %252 = vector.load %arg2[%251, %c0_106, %c256_107] : memref<8x8x512xf32, #tpu.memory_space<vmem>>, vector<1x8x128xf32>
    %253 = vector.shape_cast %252 : vector<1x8x128xf32> to vector<8x128xf32>
    %254 = vector.extract_strided_slice %226 {offsets = [0, 256], sizes = [8, 128], strides = [1, 1]} : vector<8x512xf32> to vector<8x128xf32>
    %255 = arith.addf %253, %254 : vector<8x128xf32>
    %256 = math.tanh %255 : vector<8x128xf32>
    %257 = arith.index_cast %c4_i32 : i32 to index
    %c0_108 = arith.constant 0 : index
    %c384_109 = arith.constant 384 : index
    %258 = vector.load %arg2[%257, %c0_108, %c384_109] : memref<8x8x512xf32, #tpu.memory_space<vmem>>, vector<1x8x128xf32>
    %259 = vector.shape_cast %258 : vector<1x8x128xf32> to vector<8x128xf32>
    %260 = vector.extract_strided_slice %226 {offsets = [0, 384], sizes = [8, 128], strides = [1, 1]} : vector<8x512xf32> to vector<8x128xf32>
    %261 = arith.addf %259, %260 : vector<8x128xf32>
    %cst_110 = arith.constant 5.000000e-01 : f32
    %262 = vector.broadcast %cst_110 : f32 to vector<8x128xf32>
    %263 = arith.mulf %262, %261 : vector<8x128xf32>
    %264 = math.tanh %263 : vector<8x128xf32>
    %cst_111 = arith.constant 5.000000e-01 : f32
    %265 = vector.broadcast %cst_111 : f32 to vector<8x128xf32>
    %266 = arith.mulf %265, %264 : vector<8x128xf32>
    %cst_112 = arith.constant 5.000000e-01 : f32
    %267 = vector.broadcast %cst_112 : f32 to vector<8x128xf32>
    %268 = arith.addf %266, %267 : vector<8x128xf32>
    %269 = arith.mulf %250, %216 : vector<8x128xf32>
    %270 = arith.mulf %238, %256 : vector<8x128xf32>
    %271 = arith.addf %269, %270 : vector<8x128xf32>
    %272 = math.tanh %271 : vector<8x128xf32>
    %273 = arith.mulf %268, %272 : vector<8x128xf32>
    %cst_113 = arith.constant 0.000000e+00 : f32
    %274 = vector.broadcast %cst_113 : f32 to vector<8x128xf32>
    %275 = arith.maximumf %273, %274 : vector<8x128xf32>
    %276 = arith.index_cast %c4_i32 : i32 to index
    %c0_114 = arith.constant 0 : index
    %c0_115 = arith.constant 0 : index
    %277 = vector.load %arg4[%276, %c0_114, %c0_115] : memref<8x8x128xf32, #tpu.memory_space<vmem>>, vector<1x8x128xf32>
    %278 = vector.shape_cast %277 : vector<1x8x128xf32> to vector<8x128xf32>
    %279 = vector.shape_cast %275 : vector<8x128xf32> to vector<1x8x128xf32>
    tpu.vector_store %arg4[%276, %c0_114, %c0_115], %279 {strides = array<i32>} : memref<8x8x128xf32, #tpu.memory_space<vmem>>, vector<1x8x128xf32>,
    %c5_i32 = arith.constant 5 : i32
    %c0_116 = arith.constant 0 : index
    %c0_117 = arith.constant 0 : index
    %280 = vector.load %arg3[%c0_116, %c0_117] : memref<128x512xf32, #tpu.memory_space<vmem>>, vector<128x512xf32>
    %cst_118 = arith.constant dense<0.000000e+00> : vector<8x512xf32>
    %281 = tpu.matmul %273, %280, %cst_118 {dimension_numbers = #tpu.dot_dimension_numbers<[1], [0], [0], [1], [0, 0, 1, 1], [], []>} : vector<8x128xf32>, vector<128x512xf32>, vector<8x512xf32> -> vector<8x512xf32>
    %282 = arith.index_cast %c5_i32 : i32 to index
    %c0_119 = arith.constant 0 : index
    %c0_120 = arith.constant 0 : index
    %283 = vector.load %arg2[%282, %c0_119, %c0_120] : memref<8x8x512xf32, #tpu.memory_space<vmem>>, vector<1x8x128xf32>
    %284 = vector.shape_cast %283 : vector<1x8x128xf32> to vector<8x128xf32>
    %285 = vector.extract_strided_slice %281 {offsets = [0, 0], sizes = [8, 128], strides = [1, 1]} : vector<8x512xf32> to vector<8x128xf32>
    %286 = arith.addf %284, %285 : vector<8x128xf32>
    %cst_121 = arith.constant 5.000000e-01 : f32
    %287 = vector.broadcast %cst_121 : f32 to vector<8x128xf32>
    %288 = arith.mulf %287, %286 : vector<8x128xf32>
    %289 = math.tanh %288 : vector<8x128xf32>
    %cst_122 = arith.constant 5.000000e-01 : f32
    %290 = vector.broadcast %cst_122 : f32 to vector<8x128xf32>
    %291 = arith.mulf %290, %289 : vector<8x128xf32>
    %cst_123 = arith.constant 5.000000e-01 : f32
    %292 = vector.broadcast %cst_123 : f32 to vector<8x128xf32>
    %293 = arith.addf %291, %292 : vector<8x128xf32>
    %294 = arith.index_cast %c5_i32 : i32 to index
    %c0_124 = arith.constant 0 : index
    %c128_125 = arith.constant 128 : index
    %295 = vector.load %arg2[%294, %c0_124, %c128_125] : memref<8x8x512xf32, #tpu.memory_space<vmem>>, vector<1x8x128xf32>
    %296 = vector.shape_cast %295 : vector<1x8x128xf32> to vector<8x128xf32>
    %297 = vector.extract_strided_slice %281 {offsets = [0, 128], sizes = [8, 128], strides = [1, 1]} : vector<8x512xf32> to vector<8x128xf32>
    %298 = arith.addf %296, %297 : vector<8x128xf32>
    %cst_126 = arith.constant 5.000000e-01 : f32
    %299 = vector.broadcast %cst_126 : f32 to vector<8x128xf32>
    %300 = arith.mulf %299, %298 : vector<8x128xf32>
    %301 = math.tanh %300 : vector<8x128xf32>
    %cst_127 = arith.constant 5.000000e-01 : f32
    %302 = vector.broadcast %cst_127 : f32 to vector<8x128xf32>
    %303 = arith.mulf %302, %301 : vector<8x128xf32>
    %cst_128 = arith.constant 5.000000e-01 : f32
    %304 = vector.broadcast %cst_128 : f32 to vector<8x128xf32>
    %305 = arith.addf %303, %304 : vector<8x128xf32>
    %306 = arith.index_cast %c5_i32 : i32 to index
    %c0_129 = arith.constant 0 : index
    %c256_130 = arith.constant 256 : index
    %307 = vector.load %arg2[%306, %c0_129, %c256_130] : memref<8x8x512xf32, #tpu.memory_space<vmem>>, vector<1x8x128xf32>
    %308 = vector.shape_cast %307 : vector<1x8x128xf32> to vector<8x128xf32>
    %309 = vector.extract_strided_slice %281 {offsets = [0, 256], sizes = [8, 128], strides = [1, 1]} : vector<8x512xf32> to vector<8x128xf32>
    %310 = arith.addf %308, %309 : vector<8x128xf32>
    %311 = math.tanh %310 : vector<8x128xf32>
    %312 = arith.index_cast %c5_i32 : i32 to index
    %c0_131 = arith.constant 0 : index
    %c384_132 = arith.constant 384 : index
    %313 = vector.load %arg2[%312, %c0_131, %c384_132] : memref<8x8x512xf32, #tpu.memory_space<vmem>>, vector<1x8x128xf32>
    %314 = vector.shape_cast %313 : vector<1x8x128xf32> to vector<8x128xf32>
    %315 = vector.extract_strided_slice %281 {offsets = [0, 384], sizes = [8, 128], strides = [1, 1]} : vector<8x512xf32> to vector<8x128xf32>
    %316 = arith.addf %314, %315 : vector<8x128xf32>
    %cst_133 = arith.constant 5.000000e-01 : f32
    %317 = vector.broadcast %cst_133 : f32 to vector<8x128xf32>
    %318 = arith.mulf %317, %316 : vector<8x128xf32>
    %319 = math.tanh %318 : vector<8x128xf32>
    %cst_134 = arith.constant 5.000000e-01 : f32
    %320 = vector.broadcast %cst_134 : f32 to vector<8x128xf32>
    %321 = arith.mulf %320, %319 : vector<8x128xf32>
    %cst_135 = arith.constant 5.000000e-01 : f32
    %322 = vector.broadcast %cst_135 : f32 to vector<8x128xf32>
    %323 = arith.addf %321, %322 : vector<8x128xf32>
    %324 = arith.mulf %305, %271 : vector<8x128xf32>
    %325 = arith.mulf %293, %311 : vector<8x128xf32>
    %326 = arith.addf %324, %325 : vector<8x128xf32>
    %327 = math.tanh %326 : vector<8x128xf32>
    %328 = arith.mulf %323, %327 : vector<8x128xf32>
    %cst_136 = arith.constant 0.000000e+00 : f32
    %329 = vector.broadcast %cst_136 : f32 to vector<8x128xf32>
    %330 = arith.maximumf %328, %329 : vector<8x128xf32>
    %331 = arith.index_cast %c5_i32 : i32 to index
    %c0_137 = arith.constant 0 : index
    %c0_138 = arith.constant 0 : index
    %332 = vector.load %arg4[%331, %c0_137, %c0_138] : memref<8x8x128xf32, #tpu.memory_space<vmem>>, vector<1x8x128xf32>
    %333 = vector.shape_cast %332 : vector<1x8x128xf32> to vector<8x128xf32>
    %334 = vector.shape_cast %330 : vector<8x128xf32> to vector<1x8x128xf32>
    tpu.vector_store %arg4[%331, %c0_137, %c0_138], %334 {strides = array<i32>} : memref<8x8x128xf32, #tpu.memory_space<vmem>>, vector<1x8x128xf32>,
    %c6_i32 = arith.constant 6 : i32
    %c0_139 = arith.constant 0 : index
    %c0_140 = arith.constant 0 : index
    %335 = vector.load %arg3[%c0_139, %c0_140] : memref<128x512xf32, #tpu.memory_space<vmem>>, vector<128x512xf32>
    %cst_141 = arith.constant dense<0.000000e+00> : vector<8x512xf32>
    %336 = tpu.matmul %328, %335, %cst_141 {dimension_numbers = #tpu.dot_dimension_numbers<[1], [0], [0], [1], [0, 0, 1, 1], [], []>} : vector<8x128xf32>, vector<128x512xf32>, vector<8x512xf32> -> vector<8x512xf32>
    %337 = arith.index_cast %c6_i32 : i32 to index
    %c0_142 = arith.constant 0 : index
    %c0_143 = arith.constant 0 : index
    %338 = vector.load %arg2[%337, %c0_142, %c0_143] : memref<8x8x512xf32, #tpu.memory_space<vmem>>, vector<1x8x128xf32>
    %339 = vector.shape_cast %338 : vector<1x8x128xf32> to vector<8x128xf32>
    %340 = vector.extract_strided_slice %336 {offsets = [0, 0], sizes = [8, 128], strides = [1, 1]} : vector<8x512xf32> to vector<8x128xf32>
    %341 = arith.addf %339, %340 : vector<8x128xf32>
    %cst_144 = arith.constant 5.000000e-01 : f32
    %342 = vector.broadcast %cst_144 : f32 to vector<8x128xf32>
    %343 = arith.mulf %342, %341 : vector<8x128xf32>
    %344 = math.tanh %343 : vector<8x128xf32>
    %cst_145 = arith.constant 5.000000e-01 : f32
    %345 = vector.broadcast %cst_145 : f32 to vector<8x128xf32>
    %346 = arith.mulf %345, %344 : vector<8x128xf32>
    %cst_146 = arith.constant 5.000000e-01 : f32
    %347 = vector.broadcast %cst_146 : f32 to vector<8x128xf32>
    %348 = arith.addf %346, %347 : vector<8x128xf32>
    %349 = arith.index_cast %c6_i32 : i32 to index
    %c0_147 = arith.constant 0 : index
    %c128_148 = arith.constant 128 : index
    %350 = vector.load %arg2[%349, %c0_147, %c128_148] : memref<8x8x512xf32, #tpu.memory_space<vmem>>, vector<1x8x128xf32>
    %351 = vector.shape_cast %350 : vector<1x8x128xf32> to vector<8x128xf32>
    %352 = vector.extract_strided_slice %336 {offsets = [0, 128], sizes = [8, 128], strides = [1, 1]} : vector<8x512xf32> to vector<8x128xf32>
    %353 = arith.addf %351, %352 : vector<8x128xf32>
    %cst_149 = arith.constant 5.000000e-01 : f32
    %354 = vector.broadcast %cst_149 : f32 to vector<8x128xf32>
    %355 = arith.mulf %354, %353 : vector<8x128xf32>
    %356 = math.tanh %355 : vector<8x128xf32>
    %cst_150 = arith.constant 5.000000e-01 : f32
    %357 = vector.broadcast %cst_150 : f32 to vector<8x128xf32>
    %358 = arith.mulf %357, %356 : vector<8x128xf32>
    %cst_151 = arith.constant 5.000000e-01 : f32
    %359 = vector.broadcast %cst_151 : f32 to vector<8x128xf32>
    %360 = arith.addf %358, %359 : vector<8x128xf32>
    %361 = arith.index_cast %c6_i32 : i32 to index
    %c0_152 = arith.constant 0 : index
    %c256_153 = arith.constant 256 : index
    %362 = vector.load %arg2[%361, %c0_152, %c256_153] : memref<8x8x512xf32, #tpu.memory_space<vmem>>, vector<1x8x128xf32>
    %363 = vector.shape_cast %362 : vector<1x8x128xf32> to vector<8x128xf32>
    %364 = vector.extract_strided_slice %336 {offsets = [0, 256], sizes = [8, 128], strides = [1, 1]} : vector<8x512xf32> to vector<8x128xf32>
    %365 = arith.addf %363, %364 : vector<8x128xf32>
    %366 = math.tanh %365 : vector<8x128xf32>
    %367 = arith.index_cast %c6_i32 : i32 to index
    %c0_154 = arith.constant 0 : index
    %c384_155 = arith.constant 384 : index
    %368 = vector.load %arg2[%367, %c0_154, %c384_155] : memref<8x8x512xf32, #tpu.memory_space<vmem>>, vector<1x8x128xf32>
    %369 = vector.shape_cast %368 : vector<1x8x128xf32> to vector<8x128xf32>
    %370 = vector.extract_strided_slice %336 {offsets = [0, 384], sizes = [8, 128], strides = [1, 1]} : vector<8x512xf32> to vector<8x128xf32>
    %371 = arith.addf %369, %370 : vector<8x128xf32>
    %cst_156 = arith.constant 5.000000e-01 : f32
    %372 = vector.broadcast %cst_156 : f32 to vector<8x128xf32>
    %373 = arith.mulf %372, %371 : vector<8x128xf32>
    %374 = math.tanh %373 : vector<8x128xf32>
    %cst_157 = arith.constant 5.000000e-01 : f32
    %375 = vector.broadcast %cst_157 : f32 to vector<8x128xf32>
    %376 = arith.mulf %375, %374 : vector<8x128xf32>
    %cst_158 = arith.constant 5.000000e-01 : f32
    %377 = vector.broadcast %cst_158 : f32 to vector<8x128xf32>
    %378 = arith.addf %376, %377 : vector<8x128xf32>
    %379 = arith.mulf %360, %326 : vector<8x128xf32>
    %380 = arith.mulf %348, %366 : vector<8x128xf32>
    %381 = arith.addf %379, %380 : vector<8x128xf32>
    %382 = math.tanh %381 : vector<8x128xf32>
    %383 = arith.mulf %378, %382 : vector<8x128xf32>
    %cst_159 = arith.constant 0.000000e+00 : f32
    %384 = vector.broadcast %cst_159 : f32 to vector<8x128xf32>
    %385 = arith.maximumf %383, %384 : vector<8x128xf32>
    %386 = arith.index_cast %c6_i32 : i32 to index
    %c0_160 = arith.constant 0 : index
    %c0_161 = arith.constant 0 : index
    %387 = vector.load %arg4[%386, %c0_160, %c0_161] : memref<8x8x128xf32, #tpu.memory_space<vmem>>, vector<1x8x128xf32>
    %388 = vector.shape_cast %387 : vector<1x8x128xf32> to vector<8x128xf32>
    %389 = vector.shape_cast %385 : vector<8x128xf32> to vector<1x8x128xf32>
    tpu.vector_store %arg4[%386, %c0_160, %c0_161], %389 {strides = array<i32>} : memref<8x8x128xf32, #tpu.memory_space<vmem>>, vector<1x8x128xf32>,
    %c7_i32 = arith.constant 7 : i32
    %c0_162 = arith.constant 0 : index
    %c0_163 = arith.constant 0 : index
    %390 = vector.load %arg3[%c0_162, %c0_163] : memref<128x512xf32, #tpu.memory_space<vmem>>, vector<128x512xf32>
    %cst_164 = arith.constant dense<0.000000e+00> : vector<8x512xf32>
    %391 = tpu.matmul %383, %390, %cst_164 {dimension_numbers = #tpu.dot_dimension_numbers<[1], [0], [0], [1], [0, 0, 1, 1], [], []>} : vector<8x128xf32>, vector<128x512xf32>, vector<8x512xf32> -> vector<8x512xf32>
    %392 = arith.index_cast %c7_i32 : i32 to index
    %c0_165 = arith.constant 0 : index
    %c0_166 = arith.constant 0 : index
    %393 = vector.load %arg2[%392, %c0_165, %c0_166] : memref<8x8x512xf32, #tpu.memory_space<vmem>>, vector<1x8x128xf32>
    %394 = vector.shape_cast %393 : vector<1x8x128xf32> to vector<8x128xf32>
    %395 = vector.extract_strided_slice %391 {offsets = [0, 0], sizes = [8, 128], strides = [1, 1]} : vector<8x512xf32> to vector<8x128xf32>
    %396 = arith.addf %394, %395 : vector<8x128xf32>
    %cst_167 = arith.constant 5.000000e-01 : f32
    %397 = vector.broadcast %cst_167 : f32 to vector<8x128xf32>
    %398 = arith.mulf %397, %396 : vector<8x128xf32>
    %399 = math.tanh %398 : vector<8x128xf32>
    %cst_168 = arith.constant 5.000000e-01 : f32
    %400 = vector.broadcast %cst_168 : f32 to vector<8x128xf32>
    %401 = arith.mulf %400, %399 : vector<8x128xf32>
    %cst_169 = arith.constant 5.000000e-01 : f32
    %402 = vector.broadcast %cst_169 : f32 to vector<8x128xf32>
    %403 = arith.addf %401, %402 : vector<8x128xf32>
    %404 = arith.index_cast %c7_i32 : i32 to index
    %c0_170 = arith.constant 0 : index
    %c128_171 = arith.constant 128 : index
    %405 = vector.load %arg2[%404, %c0_170, %c128_171] : memref<8x8x512xf32, #tpu.memory_space<vmem>>, vector<1x8x128xf32>
    %406 = vector.shape_cast %405 : vector<1x8x128xf32> to vector<8x128xf32>
    %407 = vector.extract_strided_slice %391 {offsets = [0, 128], sizes = [8, 128], strides = [1, 1]} : vector<8x512xf32> to vector<8x128xf32>
    %408 = arith.addf %406, %407 : vector<8x128xf32>
    %cst_172 = arith.constant 5.000000e-01 : f32
    %409 = vector.broadcast %cst_172 : f32 to vector<8x128xf32>
    %410 = arith.mulf %409, %408 : vector<8x128xf32>
    %411 = math.tanh %410 : vector<8x128xf32>
    %cst_173 = arith.constant 5.000000e-01 : f32
    %412 = vector.broadcast %cst_173 : f32 to vector<8x128xf32>
    %413 = arith.mulf %412, %411 : vector<8x128xf32>
    %cst_174 = arith.constant 5.000000e-01 : f32
    %414 = vector.broadcast %cst_174 : f32 to vector<8x128xf32>
    %415 = arith.addf %413, %414 : vector<8x128xf32>
    %416 = arith.index_cast %c7_i32 : i32 to index
    %c0_175 = arith.constant 0 : index
    %c256_176 = arith.constant 256 : index
    %417 = vector.load %arg2[%416, %c0_175, %c256_176] : memref<8x8x512xf32, #tpu.memory_space<vmem>>, vector<1x8x128xf32>
    %418 = vector.shape_cast %417 : vector<1x8x128xf32> to vector<8x128xf32>
    %419 = vector.extract_strided_slice %391 {offsets = [0, 256], sizes = [8, 128], strides = [1, 1]} : vector<8x512xf32> to vector<8x128xf32>
    %420 = arith.addf %418, %419 : vector<8x128xf32>
    %421 = math.tanh %420 : vector<8x128xf32>
    %422 = arith.index_cast %c7_i32 : i32 to index
    %c0_177 = arith.constant 0 : index
    %c384_178 = arith.constant 384 : index
    %423 = vector.load %arg2[%422, %c0_177, %c384_178] : memref<8x8x512xf32, #tpu.memory_space<vmem>>, vector<1x8x128xf32>
    %424 = vector.shape_cast %423 : vector<1x8x128xf32> to vector<8x128xf32>
    %425 = vector.extract_strided_slice %391 {offsets = [0, 384], sizes = [8, 128], strides = [1, 1]} : vector<8x512xf32> to vector<8x128xf32>
    %426 = arith.addf %424, %425 : vector<8x128xf32>
    %cst_179 = arith.constant 5.000000e-01 : f32
    %427 = vector.broadcast %cst_179 : f32 to vector<8x128xf32>
    %428 = arith.mulf %427, %426 : vector<8x128xf32>
    %429 = math.tanh %428 : vector<8x128xf32>
    %cst_180 = arith.constant 5.000000e-01 : f32
    %430 = vector.broadcast %cst_180 : f32 to vector<8x128xf32>
    %431 = arith.mulf %430, %429 : vector<8x128xf32>
    %cst_181 = arith.constant 5.000000e-01 : f32
    %432 = vector.broadcast %cst_181 : f32 to vector<8x128xf32>
    %433 = arith.addf %431, %432 : vector<8x128xf32>
    %434 = arith.mulf %415, %381 : vector<8x128xf32>
    %435 = arith.mulf %403, %421 : vector<8x128xf32>
    %436 = arith.addf %434, %435 : vector<8x128xf32>
    %437 = math.tanh %436 : vector<8x128xf32>
    %438 = arith.mulf %433, %437 : vector<8x128xf32>
    %cst_182 = arith.constant 0.000000e+00 : f32
    %439 = vector.broadcast %cst_182 : f32 to vector<8x128xf32>
    %440 = arith.maximumf %438, %439 : vector<8x128xf32>
    %441 = arith.index_cast %c7_i32 : i32 to index
    %c0_183 = arith.constant 0 : index
    %c0_184 = arith.constant 0 : index
    %442 = vector.load %arg4[%441, %c0_183, %c0_184] : memref<8x8x128xf32, #tpu.memory_space<vmem>>, vector<1x8x128xf32>
    %443 = vector.shape_cast %442 : vector<1x8x128xf32> to vector<8x128xf32>
    %444 = vector.shape_cast %440 : vector<8x128xf32> to vector<1x8x128xf32>
    tpu.vector_store %arg4[%441, %c0_183, %c0_184], %444 {strides = array<i32>} : memref<8x8x128xf32, #tpu.memory_space<vmem>>, vector<1x8x128xf32>,
    %c8_i32 = arith.constant 8 : i32
    %c0_185 = arith.constant 0 : index
    %c0_186 = arith.constant 0 : index
    %445 = vector.load %arg5[%c0_185, %c0_186] : memref<8x128xf32, #tpu.memory_space<vmem>>, vector<8x128xf32>
    tpu.vector_store %arg5[%c0_185, %c0_186], %438 {strides = array<i32>} : memref<8x128xf32, #tpu.memory_space<vmem>>, vector<8x128xf32>,
    %c0_187 = arith.constant 0 : index
    %c0_188 = arith.constant 0 : index
    %446 = vector.load %arg6[%c0_187, %c0_188] : memref<8x128xf32, #tpu.memory_space<vmem>>, vector<8x128xf32>
    tpu.vector_store %arg6[%c0_187, %c0_188], %436 {strides = array<i32>} : memref<8x128xf32, #tpu.memory_space<vmem>>, vector<8x128xf32>,
    return
  }
  func.func @transform_0(%arg0: i32, %arg1: i32) -> (i32, i32, i32) {
    %c0_i32 = arith.constant 0 : i32
    %c0_i32_0 = arith.constant 0 : i32
    return %arg1, %arg0, %c0_i32 : i32, i32, i32
  }
  func.func @transform_1(%arg0: i32, %arg1: i32) -> (i32, i32) {
    %c0_i32 = arith.constant 0 : i32
    %c0_i32_0 = arith.constant 0 : i32
    %c0_i32_1 = arith.constant 0 : i32
    return %c0_i32, %c0_i32_0 : i32, i32
  }
  func.func @transform_2(%arg0: i32, %arg1: i32) -> (i32, i32, i32) {
    %c0_i32 = arith.constant 0 : i32
    %c0_i32_0 = arith.constant 0 : i32
    return %arg1, %arg0, %c0_i32 : i32, i32, i32
  }
}

</mosaic_0001>

<bundles_post_ra>
// kernel: lstm_model_forward.2
= control target key start
LH: loop header
LB: loop body
LE: loop exit
PB: predicated region body
PF: predicated region fallthrough
CT: control target
= control target key end

     0   :  { %v2531_v3 = vmov 0.0   ;;  %s3477_s1 = inlined_call_operand.vmem [shape: f32[128,512], index: 1, kind: input, shape index: {}]   ;;  %s3478_s0 = inlined_call_operand.vmem [shape: f32[8,8,512], index: 0, kind: input, shape index: {}]   ;;  %s3479_s2 = inlined_call_operand.vmem [shape: f32[8,8,128], index: 2, kind: output, shape index: {}]  }
   0x1   :  { %v20_v0 = vld [vmem:[%s3477_s1 + $0x8] sm:$0xff]  ;;  %v19_v2 = vld [vmem:[%s3477_s1] sm:$0xff]  ;;  %147 = vmatprep.mubr.f32.mxu0 %v2531_v3  ;;  %218 = vmatprep.mubr.f32.mxu1 %v2531_v3  ;;  %v22_v12 = vld [vmem:[%s3477_s1 + $0x18] sm:$0xff] }
   0x2   :  { %v24_v1 = vld [vmem:[%s3477_s1 + $0x28] sm:$0xff]  ;;  %v23_v5 = vld [vmem:[%s3477_s1 + $0x20] sm:$0xff]  ;;  %v26_v13 = vld [vmem:[%s3477_s1 + $0x38] sm:$0xff] }
   0x3   :  { %v2558_v4 = vpack.c.bf16 %v24_v1, %v20_v0  ;;  %v28_v6 = vld [vmem:[%s3477_s1 + $0x48] sm:$0xff]  ;;  %v2569_v8 = vpack.c.bf16 %v23_v5, %v19_v2  ;;  %v27_v10 = vld [vmem:[%s3477_s1 + $0x40] sm:$0xff]  ;;  %v21_v14 = vld [vmem:[%s3477_s1 + $0x10] sm:$0xff]  ;;  %v2595_v17 = vpack.c.bf16 %v26_v13, %v22_v12 }
   0x4   :  { %v32_v7 = vld [vmem:[%s3477_s1 + $0x68] sm:$0xff]  ;;  %v31_v11 = vld [vmem:[%s3477_s1 + $0x60] sm:$0xff]  ;;  %v25_v15 = vld [vmem:[%s3477_s1 + $0x30] sm:$0xff] }
   0x5   :  { %v2571_v9 = vpack.c.bf16 %v32_v7, %v28_v6  ;;  %1939 = vmatprep.subr.bf16.mxu0 %v2558_v4  ;;  %v2593_v16 = vpack.c.bf16 %v31_v11, %v27_v10  ;;  %v2597_v18 = vpack.c.bf16 %v25_v15, %v21_v14  ;;  %v36_v19 = vld [vmem:[%s3477_s1 + $0x88] sm:$0xff]  ;;  %v35_v21 = vld [vmem:[%s3477_s1 + $0x80] sm:$0xff]  ;;  %v30_v24 = vld [vmem:[%s3477_s1 + $0x58] sm:$0xff]  ;;  %1971 = vmatprep.subr.bf16.mxu1 %v2595_v17 }
   0x6   :  { %1941 = vmatpush1.bf16.msra.mxu0 %v2569_v8  ;;  %v40_v20 = vld [vmem:[%s3477_s1 + $0xa8] sm:$0xff]  ;;  %v39_v23 = vld [vmem:[%s3477_s1 + $0xa0] sm:$0xff]  ;;  %v34_v25 = vld [vmem:[%s3477_s1 + $0x78] sm:$0xff] }
   0x7   :  { %1943 = vmatprep.subr.bf16.mxu0 %v2571_v9  ;;  %v2609_v22 = vpack.c.bf16 %v40_v20, %v36_v19  ;;  %v2621_v26 = vpack.c.bf16 %v34_v25, %v30_v24  ;;  %v29_v27 = vld [vmem:[%s3477_s1 + $0x50] sm:$0xff]  ;;  %v44_v29 = vld [vmem:[%s3477_s1 + $0xc8] sm:$0xff]  ;;  %1973 = vmatpush1.bf16.msra.mxu1 %v2597_v18  ;;  %v2639_v32 = vpack.c.bf16 %v39_v23, %v35_v21  ;;  %v38_v33 = vld [vmem:[%s3477_s1 + $0x98] sm:$0xff] }
   0x8   :  { %v33_v28 = vld [vmem:[%s3477_s1 + $0x70] sm:$0xff]  ;;  %v48_v31 = vld [vmem:[%s3477_s1 + $0xe8] sm:$0xff]  ;;  %v42_v34 = vld [vmem:[%s3477_s1 + $0xb8] sm:$0xff] }
   0x9   :  { %v2633_v30 = vpack.c.bf16 %v33_v28, %v29_v27  ;;  %1975 = vmatprep.subr.bf16.mxu1 %v2621_v26  ;;  %v37_v35 = vld [vmem:[%s3477_s1 + $0x90] sm:$0xff]  ;;  %v2652_v36 = vpack.c.bf16 %v48_v31, %v44_v29  ;;  %v43_v37 = vld [vmem:[%s3477_s1 + $0xc0] sm:$0xff]  ;;  %v2660_v39 = vpack.c.bf16 %v42_v34, %v38_v33  ;;  %v52_v41 = vld [vmem:[%s3477_s1 + $0x108] sm:$0xff] }
   0xa   :  { %1945 = vmatpush1.bf16.msra.mxu0 %v2593_v16  ;;  %v47_v38 = vld [vmem:[%s3477_s1 + $0xe0] sm:$0xff]  ;;  %v41_v40 = vld [vmem:[%s3477_s1 + $0xb0] sm:$0xff]  ;;  %v56_v42 = vld [vmem:[%s3477_s1 + $0x128] sm:$0xff] }
   0xb   :  { %1947 = vmatprep.subr.bf16.mxu0 %v2609_v22  ;;  %v46_v43 = vld [vmem:[%s3477_s1 + $0xd8] sm:$0xff]  ;;  %1977 = vmatpush1.bf16.msra.mxu1 %v2633_v30  ;;  %v2675_v44 = vpack.c.bf16 %v41_v40, %v37_v35  ;;  %v2681_v46 = vpack.c.bf16 %v47_v38, %v43_v37  ;;  %v51_v47 = vld [vmem:[%s3477_s1 + $0x100] sm:$0xff]  ;;  %v45_v49 = vld [vmem:[%s3477_s1 + $0xd0] sm:$0xff]  ;;  %v2696_v51 = vpack.c.bf16 %v56_v42, %v52_v41 }
   0xc   :  { %v50_v45 = vld [vmem:[%s3477_s1 + $0xf8] sm:$0xff]  ;;  %1979 = vmatprep.subr.bf16.mxu1 %v2660_v39  ;;  %v49_v50 = vld [vmem:[%s3477_s1 + $0xf0] sm:$0xff]  ;;  %v55_v52 = vld [vmem:[%s3477_s1 + $0x120] sm:$0xff] }
   0xd   :  { %v2687_v48 = vpack.c.bf16 %v50_v45, %v46_v43  ;;  %v54_v53 = vld [vmem:[%s3477_s1 + $0x118] sm:$0xff]  ;;  %v60_v55 = vld [vmem:[%s3477_s1 + $0x148] sm:$0xff]  ;;  %v2714_v57 = vpack.c.bf16 %v49_v50, %v45_v49  ;;  %v2717_v58 = vpack.c.bf16 %v55_v52, %v51_v47  ;;  %v59_v59 = vld [vmem:[%s3477_s1 + $0x140] sm:$0xff] }
   0xe   :  { %1949 = vmatpush1.bf16.msra.mxu0 %v2639_v32  ;;  %v58_v54 = vld [vmem:[%s3477_s1 + $0x138] sm:$0xff]  ;;  %v64_v56 = vld [vmem:[%s3477_s1 + $0x168] sm:$0xff]  ;;  %v53_v61 = vld [vmem:[%s3477_s1 + $0x110] sm:$0xff] }
   0xf   :  { %1951 = vmatprep.subr.bf16.mxu0 %v2652_v36  ;;  %1981 = vmatpush1.bf16.msra.mxu1 %v2675_v44  ;;  %v2723_v60 = vpack.c.bf16 %v58_v54, %v54_v53  ;;  %v57_v62 = vld [vmem:[%s3477_s1 + $0x130] sm:$0xff]  ;;  %v2732_v63 = vpack.c.bf16 %v64_v56, %v60_v55  ;;  %v63_v0 = vld [vmem:[%s3477_s1 + $0x160] sm:$0xff]  ;;  %v62_v1 = vld [vmem:[%s3477_s1 + $0x158] sm:$0xff] }
  0x10   :  { %1983 = vmatprep.subr.bf16.mxu1 %v2687_v48  ;;  %v66_v2 = vld [vmem:[%s3477_s1 + $0x178] sm:$0xff]  ;;  %v68_v5 = vld [vmem:[%s3477_s1 + $0x188] sm:$0xff]  ;;  %v2750_v7 = vpack.c.bf16 %v57_v62, %v53_v61  ;;  %v2753_v10 = vpack.c.bf16 %v63_v0, %v59_v59  ;;  %v67_v11 = vld [vmem:[%s3477_s1 + $0x180] sm:$0xff] }
  0x11   :  { %v72_v6 = vld [vmem:[%s3477_s1 + $0x1a8] sm:$0xff]  ;;  %v2759_v12 = vpack.c.bf16 %v66_v2, %v62_v1  ;;  %v61_v13 = vld [vmem:[%s3477_s1 + $0x150] sm:$0xff]  ;;  %v71_v19 = vld [vmem:[%s3477_s1 + $0x1a0] sm:$0xff] }
  0x12   :  { %1953 = vmatpush1.bf16.msra.mxu0 %v2681_v46  ;;  %v65_v14 = vld [vmem:[%s3477_s1 + $0x170] sm:$0xff]  ;;  %v2768_v15 = vpack.c.bf16 %v72_v6, %v68_v5  ;;  %v70_v20 = vld [vmem:[%s3477_s1 + $0x198] sm:$0xff]  ;;  %v76_v23 = vld [vmem:[%s3477_s1 + $0x1c8] sm:$0xff]  ;;  %v2789_v27 = vpack.c.bf16 %v71_v19, %v67_v11 }
  0x13   :  { %1955 = vmatprep.subr.bf16.mxu0 %v2696_v51  ;;  %1985 = vmatpush1.bf16.msra.mxu1 %v2714_v57  ;;  %v74_v21 = vld [vmem:[%s3477_s1 + $0x1b8] sm:$0xff]  ;;  %v80_v24 = vld [vmem:[%s3477_s1 + $0x1e8] sm:$0xff]  ;;  %v2786_v25 = vpack.c.bf16 %v65_v14, %v61_v13  ;;  %v75_v28 = vld [vmem:[%s3477_s1 + $0x1c0] sm:$0xff] }
  0x14   :  { %1987 = vmatprep.subr.bf16.mxu1 %v2723_v60  ;;  %v2795_v29 = vpack.c.bf16 %v74_v21, %v70_v20  ;;  %v69_v31 = vld [vmem:[%s3477_s1 + $0x190] sm:$0xff]  ;;  %v2804_v34 = vpack.c.bf16 %v80_v24, %v76_v23  ;;  %v79_v35 = vld [vmem:[%s3477_s1 + $0x1e0] sm:$0xff]  ;;  %v78_v37 = vld [vmem:[%s3477_s1 + $0x1d8] sm:$0xff] }
  0x15   :  { %v73_v33 = vld [vmem:[%s3477_s1 + $0x1b0] sm:$0xff]  ;;  %v82_v38 = vld [vmem:[%s3477_s1 + $0x1f8] sm:$0xff]  ;;  %v2819_v41 = vpack.c.bf16 %v79_v35, %v75_v28  ;;  %v225_v49 = vld [vmem:[%s3478_s0] sm:$0xff] }
  0x16   :  { %1957 = vmatpush1.bf16.msra.mxu0 %v2717_v58  ;;  %v2816_v40 = vpack.c.bf16 %v73_v33, %v69_v31  ;;  %v2822_v42 = vpack.c.bf16 %v82_v38, %v78_v37  ;;  %v77_v43 = vld [vmem:[%s3477_s1 + $0x1d0] sm:$0xff]  ;;  %v231_v50 = vld [vmem:[%s3478_s0 + $0x8] sm:$0xff]  ;;  %v240_v2 = vld [vmem:[%s3478_s0 + $0x18] sm:$0xff] }
  0x17   :  { %1959 = vmatprep.subr.bf16.mxu0 %v2732_v63  ;;  %1989 = vmatpush1.bf16.msra.mxu1 %v2750_v7  ;;  %v81_v45 = vld [vmem:[%s3477_s1 + $0x1f0] sm:$0xff] }
  0x18   :  { %1991 = vmatprep.subr.bf16.mxu1 %v2759_v12  ;;  %v2832_v47 = vpack.c.bf16 %v81_v45, %v77_v43  ;;  %v237_v55 = vld [vmem:[%s3478_s0 + $0x10] sm:$0xff]  ;;  %v1903_v45 = vld [vmem:[%s3478_s0 + $0x20] sm:$0xff] }
  0x1a   :  { %1961 = vmatpush1.bf16.msra.mxu0 %v2753_v10 }
  0x1b   :  { %1963 = vmatprep.subr.bf16.mxu0 %v2768_v15  ;;  %1993 = vmatpush1.bf16.msra.mxu1 %v2786_v25 }
  0x1c   :  { %1995 = vmatprep.subr.bf16.mxu1 %v2795_v29 }
  0x1e   :  { %1965 = vmatpush1.bf16.msra.mxu0 %v2789_v27 }
  0x1f   :  { %1967 = vmatprep.subr.bf16.mxu0 %v2804_v34  ;;  %1997 = vmatpush1.bf16.msra.mxu1 %v2816_v40 }
  0x20   :  { %1999 = vmatprep.subr.bf16.mxu1 %v2822_v42 }
  0x22   :  { %1969 = vmatpush1.bf16.msra.mxu0 %v2819_v41 }
  0x23   :  { %2003 = vmatprep.subr.bf16.mxu0 %v2558_v4  ;;  %2001 = vmatpush1.bf16.msra.mxu1 %v2832_v47 }
  0x24   :  { %2035 = vmatprep.subr.bf16.mxu1 %v2595_v17 }
  0x25   :  { %148 = vmatmul.mubr.f32.vlgmr.msra.gmra.mrb[0].mxu0 %v2531_v3 }
  0x26   :  { %2005 = vmatpush1.bf16.msra.mxu0 %v2569_v8  ;;  %380 = vmatprep.mubr.f32.mxu0 %v2531_v3 }
  0x27   :  { %2007 = vmatprep.subr.bf16.mxu0 %v2571_v9  ;;  %219 = vmatmul.mubr.f32.vlgmr.msra.gmra.mrb[0].mxu1 %v2531_v3 }
  0x28   :  { %2037 = vmatpush1.bf16.msra.mxu1 %v2597_v18  ;;  %451 = vmatprep.mubr.f32.mxu1 %v2531_v3 }
  0x29   :  { %2039 = vmatprep.subr.bf16.mxu1 %v2621_v26 }
  0x2a   :  { %2009 = vmatpush1.bf16.msra.mxu0 %v2593_v16 }
  0x2b   :  { %2011 = vmatprep.subr.bf16.mxu0 %v2609_v22 }
  0x2c   :  { %2041 = vmatpush1.bf16.msra.mxu1 %v2633_v30 }
  0x2d   :  { %2043 = vmatprep.subr.bf16.mxu1 %v2660_v39 }
  0x2e   :  { %2013 = vmatpush1.bf16.msra.mxu0 %v2639_v32 }
  0x2f   :  { %2015 = vmatprep.subr.bf16.mxu0 %v2652_v36 }
  0x30   :  { %2045 = vmatpush1.bf16.msra.mxu1 %v2675_v44 }
  0x31   :  { %2047 = vmatprep.subr.bf16.mxu1 %v2687_v48 }
  0x32   :  { %2017 = vmatpush1.bf16.msra.mxu0 %v2681_v46 }
  0x33   :  { %2019 = vmatprep.subr.bf16.mxu0 %v2696_v51 }
  0x34   :  { %2049 = vmatpush1.bf16.msra.mxu1 %v2714_v57 }
  0x35   :  { %2051 = vmatprep.subr.bf16.mxu1 %v2723_v60 }
  0x36   :  { %2021 = vmatpush1.bf16.msra.mxu0 %v2717_v58 }
  0x37   :  { %2023 = vmatprep.subr.bf16.mxu0 %v2732_v63 }
  0x38   :  { %2053 = vmatpush1.bf16.msra.mxu1 %v2750_v7 }
  0x39   :  { %2055 = vmatprep.subr.bf16.mxu1 %v2759_v12 }
  0x3a   :  { %2025 = vmatpush1.bf16.msra.mxu0 %v2753_v10 }
  0x3b   :  { %2027 = vmatprep.subr.bf16.mxu0 %v2768_v15 }
  0x3c   :  { %2057 = vmatpush1.bf16.msra.mxu1 %v2786_v25 }
  0x3d   :  { %2059 = vmatprep.subr.bf16.mxu1 %v2795_v29 }
  0x3e   :  { %2029 = vmatpush1.bf16.msra.mxu0 %v2789_v27 }
  0x3f   :  { %2031 = vmatprep.subr.bf16.mxu0 %v2804_v34 }
  0x40   :  { %2061 = vmatpush1.bf16.msra.mxu1 %v2816_v40 }
  0x41   :  { %2063 = vmatprep.subr.bf16.mxu1 %v2822_v42 }
  0x42   :  { %2033 = vmatpush1.bf16.msra.mxu0 %v2819_v41 }
  0x43   :  { %2067 = vmatprep.subr.bf16.mxu0 %v2558_v4 }
  0x44   :  { %2065 = vmatpush1.bf16.msra.mxu1 %v2832_v47 }
  0x45   :  { %2099 = vmatprep.subr.bf16.mxu1 %v2595_v17 }
  0xf8   :  { %v149_v52 = vpop.f32.mrb[0].mxu0 }
  0xf9   :  { %v226_v53 = vadd.f32 %v225_v49, %v149_v52  ;;  %v151_v54 = vpop.f32.mrb[1].mxu0  ;;  %v1904_v49 = vld [vmem:[%s3478_s0 + $0x28] sm:$0xff] }
  0xfa   :  { %v232_v56 = vadd.f32 %v231_v50, %v151_v54  ;;  %v220_v61 = vpop.f32.mrb[0].mxu1 }
  0xfb   :  { %v227_v59 = vmul.f32 0.5, %v226_v53  ;;  %v238_v0 = vadd.f32 %v237_v55, %v220_v61  ;;  %v222_v1 = vpop.f32.mrb[1].mxu1 }
  0xfc   :  { %v233_v62 = vmul.f32 0.5, %v232_v56  ;;  %v241_v5 = vadd.f32 %v240_v2, %v222_v1  ;;  %v1905_v56 = vld [vmem:[%s3478_s0 + $0x30] sm:$0xff] }
  0xfd   :  { %2451 = vtanh.f32 %v227_v59 }
  0xfe   :  { %2453 = vtanh.f32 %v233_v62  ;;  %v242_v6 = vmul.f32 0.5, %v241_v5  ;;  %v1906_v62 = vld [vmem:[%s3478_s0 + $0x38] sm:$0xff] }
  0xff   :  { %2455 = vtanh.f32 %v238_v0 }
 0x100   :  { %2457 = vtanh.f32 %v242_v6 }
 0x107   :  { %v2452_v11 = vpop.eup %2451 }
 0x108   :  { %v2454_v13 = vpop.eup %2453  ;;  %v229_v14 = vmul.f32 0.5, %v2452_v11 }
 0x109   :  { %v2456_v19 = vpop.eup %2455  ;;  %v235_v20 = vmul.f32 0.5, %v2454_v13 }
 0x10a   :  { %v230_v21 = vadd.f32 0.5, %v229_v14  ;;  %v2458_v33 = vpop.eup %2457 }
 0x10b   :  { %v236_v23 = vadd.f32 0.5, %v235_v20  ;;  %v244_v35 = vmul.f32 0.5, %v2458_v33 }
 0x10c   :  { %v247_v24 = vmul.f32 %v2456_v19, %v230_v21 }
 0x10d   :  { %v246_v28 = vmul.f32 0.0, %v236_v23  ;;  %v245_v37 = vadd.f32 0.5, %v244_v35 }
 0x10f   :  { %v2887_v31 = vadd.f32 %v247_v24, %v246_v28 }
 0x111   :  { %2459 = vtanh.f32 %v2887_v31 }
 0x11b   :  { %v2460_v38 = vpop.eup %2459 }
 0x11c   :  { %v250_v43 = vmul.f32 %v2460_v38, %v245_v37  ;;  %v962_v38 = vld [vmem:[%s3477_s1 + $0x28] sm:$0xff] }
 0x11e   :  { %251 = vst [vmem:[%s3479_s2] sm:$0xff] %v250_v43  ;;  %381 = vmatmul.mubr.f32.vlgmr.msra.gmra.mrb[2].mxu0 %v250_v43  ;;  %452 = vmatmul.mubr.f32.vlgmr.msra.gmra.mrb[2].mxu1 %v250_v43  ;;  %v960_v43 = vld [vmem:[%s3477_s1 + $0x18] sm:$0xff] }
 0x11f   :  { %2069 = vmatpush1.bf16.msra.mxu0 %v2569_v8  ;;  %2101 = vmatpush1.bf16.msra.mxu1 %v2597_v18 }
 0x120   :  { %2071 = vmatprep.subr.bf16.mxu0 %v2571_v9  ;;  %2103 = vmatprep.subr.bf16.mxu1 %v2621_v26 }
 0x121   :  { %615 = vmatprep.mubr.f32.mxu0 %v2531_v3  ;;  %686 = vmatprep.mubr.f32.mxu1 %v2531_v3 }
 0x123   :  { %2073 = vmatpush1.bf16.msra.mxu0 %v2593_v16  ;;  %2105 = vmatpush1.bf16.msra.mxu1 %v2633_v30 }
 0x124   :  { %2075 = vmatprep.subr.bf16.mxu0 %v2609_v22  ;;  %2107 = vmatprep.subr.bf16.mxu1 %v2660_v39 }
 0x127   :  { %2077 = vmatpush1.bf16.msra.mxu0 %v2639_v32  ;;  %2109 = vmatpush1.bf16.msra.mxu1 %v2675_v44 }
 0x128   :  { %2079 = vmatprep.subr.bf16.mxu0 %v2652_v36  ;;  %2111 = vmatprep.subr.bf16.mxu1 %v2687_v48 }
 0x12b   :  { %2081 = vmatpush1.bf16.msra.mxu0 %v2681_v46  ;;  %2113 = vmatpush1.bf16.msra.mxu1 %v2714_v57 }
 0x12c   :  { %2083 = vmatprep.subr.bf16.mxu0 %v2696_v51  ;;  %2115 = vmatprep.subr.bf16.mxu1 %v2723_v60 }
 0x12f   :  { %2085 = vmatpush1.bf16.msra.mxu0 %v2717_v58  ;;  %2117 = vmatpush1.bf16.msra.mxu1 %v2750_v7 }
 0x130   :  { %2087 = vmatprep.subr.bf16.mxu0 %v2732_v63  ;;  %2119 = vmatprep.subr.bf16.mxu1 %v2759_v12 }
 0x133   :  { %2089 = vmatpush1.bf16.msra.mxu0 %v2753_v10  ;;  %2121 = vmatpush1.bf16.msra.mxu1 %v2786_v25 }
 0x134   :  { %2091 = vmatprep.subr.bf16.mxu0 %v2768_v15  ;;  %2123 = vmatprep.subr.bf16.mxu1 %v2795_v29 }
 0x137   :  { %2093 = vmatpush1.bf16.msra.mxu0 %v2789_v27  ;;  %2125 = vmatpush1.bf16.msra.mxu1 %v2816_v40 }
 0x138   :  { %2095 = vmatprep.subr.bf16.mxu0 %v2804_v34  ;;  %2127 = vmatprep.subr.bf16.mxu1 %v2822_v42 }
 0x13b   :  { %2097 = vmatpush1.bf16.msra.mxu0 %v2819_v41  ;;  %2129 = vmatpush1.bf16.msra.mxu1 %v2832_v47 }
 0x13c   :  { %2131 = vmatprep.subr.bf16.mxu0 %v2558_v4  ;;  %2163 = vmatprep.subr.bf16.mxu1 %v2595_v17 }
 0x1f1   :  { %v382_v50 = vpop.f32.mrb[2].mxu0  ;;  %v453_v52 = vpop.f32.mrb[2].mxu1 }
 0x1f2   :  { %v460_v53 = vadd.f32 %v1903_v45, %v382_v50  ;;  %v384_v54 = vpop.f32.mrb[3].mxu0  ;;  %v455_v55 = vpop.f32.mrb[3].mxu1  ;;  %v472_v61 = vadd.f32 %v1905_v56, %v453_v52  ;;  %v957_v50 = vld [vmem:[%s3477_s1] sm:$0xff]  ;;  %v963_v56 = vld [vmem:[%s3477_s1 + $0x30] sm:$0xff] }
 0x1f3   :  { %v466_v4 = vadd.f32 %v1904_v49, %v384_v54  ;;  %v475_v0 = vadd.f32 %v1906_v62, %v455_v55  ;;  %v964_v49 = vld [vmem:[%s3477_s1 + $0x38] sm:$0xff]  ;;  %v961_v52 = vld [vmem:[%s3477_s1 + $0x20] sm:$0xff]  ;;  %v959_v55 = vld [vmem:[%s3477_s1 + $0x10] sm:$0xff] }
 0x1f4   :  { %v461_v59 = vmul.f32 0.5, %v460_v53  ;;  %v3019_v53 = vpack.c.bf16 %v964_v49, %v960_v43  ;;  %v3021_v54 = vpack.c.bf16 %v961_v52, %v957_v50  ;;  %v1004_v43 = vld [vmem:[%s3477_s1 + $0x178] sm:$0xff]  ;;  %v997_v49 = vld [vmem:[%s3477_s1 + $0x140] sm:$0xff] }
 0x1f5   :  { %v467_v17 = vmul.f32 0.5, %v466_v4  ;;  %v476_v1 = vmul.f32 0.5, %v475_v0  ;;  %v3030_v4 = vpack.c.bf16 %v963_v56, %v959_v55  ;;  %v972_v0 = vld [vmem:[%s3477_s1 + $0x78] sm:$0xff]  ;;  %v1001_v50 = vld [vmem:[%s3477_s1 + $0x160] sm:$0xff]  ;;  %v999_v56 = vld [vmem:[%s3477_s1 + $0x150] sm:$0xff] }
 0x1f6   :  { %2461 = vtanh.f32 %v461_v59  ;;  %v966_v59 = vld [vmem:[%s3477_s1 + $0x48] sm:$0xff]  ;;  %v3201_v55 = vpack.c.bf16 %v1001_v50, %v997_v49 }
 0x1f7   :  { %2463 = vtanh.f32 %v467_v17  ;;  %v970_v17 = vld [vmem:[%s3477_s1 + $0x68] sm:$0xff] }
 0x1f8   :  { %2465 = vtanh.f32 %v472_v61  ;;  %v968_v61 = vld [vmem:[%s3477_s1 + $0x58] sm:$0xff]  ;;  %v3044_v62 = vpack.c.bf16 %v970_v17, %v966_v59  ;;  %v1003_v59 = vld [vmem:[%s3477_s1 + $0x170] sm:$0xff] }
 0x1f9   :  { %2467 = vtanh.f32 %v476_v1  ;;  %v965_v1 = vld [vmem:[%s3477_s1 + $0x40] sm:$0xff]  ;;  %v3210_v17 = vpack.c.bf16 %v1003_v59, %v999_v56  ;;  %v1916_v56 = vld [vmem:[%s3478_s0 + $0x78] sm:$0xff] }
 0x200   :  { %v2462_v2 = vpop.eup %2461 }
 0x201   :  { %v2464_v5 = vpop.eup %2463  ;;  %v463_v6 = vmul.f32 0.5, %v2462_v2  ;;  %v969_v2 = vld [vmem:[%s3477_s1 + $0x60] sm:$0xff] }
 0x202   :  { %v469_v11 = vmul.f32 0.5, %v2464_v5  ;;  %v2466_v14 = vpop.eup %2465  ;;  %v3055_v5 = vpack.c.bf16 %v972_v0, %v968_v61  ;;  %v1006_v61 = vld [vmem:[%s3477_s1 + $0x188] sm:$0xff] }
 0x203   :  { %v464_v13 = vadd.f32 0.5, %v463_v6  ;;  %v2468_v24 = vpop.eup %2467  ;;  %v3057_v6 = vpack.c.bf16 %v969_v2, %v965_v1  ;;  %v1010_v0 = vld [vmem:[%s3477_s1 + $0x1a8] sm:$0xff]  ;;  %v1008_v1 = vld [vmem:[%s3477_s1 + $0x198] sm:$0xff] }
 0x204   :  { %v470_v19 = vadd.f32 0.5, %v469_v11  ;;  %v478_v28 = vmul.f32 0.5, %v2468_v24  ;;  %v967_v11 = vld [vmem:[%s3477_s1 + $0x50] sm:$0xff]  ;;  %v980_v24 = vld [vmem:[%s3477_s1 + $0xb8] sm:$0xff]  ;;  %v3224_v2 = vpack.c.bf16 %v1010_v0, %v1006_v61 }
 0x205   :  { %v481_v20 = vmul.f32 %v2466_v14, %v464_v13  ;;  %v971_v13 = vld [vmem:[%s3477_s1 + $0x70] sm:$0xff] }
 0x206   :  { %v480_v21 = vmul.f32 %v470_v19, %v2887_v31  ;;  %v479_v33 = vadd.f32 0.5, %v478_v28  ;;  %v958_v31 = vld [vmem:[%s3477_s1 + $0x8] sm:$0xff]  ;;  %v3066_v14 = vpack.c.bf16 %v971_v13, %v967_v11  ;;  %v973_v28 = vld [vmem:[%s3477_s1 + $0x80] sm:$0xff]  ;;  %v1012_v11 = vld [vmem:[%s3477_s1 + $0x1b8] sm:$0xff] }
 0x207   :  { %v3008_v45 = vpack.c.bf16 %v962_v38, %v958_v31  ;;  %v974_v19 = vld [vmem:[%s3477_s1 + $0x88] sm:$0xff]  ;;  %v1000_v31 = vld [vmem:[%s3477_s1 + $0x158] sm:$0xff]  ;;  %v1005_v13 = vld [vmem:[%s3477_s1 + $0x180] sm:$0xff] }
 0x208   :  { %v2940_v23 = vadd.f32 %v481_v20, %v480_v21  ;;  %v978_v20 = vld [vmem:[%s3477_s1 + $0xa8] sm:$0xff]  ;;  %v976_v21 = vld [vmem:[%s3477_s1 + $0x98] sm:$0xff]  ;;  %v3199_v52 = vpack.c.bf16 %v1004_v43, %v1000_v31 }
 0x20a   :  { %2469 = vtanh.f32 %v2940_v23 }
 0x214   :  { %v2470_v35 = vpop.eup %2469 }
 0x215   :  { %v484_v37 = vmul.f32 %v2470_v35, %v479_v33  ;;  %v977_v33 = vld [vmem:[%s3477_s1 + $0xa0] sm:$0xff]  ;;  %v3091_v35 = vpack.c.bf16 %v980_v24, %v976_v21  ;;  %v1007_v24 = vld [vmem:[%s3477_s1 + $0x190] sm:$0xff] }
 0x217   :  { %1907 = vst [vmem:[%s3479_s2 + $0x8] sm:$0xff] %v484_v37  ;;  %616 = vmatmul.mubr.f32.vlgmr.msra.gmra.mrb[4].mxu0 %v484_v37  ;;  %687 = vmatmul.mubr.f32.vlgmr.msra.gmra.mrb[4].mxu1 %v484_v37  ;;  %v3093_v37 = vpack.c.bf16 %v977_v33, %v973_v28  ;;  %v1011_v28 = vld [vmem:[%s3477_s1 + $0x1b0] sm:$0xff] }
 0x218   :  { %2133 = vmatpush1.bf16.msra.mxu0 %v2569_v8  ;;  %2165 = vmatpush1.bf16.msra.mxu1 %v2597_v18  ;;  %v1908_v8 = vld [vmem:[%s3478_s0 + $0x40] sm:$0xff]  ;;  %v3246_v33 = vpack.c.bf16 %v1011_v28, %v1007_v24 }
 0x219   :  { %2135 = vmatprep.subr.bf16.mxu0 %v2571_v9  ;;  %2167 = vmatprep.subr.bf16.mxu1 %v2621_v26  ;;  %v1909_v9 = vld [vmem:[%s3478_s0 + $0x48] sm:$0xff] }
 0x21a   :  { %850 = vmatprep.mubr.f32.mxu0 %v2531_v3  ;;  %921 = vmatprep.mubr.f32.mxu1 %v2531_v3 }
 0x21c   :  { %2137 = vmatpush1.bf16.msra.mxu0 %v2593_v16  ;;  %2169 = vmatpush1.bf16.msra.mxu1 %v2633_v30 }
 0x21d   :  { %2139 = vmatprep.subr.bf16.mxu0 %v2609_v22  ;;  %2171 = vmatprep.subr.bf16.mxu1 %v2660_v39 }
 0x220   :  { %2141 = vmatpush1.bf16.msra.mxu0 %v2639_v32  ;;  %2173 = vmatpush1.bf16.msra.mxu1 %v2675_v44  ;;  %v1910_v32 = vld [vmem:[%s3478_s0 + $0x50] sm:$0xff] }
 0x221   :  { %2143 = vmatprep.subr.bf16.mxu0 %v2652_v36  ;;  %2175 = vmatprep.subr.bf16.mxu1 %v2687_v48  ;;  %v1911_v48 = vld [vmem:[%s3478_s0 + $0x58] sm:$0xff] }
 0x224   :  { %2145 = vmatpush1.bf16.msra.mxu0 %v2681_v46  ;;  %2177 = vmatpush1.bf16.msra.mxu1 %v2714_v57 }
 0x225   :  { %2147 = vmatprep.subr.bf16.mxu0 %v2696_v51  ;;  %2179 = vmatprep.subr.bf16.mxu1 %v2723_v60 }
 0x228   :  { %2149 = vmatpush1.bf16.msra.mxu0 %v2717_v58  ;;  %2181 = vmatpush1.bf16.msra.mxu1 %v2750_v7 }
 0x229   :  { %2151 = vmatprep.subr.bf16.mxu0 %v2732_v63  ;;  %2183 = vmatprep.subr.bf16.mxu1 %v2759_v12 }
 0x22c   :  { %2153 = vmatpush1.bf16.msra.mxu0 %v2753_v10  ;;  %2185 = vmatpush1.bf16.msra.mxu1 %v2786_v25 }
 0x22d   :  { %2155 = vmatprep.subr.bf16.mxu0 %v2768_v15  ;;  %2187 = vmatprep.subr.bf16.mxu1 %v2795_v29 }
 0x230   :  { %2157 = vmatpush1.bf16.msra.mxu0 %v2789_v27  ;;  %2189 = vmatpush1.bf16.msra.mxu1 %v2816_v40 }
 0x231   :  { %2159 = vmatprep.subr.bf16.mxu0 %v2804_v34  ;;  %2191 = vmatprep.subr.bf16.mxu1 %v2822_v42 }
 0x234   :  { %2161 = vmatpush1.bf16.msra.mxu0 %v2819_v41  ;;  %2193 = vmatpush1.bf16.msra.mxu1 %v2832_v47 }
 0x235   :  { %2195 = vmatprep.subr.bf16.mxu0 %v3008_v45  ;;  %2227 = vmatprep.subr.bf16.mxu1 %v3019_v53 }
 0x2ea   :  { %v617_v16 = vpop.f32.mrb[4].mxu0  ;;  %v688_v18 = vpop.f32.mrb[4].mxu1 }
 0x2eb   :  { %v695_v22 = vadd.f32 %v1908_v8, %v617_v16  ;;  %v619_v26 = vpop.f32.mrb[5].mxu0  ;;  %v690_v30 = vpop.f32.mrb[5].mxu1  ;;  %v707_v46 = vadd.f32 %v1910_v32, %v688_v18  ;;  %v975_v8 = vld [vmem:[%s3477_s1 + $0x90] sm:$0xff]  ;;  %v982_v18 = vld [vmem:[%s3477_s1 + $0xc8] sm:$0xff]  ;;  %v988_v32 = vld [vmem:[%s3477_s1 + $0xf8] sm:$0xff] }
 0x2ec   :  { %v701_v36 = vadd.f32 %v1909_v9, %v619_v26  ;;  %v710_v51 = vadd.f32 %v1911_v48, %v690_v30  ;;  %v979_v9 = vld [vmem:[%s3477_s1 + $0xb0] sm:$0xff]  ;;  %v984_v26 = vld [vmem:[%s3477_s1 + $0xd8] sm:$0xff] }
 0x2ed   :  { %v696_v39 = vmul.f32 0.5, %v695_v22  ;;  %v3102_v16 = vpack.c.bf16 %v979_v9, %v975_v8  ;;  %v986_v22 = vld [vmem:[%s3477_s1 + $0xe8] sm:$0xff]  ;;  %v983_v48 = vld [vmem:[%s3477_s1 + $0xd0] sm:$0xff] }
 0x2ee   :  { %v702_v44 = vmul.f32 0.5, %v701_v36  ;;  %v711_v57 = vmul.f32 0.5, %v710_v51  ;;  %v3116_v30 = vpack.c.bf16 %v986_v22, %v982_v18  ;;  %v981_v36 = vld [vmem:[%s3477_s1 + $0xc0] sm:$0xff]  ;;  %v987_v51 = vld [vmem:[%s3477_s1 + $0xf0] sm:$0xff]  ;;  %v1014_v8 = vld [vmem:[%s3477_s1 + $0x1c8] sm:$0xff] }
 0x2ef   :  { %2471 = vtanh.f32 %v696_v39  ;;  %v985_v39 = vld [vmem:[%s3477_s1 + $0xe0] sm:$0xff]  ;;  %v1018_v9 = vld [vmem:[%s3477_s1 + $0x1e8] sm:$0xff]  ;;  %v1016_v18 = vld [vmem:[%s3477_s1 + $0x1d8] sm:$0xff] }
 0x2f0   :  { %2473 = vtanh.f32 %v702_v44  ;;  %v3127_v44 = vpack.c.bf16 %v988_v32, %v984_v26  ;;  %v3260_v22 = vpack.c.bf16 %v1018_v9, %v1014_v8  ;;  %v1020_v26 = vld [vmem:[%s3477_s1 + $0x1f8] sm:$0xff]  ;;  %v1013_v32 = vld [vmem:[%s3477_s1 + $0x1c0] sm:$0xff] }
 0x2f1   :  { %2475 = vtanh.f32 %v707_v46  ;;  %v3129_v46 = vpack.c.bf16 %v985_v39, %v981_v36  ;;  %v1017_v36 = vld [vmem:[%s3477_s1 + $0x1e0] sm:$0xff]  ;;  %v3271_v39 = vpack.c.bf16 %v1020_v26, %v1016_v18 }
 0x2f2   :  { %2477 = vtanh.f32 %v711_v57  ;;  %v3138_v57 = vpack.c.bf16 %v987_v51, %v983_v48  ;;  %v3273_v48 = vpack.c.bf16 %v1017_v36, %v1013_v32  ;;  %v1015_v51 = vld [vmem:[%s3477_s1 + $0x1d0] sm:$0xff] }
 0x2f9   :  { %v2472_v58 = vpop.eup %2471 }
 0x2fa   :  { %v2474_v60 = vpop.eup %2473  ;;  %v698_v63 = vmul.f32 0.5, %v2472_v58  ;;  %v990_v58 = vld [vmem:[%s3477_s1 + $0x108] sm:$0xff] }
 0x2fb   :  { %v704_v7 = vmul.f32 0.5, %v2474_v60  ;;  %v2476_v12 = vpop.eup %2475  ;;  %v994_v60 = vld [vmem:[%s3477_s1 + $0x128] sm:$0xff] }
 0x2fc   :  { %v699_v10 = vadd.f32 0.5, %v698_v63  ;;  %v2478_v34 = vpop.eup %2477  ;;  %v992_v63 = vld [vmem:[%s3477_s1 + $0x118] sm:$0xff] }
 0x2fd   :  { %v705_v15 = vadd.f32 0.5, %v704_v7  ;;  %v713_v40 = vmul.f32 0.5, %v2478_v34  ;;  %v3152_v7 = vpack.c.bf16 %v994_v60, %v990_v58  ;;  %v991_v34 = vld [vmem:[%s3477_s1 + $0x110] sm:$0xff] }
 0x2fe   :  { %v716_v25 = vmul.f32 %v2476_v12, %v699_v10  ;;  %v996_v10 = vld [vmem:[%s3477_s1 + $0x138] sm:$0xff]  ;;  %v989_v12 = vld [vmem:[%s3477_s1 + $0x100] sm:$0xff]  ;;  %v1019_v58 = vld [vmem:[%s3477_s1 + $0x1f0] sm:$0xff] }
 0x2ff   :  { %v715_v27 = vmul.f32 %v705_v15, %v2940_v23  ;;  %v714_v41 = vadd.f32 0.5, %v713_v40  ;;  %v3080_v23 = vpack.c.bf16 %v978_v20, %v974_v19  ;;  %v993_v15 = vld [vmem:[%s3477_s1 + $0x120] sm:$0xff]  ;;  %v995_v40 = vld [vmem:[%s3477_s1 + $0x130] sm:$0xff]  ;;  %v3235_v20 = vpack.c.bf16 %v1012_v11, %v1008_v1 }
 0x300   :  { %v1009_v19 = vld [vmem:[%s3477_s1 + $0x1a0] sm:$0xff]  ;;  %v3282_v60 = vpack.c.bf16 %v1019_v58, %v1015_v51 }
 0x301   :  { %v2991_v29 = vadd.f32 %v716_v25, %v715_v27  ;;  %v3163_v25 = vpack.c.bf16 %v996_v10, %v992_v63  ;;  %v3165_v27 = vpack.c.bf16 %v993_v15, %v989_v12  ;;  %v3237_v21 = vpack.c.bf16 %v1009_v19, %v1005_v13  ;;  %v1913_v63 = vld [vmem:[%s3478_s0 + $0x60] sm:$0xff]  ;;  %v1914_v10 = vld [vmem:[%s3478_s0 + $0x68] sm:$0xff] }
 0x303   :  { %2479 = vtanh.f32 %v2991_v29 }
 0x30d   :  { %v2480_v42 = vpop.eup %2479 }
 0x30e   :  { %v719_v47 = vmul.f32 %v2480_v42, %v714_v41  ;;  %v3174_v41 = vpack.c.bf16 %v995_v40, %v991_v34  ;;  %v998_v42 = vld [vmem:[%s3477_s1 + $0x148] sm:$0xff] }
 0x310   :  { %1912 = vst [vmem:[%s3479_s2 + $0x10] sm:$0xff] %v719_v47  ;;  %851 = vmatmul.mubr.f32.vlgmr.msra.gmra.mrb[6].mxu0 %v719_v47  ;;  %922 = vmatmul.mubr.f32.vlgmr.msra.gmra.mrb[6].mxu1 %v719_v47  ;;  %v1002_v47 = vld [vmem:[%s3477_s1 + $0x168] sm:$0xff] }
 0x311   :  { %1085 = vmatprep.mubr.f32.mxu0 %v2531_v3  ;;  %1156 = vmatprep.mubr.f32.mxu1 %v2531_v3  ;;  %v3188_v38 = vpack.c.bf16 %v1002_v47, %v998_v42  ;;  %v1915_v47 = vld [vmem:[%s3478_s0 + $0x70] sm:$0xff] }
 0x312   :  { %2197 = vmatpush1.bf16.msra.mxu0 %v3021_v54  ;;  %2229 = vmatpush1.bf16.msra.mxu1 %v3030_v4 }
 0x313   :  { %2199 = vmatprep.subr.bf16.mxu0 %v3044_v62  ;;  %2231 = vmatprep.subr.bf16.mxu1 %v3055_v5 }
 0x316   :  { %2201 = vmatpush1.bf16.msra.mxu0 %v3057_v6  ;;  %2233 = vmatpush1.bf16.msra.mxu1 %v3066_v14 }
 0x317   :  { %2203 = vmatprep.subr.bf16.mxu0 %v3080_v23  ;;  %2235 = vmatprep.subr.bf16.mxu1 %v3091_v35 }
 0x31a   :  { %2205 = vmatpush1.bf16.msra.mxu0 %v3093_v37  ;;  %2237 = vmatpush1.bf16.msra.mxu1 %v3102_v16 }
 0x31b   :  { %2207 = vmatprep.subr.bf16.mxu0 %v3116_v30  ;;  %2239 = vmatprep.subr.bf16.mxu1 %v3127_v44 }
 0x31e   :  { %2209 = vmatpush1.bf16.msra.mxu0 %v3129_v46  ;;  %2241 = vmatpush1.bf16.msra.mxu1 %v3138_v57 }
 0x31f   :  { %2211 = vmatprep.subr.bf16.mxu0 %v3152_v7  ;;  %2243 = vmatprep.subr.bf16.mxu1 %v3163_v25 }
 0x322   :  { %2213 = vmatpush1.bf16.msra.mxu0 %v3165_v27  ;;  %2245 = vmatpush1.bf16.msra.mxu1 %v3174_v41 }
 0x323   :  { %2215 = vmatprep.subr.bf16.mxu0 %v3188_v38  ;;  %2247 = vmatprep.subr.bf16.mxu1 %v3199_v52 }
 0x326   :  { %2217 = vmatpush1.bf16.msra.mxu0 %v3201_v55  ;;  %2249 = vmatpush1.bf16.msra.mxu1 %v3210_v17 }
 0x327   :  { %2219 = vmatprep.subr.bf16.mxu0 %v3224_v2  ;;  %2251 = vmatprep.subr.bf16.mxu1 %v3235_v20 }
 0x32a   :  { %2221 = vmatpush1.bf16.msra.mxu0 %v3237_v21  ;;  %2253 = vmatpush1.bf16.msra.mxu1 %v3246_v33 }
 0x32b   :  { %2223 = vmatprep.subr.bf16.mxu0 %v3260_v22  ;;  %2255 = vmatprep.subr.bf16.mxu1 %v3271_v39 }
 0x32e   :  { %2225 = vmatpush1.bf16.msra.mxu0 %v3273_v48  ;;  %2257 = vmatpush1.bf16.msra.mxu1 %v3282_v60 }
 0x32f   :  { %2259 = vmatprep.subr.bf16.mxu0 %v3008_v45  ;;  %2291 = vmatprep.subr.bf16.mxu1 %v3019_v53 }
 0x3e3   :  { %v852_v12 = vpop.f32.mrb[6].mxu0  ;;  %v923_v15 = vpop.f32.mrb[6].mxu1 }
 0x3e4   :  { %v930_v34 = vadd.f32 %v1913_v63, %v852_v12  ;;  %v854_v40 = vpop.f32.mrb[7].mxu0  ;;  %v925_v42 = vpop.f32.mrb[7].mxu1  ;;  %v942_v50 = vadd.f32 %v1915_v47, %v923_v15  ;;  %v1919_v63 = vld [vmem:[%s3478_s0 + $0x88] sm:$0xff] }
 0x3e5   :  { %v936_v31 = vadd.f32 %v1914_v10, %v854_v40  ;;  %v945_v59 = vadd.f32 %v1916_v56, %v925_v42  ;;  %v1920_v42 = vld [vmem:[%s3478_s0 + $0x90] sm:$0xff] }
 0x3e6   :  { %v931_v43 = vmul.f32 0.5, %v930_v34 }
 0x3e7   :  { %v937_v49 = vmul.f32 0.5, %v936_v31  ;;  %v946_v61 = vmul.f32 0.5, %v945_v59 }
 0x3e8   :  { %2481 = vtanh.f32 %v931_v43 }
 0x3e9   :  { %2483 = vtanh.f32 %v937_v49 }
 0x3ea   :  { %2485 = vtanh.f32 %v942_v50  ;;  %v1921_v50 = vld [vmem:[%s3478_s0 + $0x98] sm:$0xff] }
 0x3eb   :  { %2487 = vtanh.f32 %v946_v61 }
 0x3f2   :  { %v2482_v0 = vpop.eup %2481 }
 0x3f3   :  { %v2484_v1 = vpop.eup %2483  ;;  %v933_v11 = vmul.f32 0.5, %v2482_v0 }
 0x3f4   :  { %v939_v13 = vmul.f32 0.5, %v2484_v1  ;;  %v2486_v24 = vpop.eup %2485 }
 0x3f5   :  { %v934_v19 = vadd.f32 0.5, %v933_v11  ;;  %v2488_v26 = vpop.eup %2487 }
 0x3f6   :  { %v940_v28 = vadd.f32 0.5, %v939_v13  ;;  %v948_v32 = vmul.f32 0.5, %v2488_v26 }
 0x3f7   :  { %v951_v8 = vmul.f32 %v2486_v24, %v934_v19 }
 0x3f8   :  { %v950_v9 = vmul.f32 %v940_v28, %v2991_v29  ;;  %v949_v36 = vadd.f32 0.5, %v948_v32  ;;  %v1918_v29 = vld [vmem:[%s3478_s0 + $0x80] sm:$0xff] }
 0x3fa   :  { %v3302_v18 = vadd.f32 %v951_v8, %v950_v9 }
 0x3fc   :  { %2489 = vtanh.f32 %v3302_v18 }
 0x406   :  { %v2490_v51 = vpop.eup %2489 }
 0x407   :  { %v954_v58 = vmul.f32 %v2490_v51, %v949_v36 }
 0x409   :  { %1917 = vst [vmem:[%s3479_s2 + $0x18] sm:$0xff] %v954_v58  ;;  %1086 = vmatmul.mubr.f32.vlgmr.msra.gmra.mrb[8].mxu0 %v954_v58  ;;  %1157 = vmatmul.mubr.f32.vlgmr.msra.gmra.mrb[8].mxu1 %v954_v58 }
 0x40a   :  { %2261 = vmatpush1.bf16.msra.mxu0 %v3021_v54  ;;  %2293 = vmatpush1.bf16.msra.mxu1 %v3030_v4 }
 0x40b   :  { %2263 = vmatprep.subr.bf16.mxu0 %v3044_v62  ;;  %2295 = vmatprep.subr.bf16.mxu1 %v3055_v5 }
 0x40c   :  { %1320 = vmatprep.mubr.f32.mxu0 %v2531_v3  ;;  %1391 = vmatprep.mubr.f32.mxu1 %v2531_v3 }
 0x40e   :  { %2265 = vmatpush1.bf16.msra.mxu0 %v3057_v6  ;;  %2297 = vmatpush1.bf16.msra.mxu1 %v3066_v14 }
 0x40f   :  { %2267 = vmatprep.subr.bf16.mxu0 %v3080_v23  ;;  %2299 = vmatprep.subr.bf16.mxu1 %v3091_v35 }
 0x412   :  { %2269 = vmatpush1.bf16.msra.mxu0 %v3093_v37  ;;  %2301 = vmatpush1.bf16.msra.mxu1 %v3102_v16 }
 0x413   :  { %2271 = vmatprep.subr.bf16.mxu0 %v3116_v30  ;;  %2303 = vmatprep.subr.bf16.mxu1 %v3127_v44 }
 0x416   :  { %2273 = vmatpush1.bf16.msra.mxu0 %v3129_v46  ;;  %2305 = vmatpush1.bf16.msra.mxu1 %v3138_v57 }
 0x417   :  { %2275 = vmatprep.subr.bf16.mxu0 %v3152_v7  ;;  %2307 = vmatprep.subr.bf16.mxu1 %v3163_v25 }
 0x41a   :  { %2277 = vmatpush1.bf16.msra.mxu0 %v3165_v27  ;;  %2309 = vmatpush1.bf16.msra.mxu1 %v3174_v41 }
 0x41b   :  { %2279 = vmatprep.subr.bf16.mxu0 %v3188_v38  ;;  %2311 = vmatprep.subr.bf16.mxu1 %v3199_v52 }
 0x41e   :  { %2281 = vmatpush1.bf16.msra.mxu0 %v3201_v55  ;;  %2313 = vmatpush1.bf16.msra.mxu1 %v3210_v17 }
 0x41f   :  { %2283 = vmatprep.subr.bf16.mxu0 %v3224_v2  ;;  %2315 = vmatprep.subr.bf16.mxu1 %v3235_v20 }
 0x422   :  { %2285 = vmatpush1.bf16.msra.mxu0 %v3237_v21  ;;  %2317 = vmatpush1.bf16.msra.mxu1 %v3246_v33 }
 0x423   :  { %2287 = vmatprep.subr.bf16.mxu0 %v3260_v22  ;;  %2319 = vmatprep.subr.bf16.mxu1 %v3271_v39 }
 0x426   :  { %2289 = vmatpush1.bf16.msra.mxu0 %v3273_v48  ;;  %2321 = vmatpush1.bf16.msra.mxu1 %v3282_v60 }
 0x427   :  { %2323 = vmatprep.subr.bf16.mxu0 %v3008_v45  ;;  %2355 = vmatprep.subr.bf16.mxu1 %v3019_v53 }
 0x4dc   :  { %v1087_v10 = vpop.f32.mrb[8].mxu0  ;;  %v1158_v12 = vpop.f32.mrb[8].mxu1 }
 0x4dd   :  { %v1165_v15 = vadd.f32 %v1918_v29, %v1087_v10  ;;  %v1089_v34 = vpop.f32.mrb[9].mxu0  ;;  %v1160_v40 = vpop.f32.mrb[9].mxu1  ;;  %v1177_v49 = vadd.f32 %v1920_v42, %v1158_v12  ;;  %v1924_v29 = vld [vmem:[%s3478_s0 + $0xa8] sm:$0xff] }
 0x4de   :  { %v1171_v47 = vadd.f32 %v1919_v63, %v1089_v34  ;;  %v1180_v56 = vadd.f32 %v1921_v50, %v1160_v40  ;;  %v1925_v40 = vld [vmem:[%s3478_s0 + $0xb0] sm:$0xff] }
 0x4df   :  { %v1166_v31 = vmul.f32 0.5, %v1165_v15 }
 0x4e0   :  { %v1172_v43 = vmul.f32 0.5, %v1171_v47  ;;  %v1181_v59 = vmul.f32 0.5, %v1180_v56 }
 0x4e1   :  { %2491 = vtanh.f32 %v1166_v31  ;;  %v1926_v31 = vld [vmem:[%s3478_s0 + $0xb8] sm:$0xff] }
 0x4e2   :  { %2493 = vtanh.f32 %v1172_v43 }
 0x4e3   :  { %2495 = vtanh.f32 %v1177_v49 }
 0x4e4   :  { %2497 = vtanh.f32 %v1181_v59 }
 0x4eb   :  { %v2492_v61 = vpop.eup %2491 }
 0x4ec   :  { %v2494_v0 = vpop.eup %2493  ;;  %v1168_v1 = vmul.f32 0.5, %v2492_v61 }
 0x4ed   :  { %v1174_v11 = vmul.f32 0.5, %v2494_v0  ;;  %v2496_v19 = vpop.eup %2495 }
 0x4ee   :  { %v1169_v13 = vadd.f32 0.5, %v1168_v1  ;;  %v2498_v26 = vpop.eup %2497 }
 0x4ef   :  { %v1175_v24 = vadd.f32 0.5, %v1174_v11  ;;  %v1183_v32 = vmul.f32 0.5, %v2498_v26 }
 0x4f0   :  { %v1186_v28 = vmul.f32 %v2496_v19, %v1169_v13 }
 0x4f1   :  { %v1185_v8 = vmul.f32 %v1175_v24, %v3302_v18  ;;  %v1184_v36 = vadd.f32 0.5, %v1183_v32  ;;  %v1923_v18 = vld [vmem:[%s3478_s0 + $0xa0] sm:$0xff] }
 0x4f3   :  { %v3355_v9 = vadd.f32 %v1186_v28, %v1185_v8 }
 0x4f5   :  { %2499 = vtanh.f32 %v3355_v9 }
 0x4ff   :  { %v2500_v51 = vpop.eup %2499 }
 0x500   :  { %v1189_v58 = vmul.f32 %v2500_v51, %v1184_v36 }
 0x502   :  { %1922 = vst [vmem:[%s3479_s2 + $0x20] sm:$0xff] %v1189_v58  ;;  %1321 = vmatmul.mubr.f32.vlgmr.msra.gmra.mrb[10].mxu0 %v1189_v58  ;;  %1392 = vmatmul.mubr.f32.vlgmr.msra.gmra.mrb[10].mxu1 %v1189_v58 }
 0x503   :  { %2325 = vmatpush1.bf16.msra.mxu0 %v3021_v54  ;;  %2357 = vmatpush1.bf16.msra.mxu1 %v3030_v4 }
 0x504   :  { %2327 = vmatprep.subr.bf16.mxu0 %v3044_v62  ;;  %2359 = vmatprep.subr.bf16.mxu1 %v3055_v5 }
 0x505   :  { %1555 = vmatprep.mubr.f32.mxu0 %v2531_v3  ;;  %1626 = vmatprep.mubr.f32.mxu1 %v2531_v3 }
 0x507   :  { %2329 = vmatpush1.bf16.msra.mxu0 %v3057_v6  ;;  %2361 = vmatpush1.bf16.msra.mxu1 %v3066_v14 }
 0x508   :  { %2331 = vmatprep.subr.bf16.mxu0 %v3080_v23  ;;  %2363 = vmatprep.subr.bf16.mxu1 %v3091_v35 }
 0x50b   :  { %2333 = vmatpush1.bf16.msra.mxu0 %v3093_v37  ;;  %2365 = vmatpush1.bf16.msra.mxu1 %v3102_v16 }
 0x50c   :  { %2335 = vmatprep.subr.bf16.mxu0 %v3116_v30  ;;  %2367 = vmatprep.subr.bf16.mxu1 %v3127_v44 }
 0x50f   :  { %2337 = vmatpush1.bf16.msra.mxu0 %v3129_v46  ;;  %2369 = vmatpush1.bf16.msra.mxu1 %v3138_v57 }
 0x510   :  { %2339 = vmatprep.subr.bf16.mxu0 %v3152_v7  ;;  %2371 = vmatprep.subr.bf16.mxu1 %v3163_v25 }
 0x513   :  { %2341 = vmatpush1.bf16.msra.mxu0 %v3165_v27  ;;  %2373 = vmatpush1.bf16.msra.mxu1 %v3174_v41 }
 0x514   :  { %2343 = vmatprep.subr.bf16.mxu0 %v3188_v38  ;;  %2375 = vmatprep.subr.bf16.mxu1 %v3199_v52 }
 0x517   :  { %2345 = vmatpush1.bf16.msra.mxu0 %v3201_v55  ;;  %2377 = vmatpush1.bf16.msra.mxu1 %v3210_v17 }
 0x518   :  { %2347 = vmatprep.subr.bf16.mxu0 %v3224_v2  ;;  %2379 = vmatprep.subr.bf16.mxu1 %v3235_v20 }
 0x51b   :  { %2349 = vmatpush1.bf16.msra.mxu0 %v3237_v21  ;;  %2381 = vmatpush1.bf16.msra.mxu1 %v3246_v33 }
 0x51c   :  { %2351 = vmatprep.subr.bf16.mxu0 %v3260_v22  ;;  %2383 = vmatprep.subr.bf16.mxu1 %v3271_v39 }
 0x51f   :  { %2353 = vmatpush1.bf16.msra.mxu0 %v3273_v48  ;;  %2385 = vmatpush1.bf16.msra.mxu1 %v3282_v60 }
 0x520   :  { %2387 = vmatprep.subr.bf16.mxu0 %v3008_v45  ;;  %2419 = vmatprep.subr.bf16.mxu1 %v3019_v53 }
 0x5d5   :  { %v1322_v63 = vpop.f32.mrb[10].mxu0  ;;  %v1393_v10 = vpop.f32.mrb[10].mxu1 }
 0x5d6   :  { %v1400_v12 = vadd.f32 %v1923_v18, %v1322_v63  ;;  %v1324_v15 = vpop.f32.mrb[11].mxu0  ;;  %v1395_v34 = vpop.f32.mrb[11].mxu1  ;;  %v1412_v47 = vadd.f32 %v1925_v40, %v1393_v10  ;;  %v1935_v10 = vld [vmem:[%s3478_s0 + $0xf0] sm:$0xff] }
 0x5d7   :  { %v1406_v45 = vadd.f32 %v1924_v29, %v1324_v15  ;;  %v1415_v43 = vadd.f32 %v1926_v31, %v1395_v34 }
 0x5d8   :  { %v1401_v42 = vmul.f32 0.5, %v1400_v12 }
 0x5d9   :  { %v1407_v53 = vmul.f32 0.5, %v1406_v45  ;;  %v1416_v49 = vmul.f32 0.5, %v1415_v43  ;;  %v1936_v45 = vld [vmem:[%s3478_s0 + $0xf8] sm:$0xff] }
 0x5da   :  { %2501 = vtanh.f32 %v1401_v42 }
 0x5db   :  { %2503 = vtanh.f32 %v1407_v53 }
 0x5dc   :  { %2505 = vtanh.f32 %v1412_v47 }
 0x5dd   :  { %2507 = vtanh.f32 %v1416_v49 }
 0x5e4   :  { %v2502_v50 = vpop.eup %2501 }
 0x5e5   :  { %v2504_v56 = vpop.eup %2503  ;;  %v1403_v59 = vmul.f32 0.5, %v2502_v50 }
 0x5e6   :  { %v1409_v61 = vmul.f32 0.5, %v2504_v56  ;;  %v2506_v1 = vpop.eup %2505 }
 0x5e7   :  { %v1404_v0 = vadd.f32 0.5, %v1403_v59  ;;  %v2508_v28 = vpop.eup %2507 }
 0x5e8   :  { %v1410_v11 = vadd.f32 0.5, %v1409_v61  ;;  %v1418_v8 = vmul.f32 0.5, %v2508_v28 }
 0x5e9   :  { %v1421_v13 = vmul.f32 %v2506_v1, %v1404_v0 }
 0x5ea   :  { %v1420_v19 = vmul.f32 %v1410_v11, %v3355_v9  ;;  %v1419_v26 = vadd.f32 0.5, %v1418_v8  ;;  %v1934_v9 = vld [vmem:[%s3478_s0 + $0xe8] sm:$0xff] }
 0x5ec   :  { %v3408_v24 = vadd.f32 %v1421_v13, %v1420_v19 }
 0x5ee   :  { %2509 = vtanh.f32 %v3408_v24 }
 0x5f8   :  { %v2510_v32 = vpop.eup %2509 }
 0x5f9   :  { %v1424_v36 = vmul.f32 %v2510_v32, %v1419_v26 }
 0x5fb   :  { %1927 = vst [vmem:[%s3479_s2 + $0x28] sm:$0xff] %v1424_v36  ;;  %1556 = vmatmul.mubr.f32.vlgmr.msra.gmra.mrb[12].mxu0 %v1424_v36  ;;  %1627 = vmatmul.mubr.f32.vlgmr.msra.gmra.mrb[12].mxu1 %v1424_v36 }
 0x5fc   :  { %2389 = vmatpush1.bf16.msra.mxu0 %v3021_v54  ;;  %2421 = vmatpush1.bf16.msra.mxu1 %v3030_v4  ;;  %v1929_v54 = vld [vmem:[%s3478_s0 + $0xc8] sm:$0xff] }
 0x5fd   :  { %2391 = vmatprep.subr.bf16.mxu0 %v3044_v62  ;;  %2423 = vmatprep.subr.bf16.mxu1 %v3055_v5 }
 0x5fe   :  { %1790 = vmatprep.mubr.f32.mxu0 %v2531_v3  ;;  %1861 = vmatprep.mubr.f32.mxu1 %v2531_v3  ;;  %v1928_v3 = vld [vmem:[%s3478_s0 + $0xc0] sm:$0xff] }
 0x600   :  { %2393 = vmatpush1.bf16.msra.mxu0 %v3057_v6  ;;  %2425 = vmatpush1.bf16.msra.mxu1 %v3066_v14 }
 0x601   :  { %2395 = vmatprep.subr.bf16.mxu0 %v3080_v23  ;;  %2427 = vmatprep.subr.bf16.mxu1 %v3091_v35  ;;  %v1930_v23 = vld [vmem:[%s3478_s0 + $0xd0] sm:$0xff] }
 0x604   :  { %2397 = vmatpush1.bf16.msra.mxu0 %v3093_v37  ;;  %2429 = vmatpush1.bf16.msra.mxu1 %v3102_v16 }
 0x605   :  { %2399 = vmatprep.subr.bf16.mxu0 %v3116_v30  ;;  %2431 = vmatprep.subr.bf16.mxu1 %v3127_v44  ;;  %v1931_v44 = vld [vmem:[%s3478_s0 + $0xd8] sm:$0xff] }
 0x608   :  { %2401 = vmatpush1.bf16.msra.mxu0 %v3129_v46  ;;  %2433 = vmatpush1.bf16.msra.mxu1 %v3138_v57 }
 0x609   :  { %2403 = vmatprep.subr.bf16.mxu0 %v3152_v7  ;;  %2435 = vmatprep.subr.bf16.mxu1 %v3163_v25 }
 0x60c   :  { %2405 = vmatpush1.bf16.msra.mxu0 %v3165_v27  ;;  %2437 = vmatpush1.bf16.msra.mxu1 %v3174_v41 }
 0x60d   :  { %2407 = vmatprep.subr.bf16.mxu0 %v3188_v38  ;;  %2439 = vmatprep.subr.bf16.mxu1 %v3199_v52 }
 0x610   :  { %2409 = vmatpush1.bf16.msra.mxu0 %v3201_v55  ;;  %2441 = vmatpush1.bf16.msra.mxu1 %v3210_v17 }
 0x611   :  { %2411 = vmatprep.subr.bf16.mxu0 %v3224_v2  ;;  %2443 = vmatprep.subr.bf16.mxu1 %v3235_v20 }
 0x614   :  { %2413 = vmatpush1.bf16.msra.mxu0 %v3237_v21  ;;  %2445 = vmatpush1.bf16.msra.mxu1 %v3246_v33 }
 0x615   :  { %2415 = vmatprep.subr.bf16.mxu0 %v3260_v22  ;;  %2447 = vmatprep.subr.bf16.mxu1 %v3271_v39 }
 0x618   :  { %2417 = vmatpush1.bf16.msra.mxu0 %v3273_v48  ;;  %2449 = vmatpush1.bf16.msra.mxu1 %v3282_v60  ;;  %v1933_v60 = vld [vmem:[%s3478_s0 + $0xe0] sm:$0xff] }
 0x6ce   :  { %v1557_v4 = vpop.f32.mrb[12].mxu0  ;;  %v1628_v62 = vpop.f32.mrb[12].mxu1 }
 0x6cf   :  { %v1635_v5 = vadd.f32 %v1928_v3, %v1557_v4  ;;  %v1559_v6 = vpop.f32.mrb[13].mxu0  ;;  %v1630_v14 = vpop.f32.mrb[13].mxu1  ;;  %v1647_v30 = vadd.f32 %v1930_v23, %v1628_v62 }
 0x6d0   :  { %v1641_v35 = vadd.f32 %v1929_v54, %v1559_v6  ;;  %v1650_v46 = vadd.f32 %v1931_v44, %v1630_v14 }
 0x6d1   :  { %v1636_v37 = vmul.f32 0.5, %v1635_v5 }
 0x6d2   :  { %v1642_v16 = vmul.f32 0.5, %v1641_v35  ;;  %v1651_v57 = vmul.f32 0.5, %v1650_v46 }
 0x6d3   :  { %2511 = vtanh.f32 %v1636_v37 }
 0x6d4   :  { %2513 = vtanh.f32 %v1642_v16 }
 0x6d5   :  { %2515 = vtanh.f32 %v1647_v30 }
 0x6d6   :  { %2517 = vtanh.f32 %v1651_v57 }
 0x6dd   :  { %v2512_v7 = vpop.eup %2511 }
 0x6de   :  { %v2514_v25 = vpop.eup %2513  ;;  %v1638_v27 = vmul.f32 0.5, %v2512_v7 }
 0x6df   :  { %v1644_v41 = vmul.f32 0.5, %v2514_v25  ;;  %v2516_v52 = vpop.eup %2515 }
 0x6e0   :  { %v1639_v38 = vadd.f32 0.5, %v1638_v27  ;;  %v2518_v21 = vpop.eup %2517 }
 0x6e1   :  { %v1645_v55 = vadd.f32 0.5, %v1644_v41  ;;  %v1653_v33 = vmul.f32 0.5, %v2518_v21 }
 0x6e2   :  { %v1656_v17 = vmul.f32 %v2516_v52, %v1639_v38 }
 0x6e3   :  { %v1655_v2 = vmul.f32 %v1645_v55, %v3408_v24  ;;  %v1654_v22 = vadd.f32 0.5, %v1653_v33 }
 0x6e5   :  { %v1657_v20 = vadd.f32 %v1656_v17, %v1655_v2 }
 0x6e7   :  { %2519 = vtanh.f32 %v1657_v20 }
 0x6f1   :  { %v2520_v39 = vpop.eup %2519 }
 0x6f2   :  { %v1659_v48 = vmul.f32 %v2520_v39, %v1654_v22 }
 0x6f4   :  { %1932 = vst [vmem:[%s3479_s2 + $0x30] sm:$0xff] %v1659_v48  ;;  %1791 = vmatmul.mubr.f32.vlgmr.msra.gmra.mrb[14].mxu0 %v1659_v48  ;;  %1862 = vmatmul.mubr.f32.vlgmr.msra.gmra.mrb[14].mxu1 %v1659_v48 }
 0x7c7   :  { %v1792_v51 = vpop.f32.mrb[14].mxu0  ;;  %v1863_v58 = vpop.f32.mrb[14].mxu1 }
 0x7c8   :  { %v1870_v18 = vadd.f32 %v1933_v60, %v1792_v51  ;;  %v1794_v29 = vpop.f32.mrb[15].mxu0  ;;  %v1865_v63 = vpop.f32.mrb[15].mxu1  ;;  %v1882_v40 = vadd.f32 %v1935_v10, %v1863_v58 }
 0x7c9   :  { %v1876_v12 = vadd.f32 %v1934_v9, %v1794_v29  ;;  %v1885_v42 = vadd.f32 %v1936_v45, %v1865_v63 }
 0x7ca   :  { %v1871_v15 = vmul.f32 0.5, %v1870_v18 }
 0x7cb   :  { %v1877_v34 = vmul.f32 0.5, %v1876_v12  ;;  %v1886_v53 = vmul.f32 0.5, %v1885_v42 }
 0x7cc   :  { %2521 = vtanh.f32 %v1871_v15 }
 0x7cd   :  { %2523 = vtanh.f32 %v1877_v34 }
 0x7ce   :  { %2525 = vtanh.f32 %v1882_v40 }
 0x7cf   :  { %2527 = vtanh.f32 %v1886_v53 }
 0x7d6   :  { %v2522_v47 = vpop.eup %2521 }
 0x7d7   :  { %v2524_v31 = vpop.eup %2523  ;;  %v1873_v43 = vmul.f32 0.5, %v2522_v47 }
 0x7d8   :  { %v1879_v49 = vmul.f32 0.5, %v2524_v31  ;;  %v2526_v56 = vpop.eup %2525 }
 0x7d9   :  { %v1874_v50 = vadd.f32 0.5, %v1873_v43  ;;  %v2528_v11 = vpop.eup %2527 }
 0x7da   :  { %v1880_v59 = vadd.f32 0.5, %v1879_v49  ;;  %v1888_v13 = vmul.f32 0.5, %v2528_v11 }
 0x7db   :  { %v1891_v61 = vmul.f32 %v2526_v56, %v1874_v50 }
 0x7dc   :  { %v1890_v0 = vmul.f32 %v1880_v59, %v1657_v20  ;;  %v1889_v19 = vadd.f32 0.5, %v1888_v13 }
 0x7de   :  { %v1892_v1 = vadd.f32 %v1891_v61, %v1890_v0 }
 0x7e0   :  { %2529 = vtanh.f32 %v1892_v1 }
 0x7ea   :  { %v2530_v24 = vpop.eup %2529 }
 0x7eb   :  { %v1894_v28 = vmul.f32 %v2530_v24, %v1889_v19 }
 0x7ed   :  { %1937 = vst [vmem:[%s3479_s2 + $0x38] sm:$0xff] %v1894_v28 }

// kernel: lstm_model_forward.3
= control target key start
LH: loop header
LB: loop body
LE: loop exit
PB: predicated region body
PF: predicated region fallthrough
CT: control target
= control target key end

     0   :  { %v2539_v3 = vmov 0.0   ;;  %s3485_s1 = inlined_call_operand.vmem [shape: f32[128,512], index: 1, kind: input, shape index: {}]   ;;  %s3486_s0 = inlined_call_operand.vmem [shape: f32[8,8,512], index: 0, kind: input, shape index: {}]   ;;  %s3487_s2 = inlined_call_operand.vmem [shape: f32[8,8,128], index: 2, kind: output, shape index: {}]  }
   0x1   :  { %v20_v0 = vld [vmem:[%s3485_s1 + $0x8] sm:$0xff]  ;;  %v19_v2 = vld [vmem:[%s3485_s1] sm:$0xff]  ;;  %147 = vmatprep.mubr.f32.mxu0 %v2539_v3  ;;  %218 = vmatprep.mubr.f32.mxu1 %v2539_v3  ;;  %v22_v12 = vld [vmem:[%s3485_s1 + $0x18] sm:$0xff] }
   0x2   :  { %v24_v1 = vld [vmem:[%s3485_s1 + $0x28] sm:$0xff]  ;;  %v23_v5 = vld [vmem:[%s3485_s1 + $0x20] sm:$0xff]  ;;  %v26_v13 = vld [vmem:[%s3485_s1 + $0x38] sm:$0xff] }
   0x3   :  { %v2566_v4 = vpack.c.bf16 %v24_v1, %v20_v0  ;;  %v28_v6 = vld [vmem:[%s3485_s1 + $0x48] sm:$0xff]  ;;  %v2577_v8 = vpack.c.bf16 %v23_v5, %v19_v2  ;;  %v27_v10 = vld [vmem:[%s3485_s1 + $0x40] sm:$0xff]  ;;  %v21_v14 = vld [vmem:[%s3485_s1 + $0x10] sm:$0xff]  ;;  %v2603_v17 = vpack.c.bf16 %v26_v13, %v22_v12 }
   0x4   :  { %v32_v7 = vld [vmem:[%s3485_s1 + $0x68] sm:$0xff]  ;;  %v31_v11 = vld [vmem:[%s3485_s1 + $0x60] sm:$0xff]  ;;  %v25_v15 = vld [vmem:[%s3485_s1 + $0x30] sm:$0xff] }
   0x5   :  { %v2579_v9 = vpack.c.bf16 %v32_v7, %v28_v6  ;;  %1947 = vmatprep.subr.bf16.mxu0 %v2566_v4  ;;  %v2601_v16 = vpack.c.bf16 %v31_v11, %v27_v10  ;;  %v2605_v18 = vpack.c.bf16 %v25_v15, %v21_v14  ;;  %v36_v19 = vld [vmem:[%s3485_s1 + $0x88] sm:$0xff]  ;;  %v35_v21 = vld [vmem:[%s3485_s1 + $0x80] sm:$0xff]  ;;  %v30_v24 = vld [vmem:[%s3485_s1 + $0x58] sm:$0xff]  ;;  %1979 = vmatprep.subr.bf16.mxu1 %v2603_v17 }
   0x6   :  { %1949 = vmatpush1.bf16.msra.mxu0 %v2577_v8  ;;  %v40_v20 = vld [vmem:[%s3485_s1 + $0xa8] sm:$0xff]  ;;  %v39_v23 = vld [vmem:[%s3485_s1 + $0xa0] sm:$0xff]  ;;  %v34_v25 = vld [vmem:[%s3485_s1 + $0x78] sm:$0xff] }
   0x7   :  { %1951 = vmatprep.subr.bf16.mxu0 %v2579_v9  ;;  %v2617_v22 = vpack.c.bf16 %v40_v20, %v36_v19  ;;  %v2629_v26 = vpack.c.bf16 %v34_v25, %v30_v24  ;;  %v29_v27 = vld [vmem:[%s3485_s1 + $0x50] sm:$0xff]  ;;  %v44_v29 = vld [vmem:[%s3485_s1 + $0xc8] sm:$0xff]  ;;  %1981 = vmatpush1.bf16.msra.mxu1 %v2605_v18  ;;  %v2647_v32 = vpack.c.bf16 %v39_v23, %v35_v21  ;;  %v38_v33 = vld [vmem:[%s3485_s1 + $0x98] sm:$0xff] }
   0x8   :  { %v33_v28 = vld [vmem:[%s3485_s1 + $0x70] sm:$0xff]  ;;  %v48_v31 = vld [vmem:[%s3485_s1 + $0xe8] sm:$0xff]  ;;  %v42_v34 = vld [vmem:[%s3485_s1 + $0xb8] sm:$0xff] }
   0x9   :  { %v2641_v30 = vpack.c.bf16 %v33_v28, %v29_v27  ;;  %1983 = vmatprep.subr.bf16.mxu1 %v2629_v26  ;;  %v37_v35 = vld [vmem:[%s3485_s1 + $0x90] sm:$0xff]  ;;  %v2660_v36 = vpack.c.bf16 %v48_v31, %v44_v29  ;;  %v43_v37 = vld [vmem:[%s3485_s1 + $0xc0] sm:$0xff]  ;;  %v2668_v39 = vpack.c.bf16 %v42_v34, %v38_v33  ;;  %v52_v41 = vld [vmem:[%s3485_s1 + $0x108] sm:$0xff] }
   0xa   :  { %1953 = vmatpush1.bf16.msra.mxu0 %v2601_v16  ;;  %v47_v38 = vld [vmem:[%s3485_s1 + $0xe0] sm:$0xff]  ;;  %v41_v40 = vld [vmem:[%s3485_s1 + $0xb0] sm:$0xff]  ;;  %v56_v42 = vld [vmem:[%s3485_s1 + $0x128] sm:$0xff] }
   0xb   :  { %1955 = vmatprep.subr.bf16.mxu0 %v2617_v22  ;;  %v46_v43 = vld [vmem:[%s3485_s1 + $0xd8] sm:$0xff]  ;;  %1985 = vmatpush1.bf16.msra.mxu1 %v2641_v30  ;;  %v2683_v44 = vpack.c.bf16 %v41_v40, %v37_v35  ;;  %v2689_v46 = vpack.c.bf16 %v47_v38, %v43_v37  ;;  %v51_v47 = vld [vmem:[%s3485_s1 + $0x100] sm:$0xff]  ;;  %v45_v49 = vld [vmem:[%s3485_s1 + $0xd0] sm:$0xff]  ;;  %v2704_v51 = vpack.c.bf16 %v56_v42, %v52_v41 }
   0xc   :  { %v50_v45 = vld [vmem:[%s3485_s1 + $0xf8] sm:$0xff]  ;;  %1987 = vmatprep.subr.bf16.mxu1 %v2668_v39  ;;  %v49_v50 = vld [vmem:[%s3485_s1 + $0xf0] sm:$0xff]  ;;  %v55_v52 = vld [vmem:[%s3485_s1 + $0x120] sm:$0xff] }
   0xd   :  { %v2695_v48 = vpack.c.bf16 %v50_v45, %v46_v43  ;;  %v54_v53 = vld [vmem:[%s3485_s1 + $0x118] sm:$0xff]  ;;  %v60_v55 = vld [vmem:[%s3485_s1 + $0x148] sm:$0xff]  ;;  %v2722_v57 = vpack.c.bf16 %v49_v50, %v45_v49  ;;  %v2725_v58 = vpack.c.bf16 %v55_v52, %v51_v47  ;;  %v59_v59 = vld [vmem:[%s3485_s1 + $0x140] sm:$0xff] }
   0xe   :  { %1957 = vmatpush1.bf16.msra.mxu0 %v2647_v32  ;;  %v58_v54 = vld [vmem:[%s3485_s1 + $0x138] sm:$0xff]  ;;  %v64_v56 = vld [vmem:[%s3485_s1 + $0x168] sm:$0xff]  ;;  %v53_v61 = vld [vmem:[%s3485_s1 + $0x110] sm:$0xff] }
   0xf   :  { %1959 = vmatprep.subr.bf16.mxu0 %v2660_v36  ;;  %1989 = vmatpush1.bf16.msra.mxu1 %v2683_v44  ;;  %v2731_v60 = vpack.c.bf16 %v58_v54, %v54_v53  ;;  %v57_v62 = vld [vmem:[%s3485_s1 + $0x130] sm:$0xff]  ;;  %v2740_v63 = vpack.c.bf16 %v64_v56, %v60_v55  ;;  %v63_v0 = vld [vmem:[%s3485_s1 + $0x160] sm:$0xff]  ;;  %v62_v1 = vld [vmem:[%s3485_s1 + $0x158] sm:$0xff] }
  0x10   :  { %1991 = vmatprep.subr.bf16.mxu1 %v2695_v48  ;;  %v66_v2 = vld [vmem:[%s3485_s1 + $0x178] sm:$0xff]  ;;  %v68_v5 = vld [vmem:[%s3485_s1 + $0x188] sm:$0xff]  ;;  %v2758_v7 = vpack.c.bf16 %v57_v62, %v53_v61  ;;  %v2761_v10 = vpack.c.bf16 %v63_v0, %v59_v59  ;;  %v67_v11 = vld [vmem:[%s3485_s1 + $0x180] sm:$0xff] }
  0x11   :  { %v72_v6 = vld [vmem:[%s3485_s1 + $0x1a8] sm:$0xff]  ;;  %v2767_v12 = vpack.c.bf16 %v66_v2, %v62_v1  ;;  %v61_v13 = vld [vmem:[%s3485_s1 + $0x150] sm:$0xff]  ;;  %v71_v19 = vld [vmem:[%s3485_s1 + $0x1a0] sm:$0xff] }
  0x12   :  { %1961 = vmatpush1.bf16.msra.mxu0 %v2689_v46  ;;  %v65_v14 = vld [vmem:[%s3485_s1 + $0x170] sm:$0xff]  ;;  %v2776_v15 = vpack.c.bf16 %v72_v6, %v68_v5  ;;  %v70_v20 = vld [vmem:[%s3485_s1 + $0x198] sm:$0xff]  ;;  %v76_v23 = vld [vmem:[%s3485_s1 + $0x1c8] sm:$0xff]  ;;  %v2797_v27 = vpack.c.bf16 %v71_v19, %v67_v11 }
  0x13   :  { %1963 = vmatprep.subr.bf16.mxu0 %v2704_v51  ;;  %1993 = vmatpush1.bf16.msra.mxu1 %v2722_v57  ;;  %v74_v21 = vld [vmem:[%s3485_s1 + $0x1b8] sm:$0xff]  ;;  %v80_v24 = vld [vmem:[%s3485_s1 + $0x1e8] sm:$0xff]  ;;  %v2794_v25 = vpack.c.bf16 %v65_v14, %v61_v13  ;;  %v75_v28 = vld [vmem:[%s3485_s1 + $0x1c0] sm:$0xff] }
  0x14   :  { %1995 = vmatprep.subr.bf16.mxu1 %v2731_v60  ;;  %v2803_v29 = vpack.c.bf16 %v74_v21, %v70_v20  ;;  %v69_v31 = vld [vmem:[%s3485_s1 + $0x190] sm:$0xff]  ;;  %v2812_v34 = vpack.c.bf16 %v80_v24, %v76_v23  ;;  %v79_v35 = vld [vmem:[%s3485_s1 + $0x1e0] sm:$0xff]  ;;  %v78_v37 = vld [vmem:[%s3485_s1 + $0x1d8] sm:$0xff] }
  0x15   :  { %v73_v33 = vld [vmem:[%s3485_s1 + $0x1b0] sm:$0xff]  ;;  %v82_v38 = vld [vmem:[%s3485_s1 + $0x1f8] sm:$0xff]  ;;  %v2827_v41 = vpack.c.bf16 %v79_v35, %v75_v28  ;;  %v225_v49 = vld [vmem:[%s3486_s0] sm:$0xff] }
  0x16   :  { %1965 = vmatpush1.bf16.msra.mxu0 %v2725_v58  ;;  %v2824_v40 = vpack.c.bf16 %v73_v33, %v69_v31  ;;  %v2830_v42 = vpack.c.bf16 %v82_v38, %v78_v37  ;;  %v77_v43 = vld [vmem:[%s3485_s1 + $0x1d0] sm:$0xff]  ;;  %v231_v50 = vld [vmem:[%s3486_s0 + $0x8] sm:$0xff]  ;;  %v240_v2 = vld [vmem:[%s3486_s0 + $0x18] sm:$0xff] }
  0x17   :  { %1967 = vmatprep.subr.bf16.mxu0 %v2740_v63  ;;  %1997 = vmatpush1.bf16.msra.mxu1 %v2758_v7  ;;  %v81_v45 = vld [vmem:[%s3485_s1 + $0x1f0] sm:$0xff] }
  0x18   :  { %1999 = vmatprep.subr.bf16.mxu1 %v2767_v12  ;;  %v2840_v47 = vpack.c.bf16 %v81_v45, %v77_v43  ;;  %v237_v55 = vld [vmem:[%s3486_s0 + $0x10] sm:$0xff] }
  0x1a   :  { %1969 = vmatpush1.bf16.msra.mxu0 %v2761_v10 }
  0x1b   :  { %1971 = vmatprep.subr.bf16.mxu0 %v2776_v15  ;;  %2001 = vmatpush1.bf16.msra.mxu1 %v2794_v25 }
  0x1c   :  { %2003 = vmatprep.subr.bf16.mxu1 %v2803_v29 }
  0x1e   :  { %1973 = vmatpush1.bf16.msra.mxu0 %v2797_v27 }
  0x1f   :  { %1975 = vmatprep.subr.bf16.mxu0 %v2812_v34  ;;  %2005 = vmatpush1.bf16.msra.mxu1 %v2824_v40 }
  0x20   :  { %2007 = vmatprep.subr.bf16.mxu1 %v2830_v42 }
  0x22   :  { %1977 = vmatpush1.bf16.msra.mxu0 %v2827_v41 }
  0x23   :  { %2011 = vmatprep.subr.bf16.mxu0 %v2566_v4  ;;  %2009 = vmatpush1.bf16.msra.mxu1 %v2840_v47 }
  0x24   :  { %2043 = vmatprep.subr.bf16.mxu1 %v2603_v17 }
  0x25   :  { %148 = vmatmul.mubr.f32.vlgmr.msra.gmra.mrb[0].mxu0 %v2539_v3 }
  0x26   :  { %2013 = vmatpush1.bf16.msra.mxu0 %v2577_v8  ;;  %381 = vmatprep.mubr.f32.mxu0 %v2539_v3 }
  0x27   :  { %2015 = vmatprep.subr.bf16.mxu0 %v2579_v9  ;;  %219 = vmatmul.mubr.f32.vlgmr.msra.gmra.mrb[0].mxu1 %v2539_v3 }
  0x28   :  { %2045 = vmatpush1.bf16.msra.mxu1 %v2605_v18  ;;  %452 = vmatprep.mubr.f32.mxu1 %v2539_v3 }
  0x29   :  { %2047 = vmatprep.subr.bf16.mxu1 %v2629_v26 }
  0x2a   :  { %2017 = vmatpush1.bf16.msra.mxu0 %v2601_v16 }
  0x2b   :  { %2019 = vmatprep.subr.bf16.mxu0 %v2617_v22 }
  0x2c   :  { %2049 = vmatpush1.bf16.msra.mxu1 %v2641_v30 }
  0x2d   :  { %2051 = vmatprep.subr.bf16.mxu1 %v2668_v39 }
  0x2e   :  { %2021 = vmatpush1.bf16.msra.mxu0 %v2647_v32 }
  0x2f   :  { %2023 = vmatprep.subr.bf16.mxu0 %v2660_v36 }
  0x30   :  { %2053 = vmatpush1.bf16.msra.mxu1 %v2683_v44 }
  0x31   :  { %2055 = vmatprep.subr.bf16.mxu1 %v2695_v48 }
  0x32   :  { %2025 = vmatpush1.bf16.msra.mxu0 %v2689_v46 }
  0x33   :  { %2027 = vmatprep.subr.bf16.mxu0 %v2704_v51 }
  0x34   :  { %2057 = vmatpush1.bf16.msra.mxu1 %v2722_v57 }
  0x35   :  { %2059 = vmatprep.subr.bf16.mxu1 %v2731_v60 }
  0x36   :  { %2029 = vmatpush1.bf16.msra.mxu0 %v2725_v58 }
  0x37   :  { %2031 = vmatprep.subr.bf16.mxu0 %v2740_v63 }
  0x38   :  { %2061 = vmatpush1.bf16.msra.mxu1 %v2758_v7 }
  0x39   :  { %2063 = vmatprep.subr.bf16.mxu1 %v2767_v12 }
  0x3a   :  { %2033 = vmatpush1.bf16.msra.mxu0 %v2761_v10 }
  0x3b   :  { %2035 = vmatprep.subr.bf16.mxu0 %v2776_v15 }
  0x3c   :  { %2065 = vmatpush1.bf16.msra.mxu1 %v2794_v25 }
  0x3d   :  { %2067 = vmatprep.subr.bf16.mxu1 %v2803_v29 }
  0x3e   :  { %2037 = vmatpush1.bf16.msra.mxu0 %v2797_v27 }
  0x3f   :  { %2039 = vmatprep.subr.bf16.mxu0 %v2812_v34 }
  0x40   :  { %2069 = vmatpush1.bf16.msra.mxu1 %v2824_v40 }
  0x41   :  { %2071 = vmatprep.subr.bf16.mxu1 %v2830_v42 }
  0x42   :  { %2041 = vmatpush1.bf16.msra.mxu0 %v2827_v41 }
  0x43   :  { %2075 = vmatprep.subr.bf16.mxu0 %v2566_v4 }
  0x44   :  { %2073 = vmatpush1.bf16.msra.mxu1 %v2840_v47 }
  0x45   :  { %2107 = vmatprep.subr.bf16.mxu1 %v2603_v17 }
  0xf8   :  { %v149_v52 = vpop.f32.mrb[0].mxu0 }
  0xf9   :  { %v226_v53 = vadd.f32 %v225_v49, %v149_v52  ;;  %v151_v54 = vpop.f32.mrb[1].mxu0  ;;  %v1911_v49 = vld [vmem:[%s3486_s0 + $0x20] sm:$0xff] }
  0xfa   :  { %v232_v56 = vadd.f32 %v231_v50, %v151_v54  ;;  %v220_v61 = vpop.f32.mrb[0].mxu1  ;;  %v1912_v50 = vld [vmem:[%s3486_s0 + $0x28] sm:$0xff] }
  0xfb   :  { %v227_v59 = vmul.f32 0.5, %v226_v53  ;;  %v238_v0 = vadd.f32 %v237_v55, %v220_v61  ;;  %v222_v1 = vpop.f32.mrb[1].mxu1 }
  0xfc   :  { %v233_v62 = vmul.f32 0.5, %v232_v56  ;;  %v241_v5 = vadd.f32 %v240_v2, %v222_v1 }
  0xfd   :  { %2459 = vtanh.f32 %v227_v59  ;;  %v1913_v59 = vld [vmem:[%s3486_s0 + $0x30] sm:$0xff] }
  0xfe   :  { %2461 = vtanh.f32 %v233_v62  ;;  %v242_v6 = vmul.f32 0.5, %v241_v5 }
  0xff   :  { %2463 = vtanh.f32 %v238_v0  ;;  %v1914_v0 = vld [vmem:[%s3486_s0 + $0x38] sm:$0xff] }
 0x100   :  { %2465 = vtanh.f32 %v242_v6 }
 0x107   :  { %v2460_v11 = vpop.eup %2459 }
 0x108   :  { %v2462_v13 = vpop.eup %2461  ;;  %v229_v14 = vmul.f32 0.5, %v2460_v11 }
 0x109   :  { %v2464_v19 = vpop.eup %2463  ;;  %v235_v20 = vmul.f32 0.5, %v2462_v13 }
 0x10a   :  { %v230_v21 = vadd.f32 0.5, %v229_v14  ;;  %v2466_v33 = vpop.eup %2465 }
 0x10b   :  { %v236_v23 = vadd.f32 0.5, %v235_v20  ;;  %v244_v35 = vmul.f32 0.5, %v2466_v33 }
 0x10c   :  { %v247_v24 = vmul.f32 %v2464_v19, %v230_v21 }
 0x10d   :  { %v246_v28 = vmul.f32 0.0, %v236_v23  ;;  %v245_v37 = vadd.f32 0.5, %v244_v35 }
 0x10f   :  { %v2895_v31 = vadd.f32 %v247_v24, %v246_v28 }
 0x111   :  { %2467 = vtanh.f32 %v2895_v31 }
 0x11b   :  { %v2468_v38 = vpop.eup %2467 }
 0x11c   :  { %v250_v43 = vmul.f32 %v2468_v38, %v245_v37 }
 0x11e   :  { %v251_v45 = vmax.f32 %v250_v43, 0.0  ;;  %382 = vmatmul.mubr.f32.vlgmr.msra.gmra.mrb[2].mxu0 %v250_v43  ;;  %453 = vmatmul.mubr.f32.vlgmr.msra.gmra.mrb[2].mxu1 %v250_v43 }
 0x11f   :  { %2077 = vmatpush1.bf16.msra.mxu0 %v2577_v8  ;;  %2109 = vmatpush1.bf16.msra.mxu1 %v2605_v18 }
 0x120   :  { %252 = vst [vmem:[%s3487_s2] sm:$0xff] %v251_v45  ;;  %2079 = vmatprep.subr.bf16.mxu0 %v2579_v9  ;;  %2111 = vmatprep.subr.bf16.mxu1 %v2629_v26  ;;  %v962_v45 = vld [vmem:[%s3485_s1 + $0x8] sm:$0xff] }
 0x121   :  { %617 = vmatprep.mubr.f32.mxu0 %v2539_v3  ;;  %688 = vmatprep.mubr.f32.mxu1 %v2539_v3 }
 0x123   :  { %2081 = vmatpush1.bf16.msra.mxu0 %v2601_v16  ;;  %2113 = vmatpush1.bf16.msra.mxu1 %v2641_v30 }
 0x124   :  { %2083 = vmatprep.subr.bf16.mxu0 %v2617_v22  ;;  %2115 = vmatprep.subr.bf16.mxu1 %v2668_v39 }
 0x127   :  { %2085 = vmatpush1.bf16.msra.mxu0 %v2647_v32  ;;  %2117 = vmatpush1.bf16.msra.mxu1 %v2683_v44 }
 0x128   :  { %2087 = vmatprep.subr.bf16.mxu0 %v2660_v36  ;;  %2119 = vmatprep.subr.bf16.mxu1 %v2695_v48 }
 0x12b   :  { %2089 = vmatpush1.bf16.msra.mxu0 %v2689_v46  ;;  %2121 = vmatpush1.bf16.msra.mxu1 %v2722_v57 }
 0x12c   :  { %2091 = vmatprep.subr.bf16.mxu0 %v2704_v51  ;;  %2123 = vmatprep.subr.bf16.mxu1 %v2731_v60 }
 0x12f   :  { %2093 = vmatpush1.bf16.msra.mxu0 %v2725_v58  ;;  %2125 = vmatpush1.bf16.msra.mxu1 %v2758_v7 }
 0x130   :  { %2095 = vmatprep.subr.bf16.mxu0 %v2740_v63  ;;  %2127 = vmatprep.subr.bf16.mxu1 %v2767_v12 }
 0x133   :  { %2097 = vmatpush1.bf16.msra.mxu0 %v2761_v10  ;;  %2129 = vmatpush1.bf16.msra.mxu1 %v2794_v25 }
 0x134   :  { %2099 = vmatprep.subr.bf16.mxu0 %v2776_v15  ;;  %2131 = vmatprep.subr.bf16.mxu1 %v2803_v29 }
 0x137   :  { %2101 = vmatpush1.bf16.msra.mxu0 %v2797_v27  ;;  %2133 = vmatpush1.bf16.msra.mxu1 %v2824_v40 }
 0x138   :  { %2103 = vmatprep.subr.bf16.mxu0 %v2812_v34  ;;  %2135 = vmatprep.subr.bf16.mxu1 %v2830_v42 }
 0x13b   :  { %2105 = vmatpush1.bf16.msra.mxu0 %v2827_v41  ;;  %2137 = vmatpush1.bf16.msra.mxu1 %v2840_v47 }
 0x13c   :  { %2139 = vmatprep.subr.bf16.mxu0 %v2566_v4  ;;  %2171 = vmatprep.subr.bf16.mxu1 %v2603_v17 }
 0x1f1   :  { %v383_v52 = vpop.f32.mrb[2].mxu0  ;;  %v454_v53 = vpop.f32.mrb[2].mxu1 }
 0x1f2   :  { %v461_v54 = vadd.f32 %v1911_v49, %v383_v52  ;;  %v385_v55 = vpop.f32.mrb[3].mxu0  ;;  %v456_v56 = vpop.f32.mrb[3].mxu1  ;;  %v473_v62 = vadd.f32 %v1913_v59, %v454_v53  ;;  %v966_v49 = vld [vmem:[%s3485_s1 + $0x28] sm:$0xff]  ;;  %v968_v53 = vld [vmem:[%s3485_s1 + $0x38] sm:$0xff] }
 0x1f3   :  { %v467_v4 = vadd.f32 %v1912_v50, %v385_v55  ;;  %v476_v1 = vadd.f32 %v1914_v0, %v456_v56  ;;  %v964_v50 = vld [vmem:[%s3485_s1 + $0x18] sm:$0xff]  ;;  %v3016_v52 = vpack.c.bf16 %v966_v49, %v962_v45  ;;  %v965_v55 = vld [vmem:[%s3485_s1 + $0x20] sm:$0xff]  ;;  %v974_v0 = vld [vmem:[%s3485_s1 + $0x68] sm:$0xff] }
 0x1f4   :  { %v462_v61 = vmul.f32 0.5, %v461_v54  ;;  %v961_v54 = vld [vmem:[%s3485_s1] sm:$0xff]  ;;  %v3027_v56 = vpack.c.bf16 %v968_v53, %v964_v50  ;;  %v1004_v45 = vld [vmem:[%s3485_s1 + $0x158] sm:$0xff] }
 0x1f5   :  { %v468_v17 = vmul.f32 0.5, %v467_v4  ;;  %v477_v2 = vmul.f32 0.5, %v476_v1  ;;  %v3029_v59 = vpack.c.bf16 %v965_v55, %v961_v54  ;;  %v963_v4 = vld [vmem:[%s3485_s1 + $0x10] sm:$0xff]  ;;  %v972_v1 = vld [vmem:[%s3485_s1 + $0x58] sm:$0xff]  ;;  %v1001_v53 = vld [vmem:[%s3485_s1 + $0x140] sm:$0xff] }
 0x1f6   :  { %2469 = vtanh.f32 %v462_v61  ;;  %v967_v61 = vld [vmem:[%s3485_s1 + $0x30] sm:$0xff]  ;;  %v1008_v50 = vld [vmem:[%s3485_s1 + $0x178] sm:$0xff]  ;;  %v1005_v54 = vld [vmem:[%s3485_s1 + $0x160] sm:$0xff] }
 0x1f7   :  { %2471 = vtanh.f32 %v468_v17  ;;  %v3038_v17 = vpack.c.bf16 %v967_v61, %v963_v4  ;;  %v3207_v55 = vpack.c.bf16 %v1008_v50, %v1004_v45  ;;  %v3209_v4 = vpack.c.bf16 %v1005_v54, %v1001_v53  ;;  %v1003_v61 = vld [vmem:[%s3485_s1 + $0x150] sm:$0xff] }
 0x1f8   :  { %2473 = vtanh.f32 %v473_v62  ;;  %v970_v62 = vld [vmem:[%s3485_s1 + $0x48] sm:$0xff] }
 0x1f9   :  { %2475 = vtanh.f32 %v477_v2  ;;  %v3052_v2 = vpack.c.bf16 %v974_v0, %v970_v62  ;;  %v1007_v62 = vld [vmem:[%s3485_s1 + $0x170] sm:$0xff] }
 0x1fa   :  { %v3218_v0 = vpack.c.bf16 %v1007_v62, %v1003_v61  ;;  %v1924_v61 = vld [vmem:[%s3486_s0 + $0x78] sm:$0xff] }
 0x200   :  { %v2470_v5 = vpop.eup %2469 }
 0x201   :  { %v2472_v6 = vpop.eup %2471  ;;  %v464_v11 = vmul.f32 0.5, %v2470_v5  ;;  %v976_v5 = vld [vmem:[%s3485_s1 + $0x78] sm:$0xff] }
 0x202   :  { %v470_v13 = vmul.f32 0.5, %v2472_v6  ;;  %v2474_v19 = vpop.eup %2473  ;;  %v969_v6 = vld [vmem:[%s3485_s1 + $0x40] sm:$0xff] }
 0x203   :  { %v465_v14 = vadd.f32 0.5, %v464_v11  ;;  %v2476_v28 = vpop.eup %2475  ;;  %v973_v11 = vld [vmem:[%s3485_s1 + $0x60] sm:$0xff] }
 0x204   :  { %v471_v20 = vadd.f32 0.5, %v470_v13  ;;  %v479_v33 = vmul.f32 0.5, %v2476_v28  ;;  %v3063_v13 = vpack.c.bf16 %v976_v5, %v972_v1  ;;  %v980_v28 = vld [vmem:[%s3485_s1 + $0x98] sm:$0xff]  ;;  %v1010_v1 = vld [vmem:[%s3485_s1 + $0x188] sm:$0xff] }
 0x205   :  { %v482_v21 = vmul.f32 %v2474_v19, %v465_v14  ;;  %v3065_v14 = vpack.c.bf16 %v973_v11, %v969_v6  ;;  %v971_v19 = vld [vmem:[%s3485_s1 + $0x50] sm:$0xff]  ;;  %v1014_v5 = vld [vmem:[%s3485_s1 + $0x1a8] sm:$0xff]  ;;  %v1012_v6 = vld [vmem:[%s3485_s1 + $0x198] sm:$0xff] }
 0x206   :  { %v481_v23 = vmul.f32 %v471_v20, %v2895_v31  ;;  %v480_v35 = vadd.f32 0.5, %v479_v33  ;;  %v975_v20 = vld [vmem:[%s3485_s1 + $0x70] sm:$0xff]  ;;  %v3232_v11 = vpack.c.bf16 %v1014_v5, %v1010_v1 }
 0x208   :  { %v2948_v24 = vadd.f32 %v482_v21, %v481_v23  ;;  %v3074_v21 = vpack.c.bf16 %v975_v20, %v971_v19  ;;  %v978_v23 = vld [vmem:[%s3485_s1 + $0x88] sm:$0xff]  ;;  %v1016_v19 = vld [vmem:[%s3485_s1 + $0x1b8] sm:$0xff]  ;;  %v1009_v20 = vld [vmem:[%s3485_s1 + $0x180] sm:$0xff] }
 0x20a   :  { %2477 = vtanh.f32 %v2948_v24 }
 0x214   :  { %v2478_v37 = vpop.eup %2477 }
 0x215   :  { %v485_v38 = vmul.f32 %v2478_v37, %v480_v35  ;;  %v984_v35 = vld [vmem:[%s3485_s1 + $0xb8] sm:$0xff]  ;;  %v977_v37 = vld [vmem:[%s3485_s1 + $0x80] sm:$0xff] }
 0x217   :  { %v486_v43 = vmax.f32 %v485_v38, 0.0  ;;  %618 = vmatmul.mubr.f32.vlgmr.msra.gmra.mrb[4].mxu0 %v485_v38  ;;  %689 = vmatmul.mubr.f32.vlgmr.msra.gmra.mrb[4].mxu1 %v485_v38  ;;  %v981_v38 = vld [vmem:[%s3485_s1 + $0xa0] sm:$0xff] }
 0x218   :  { %2141 = vmatpush1.bf16.msra.mxu0 %v2577_v8  ;;  %2173 = vmatpush1.bf16.msra.mxu1 %v2605_v18  ;;  %v1916_v8 = vld [vmem:[%s3486_s0 + $0x40] sm:$0xff] }
 0x219   :  { %1915 = vst [vmem:[%s3487_s2 + $0x8] sm:$0xff] %v486_v43  ;;  %2143 = vmatprep.subr.bf16.mxu0 %v2579_v9  ;;  %2175 = vmatprep.subr.bf16.mxu1 %v2629_v26  ;;  %v1917_v9 = vld [vmem:[%s3486_s0 + $0x48] sm:$0xff]  ;;  %v3099_v43 = vpack.c.bf16 %v984_v35, %v980_v28  ;;  %v1011_v35 = vld [vmem:[%s3485_s1 + $0x190] sm:$0xff] }
 0x21a   :  { %853 = vmatprep.mubr.f32.mxu0 %v2539_v3  ;;  %924 = vmatprep.mubr.f32.mxu1 %v2539_v3 }
 0x21c   :  { %2145 = vmatpush1.bf16.msra.mxu0 %v2601_v16  ;;  %2177 = vmatpush1.bf16.msra.mxu1 %v2641_v30 }
 0x21d   :  { %2147 = vmatprep.subr.bf16.mxu0 %v2617_v22  ;;  %2179 = vmatprep.subr.bf16.mxu1 %v2668_v39 }
 0x220   :  { %2149 = vmatpush1.bf16.msra.mxu0 %v2647_v32  ;;  %2181 = vmatpush1.bf16.msra.mxu1 %v2683_v44  ;;  %v1918_v32 = vld [vmem:[%s3486_s0 + $0x50] sm:$0xff] }
 0x221   :  { %2151 = vmatprep.subr.bf16.mxu0 %v2660_v36  ;;  %2183 = vmatprep.subr.bf16.mxu1 %v2695_v48  ;;  %v1919_v48 = vld [vmem:[%s3486_s0 + $0x58] sm:$0xff] }
 0x224   :  { %2153 = vmatpush1.bf16.msra.mxu0 %v2689_v46  ;;  %2185 = vmatpush1.bf16.msra.mxu1 %v2722_v57 }
 0x225   :  { %2155 = vmatprep.subr.bf16.mxu0 %v2704_v51  ;;  %2187 = vmatprep.subr.bf16.mxu1 %v2731_v60 }
 0x228   :  { %2157 = vmatpush1.bf16.msra.mxu0 %v2725_v58  ;;  %2189 = vmatpush1.bf16.msra.mxu1 %v2758_v7 }
 0x229   :  { %2159 = vmatprep.subr.bf16.mxu0 %v2740_v63  ;;  %2191 = vmatprep.subr.bf16.mxu1 %v2767_v12 }
 0x22c   :  { %2161 = vmatpush1.bf16.msra.mxu0 %v2761_v10  ;;  %2193 = vmatpush1.bf16.msra.mxu1 %v2794_v25 }
 0x22d   :  { %2163 = vmatprep.subr.bf16.mxu0 %v2776_v15  ;;  %2195 = vmatprep.subr.bf16.mxu1 %v2803_v29 }
 0x230   :  { %2165 = vmatpush1.bf16.msra.mxu0 %v2797_v27  ;;  %2197 = vmatpush1.bf16.msra.mxu1 %v2824_v40 }
 0x231   :  { %2167 = vmatprep.subr.bf16.mxu0 %v2812_v34  ;;  %2199 = vmatprep.subr.bf16.mxu1 %v2830_v42 }
 0x234   :  { %2169 = vmatpush1.bf16.msra.mxu0 %v2827_v41  ;;  %2201 = vmatpush1.bf16.msra.mxu1 %v2840_v47 }
 0x235   :  { %2203 = vmatprep.subr.bf16.mxu0 %v3016_v52  ;;  %2235 = vmatprep.subr.bf16.mxu1 %v3027_v56 }
 0x2ea   :  { %v619_v16 = vpop.f32.mrb[4].mxu0  ;;  %v690_v18 = vpop.f32.mrb[4].mxu1 }
 0x2eb   :  { %v697_v22 = vadd.f32 %v1916_v8, %v619_v16  ;;  %v621_v26 = vpop.f32.mrb[5].mxu0  ;;  %v692_v30 = vpop.f32.mrb[5].mxu1  ;;  %v709_v46 = vadd.f32 %v1918_v32, %v690_v18  ;;  %v3101_v8 = vpack.c.bf16 %v981_v38, %v977_v37  ;;  %v983_v16 = vld [vmem:[%s3485_s1 + $0xb0] sm:$0xff] }
 0x2ec   :  { %v703_v36 = vadd.f32 %v1917_v9, %v621_v26  ;;  %v712_v51 = vadd.f32 %v1919_v48, %v692_v30  ;;  %v979_v9 = vld [vmem:[%s3485_s1 + $0x90] sm:$0xff]  ;;  %v990_v26 = vld [vmem:[%s3485_s1 + $0xe8] sm:$0xff]  ;;  %v988_v30 = vld [vmem:[%s3485_s1 + $0xd8] sm:$0xff] }
 0x2ed   :  { %v698_v39 = vmul.f32 0.5, %v697_v22  ;;  %v3110_v18 = vpack.c.bf16 %v983_v16, %v979_v9  ;;  %v986_v22 = vld [vmem:[%s3485_s1 + $0xc8] sm:$0xff]  ;;  %v1015_v37 = vld [vmem:[%s3485_s1 + $0x1b0] sm:$0xff] }
 0x2ee   :  { %v704_v44 = vmul.f32 0.5, %v703_v36  ;;  %v713_v57 = vmul.f32 0.5, %v712_v51  ;;  %v3124_v32 = vpack.c.bf16 %v990_v26, %v986_v22  ;;  %v992_v36 = vld [vmem:[%s3485_s1 + $0xf8] sm:$0xff]  ;;  %v987_v51 = vld [vmem:[%s3485_s1 + $0xd0] sm:$0xff]  ;;  %v3254_v38 = vpack.c.bf16 %v1015_v37, %v1011_v35  ;;  %v1018_v9 = vld [vmem:[%s3485_s1 + $0x1c8] sm:$0xff] }
 0x2ef   :  { %2479 = vtanh.f32 %v698_v39  ;;  %v985_v39 = vld [vmem:[%s3485_s1 + $0xc0] sm:$0xff]  ;;  %v1022_v16 = vld [vmem:[%s3485_s1 + $0x1e8] sm:$0xff]  ;;  %v1020_v22 = vld [vmem:[%s3485_s1 + $0x1d8] sm:$0xff] }
 0x2f0   :  { %2481 = vtanh.f32 %v704_v44  ;;  %v989_v44 = vld [vmem:[%s3485_s1 + $0xe0] sm:$0xff]  ;;  %v3268_v26 = vpack.c.bf16 %v1022_v16, %v1018_v9 }
 0x2f1   :  { %2483 = vtanh.f32 %v709_v46  ;;  %v3135_v46 = vpack.c.bf16 %v992_v36, %v988_v30  ;;  %v3137_v48 = vpack.c.bf16 %v989_v44, %v985_v39  ;;  %v1024_v30 = vld [vmem:[%s3485_s1 + $0x1f8] sm:$0xff]  ;;  %v1017_v36 = vld [vmem:[%s3485_s1 + $0x1c0] sm:$0xff] }
 0x2f2   :  { %2485 = vtanh.f32 %v713_v57  ;;  %v991_v57 = vld [vmem:[%s3485_s1 + $0xf0] sm:$0xff]  ;;  %v1021_v39 = vld [vmem:[%s3485_s1 + $0x1e0] sm:$0xff]  ;;  %v3279_v44 = vpack.c.bf16 %v1024_v30, %v1020_v22 }
 0x2f9   :  { %v2480_v58 = vpop.eup %2479 }
 0x2fa   :  { %v2482_v60 = vpop.eup %2481  ;;  %v700_v63 = vmul.f32 0.5, %v2480_v58  ;;  %v3146_v58 = vpack.c.bf16 %v991_v57, %v987_v51  ;;  %v3281_v51 = vpack.c.bf16 %v1021_v39, %v1017_v36  ;;  %v1019_v57 = vld [vmem:[%s3485_s1 + $0x1d0] sm:$0xff] }
 0x2fb   :  { %v706_v7 = vmul.f32 0.5, %v2482_v60  ;;  %v2484_v12 = vpop.eup %2483  ;;  %v994_v60 = vld [vmem:[%s3485_s1 + $0x108] sm:$0xff] }
 0x2fc   :  { %v701_v10 = vadd.f32 0.5, %v700_v63  ;;  %v2486_v34 = vpop.eup %2485  ;;  %v998_v63 = vld [vmem:[%s3485_s1 + $0x128] sm:$0xff] }
 0x2fd   :  { %v707_v15 = vadd.f32 0.5, %v706_v7  ;;  %v715_v40 = vmul.f32 0.5, %v2486_v34  ;;  %v996_v7 = vld [vmem:[%s3485_s1 + $0x118] sm:$0xff] }
 0x2fe   :  { %v718_v25 = vmul.f32 %v2484_v12, %v701_v10  ;;  %v3160_v10 = vpack.c.bf16 %v998_v63, %v994_v60  ;;  %v1000_v12 = vld [vmem:[%s3485_s1 + $0x138] sm:$0xff]  ;;  %v1023_v60 = vld [vmem:[%s3485_s1 + $0x1f0] sm:$0xff] }
 0x2ff   :  { %v717_v27 = vmul.f32 %v707_v15, %v2948_v24  ;;  %v716_v41 = vadd.f32 0.5, %v715_v40  ;;  %v982_v24 = vld [vmem:[%s3485_s1 + $0xa8] sm:$0xff]  ;;  %v993_v15 = vld [vmem:[%s3485_s1 + $0x100] sm:$0xff]  ;;  %v995_v40 = vld [vmem:[%s3485_s1 + $0x110] sm:$0xff]  ;;  %v3290_v63 = vpack.c.bf16 %v1023_v60, %v1019_v57 }
 0x300   :  { %v3088_v33 = vpack.c.bf16 %v982_v24, %v978_v23  ;;  %v1013_v23 = vld [vmem:[%s3485_s1 + $0x1a0] sm:$0xff]  ;;  %v3243_v24 = vpack.c.bf16 %v1016_v19, %v1012_v6 }
 0x301   :  { %v2999_v29 = vadd.f32 %v718_v25, %v717_v27  ;;  %v997_v25 = vld [vmem:[%s3485_s1 + $0x120] sm:$0xff]  ;;  %v3171_v27 = vpack.c.bf16 %v1000_v12, %v996_v7  ;;  %v3245_v28 = vpack.c.bf16 %v1013_v23, %v1009_v20  ;;  %v1922_v12 = vld [vmem:[%s3486_s0 + $0x68] sm:$0xff] }
 0x302   :  { %v3173_v34 = vpack.c.bf16 %v997_v25, %v993_v15  ;;  %v1921_v7 = vld [vmem:[%s3486_s0 + $0x60] sm:$0xff] }
 0x303   :  { %2487 = vtanh.f32 %v2999_v29 }
 0x30d   :  { %v2488_v42 = vpop.eup %2487 }
 0x30e   :  { %v721_v47 = vmul.f32 %v2488_v42, %v716_v41  ;;  %v999_v41 = vld [vmem:[%s3485_s1 + $0x130] sm:$0xff] }
 0x30f   :  { %v3182_v42 = vpack.c.bf16 %v999_v41, %v995_v40 }
 0x310   :  { %v722_v31 = vmax.f32 %v721_v47, 0.0  ;;  %854 = vmatmul.mubr.f32.vlgmr.msra.gmra.mrb[6].mxu0 %v721_v47  ;;  %925 = vmatmul.mubr.f32.vlgmr.msra.gmra.mrb[6].mxu1 %v721_v47  ;;  %v1002_v47 = vld [vmem:[%s3485_s1 + $0x148] sm:$0xff] }
 0x311   :  { %1089 = vmatprep.mubr.f32.mxu0 %v2539_v3  ;;  %1160 = vmatprep.mubr.f32.mxu1 %v2539_v3 }
 0x312   :  { %1920 = vst [vmem:[%s3487_s2 + $0x10] sm:$0xff] %v722_v31  ;;  %2205 = vmatpush1.bf16.msra.mxu0 %v3029_v59  ;;  %2237 = vmatpush1.bf16.msra.mxu1 %v3038_v17  ;;  %v1006_v31 = vld [vmem:[%s3485_s1 + $0x168] sm:$0xff] }
 0x313   :  { %2207 = vmatprep.subr.bf16.mxu0 %v3052_v2  ;;  %2239 = vmatprep.subr.bf16.mxu1 %v3063_v13  ;;  %v3196_v49 = vpack.c.bf16 %v1006_v31, %v1002_v47  ;;  %v1923_v31 = vld [vmem:[%s3486_s0 + $0x70] sm:$0xff] }
 0x316   :  { %2209 = vmatpush1.bf16.msra.mxu0 %v3065_v14  ;;  %2241 = vmatpush1.bf16.msra.mxu1 %v3074_v21 }
 0x317   :  { %2211 = vmatprep.subr.bf16.mxu0 %v3088_v33  ;;  %2243 = vmatprep.subr.bf16.mxu1 %v3099_v43 }
 0x31a   :  { %2213 = vmatpush1.bf16.msra.mxu0 %v3101_v8  ;;  %2245 = vmatpush1.bf16.msra.mxu1 %v3110_v18 }
 0x31b   :  { %2215 = vmatprep.subr.bf16.mxu0 %v3124_v32  ;;  %2247 = vmatprep.subr.bf16.mxu1 %v3135_v46 }
 0x31e   :  { %2217 = vmatpush1.bf16.msra.mxu0 %v3137_v48  ;;  %2249 = vmatpush1.bf16.msra.mxu1 %v3146_v58 }
 0x31f   :  { %2219 = vmatprep.subr.bf16.mxu0 %v3160_v10  ;;  %2251 = vmatprep.subr.bf16.mxu1 %v3171_v27 }
 0x322   :  { %2221 = vmatpush1.bf16.msra.mxu0 %v3173_v34  ;;  %2253 = vmatpush1.bf16.msra.mxu1 %v3182_v42 }
 0x323   :  { %2223 = vmatprep.subr.bf16.mxu0 %v3196_v49  ;;  %2255 = vmatprep.subr.bf16.mxu1 %v3207_v55 }
 0x326   :  { %2225 = vmatpush1.bf16.msra.mxu0 %v3209_v4  ;;  %2257 = vmatpush1.bf16.msra.mxu1 %v3218_v0 }
 0x327   :  { %2227 = vmatprep.subr.bf16.mxu0 %v3232_v11  ;;  %2259 = vmatprep.subr.bf16.mxu1 %v3243_v24 }
 0x32a   :  { %2229 = vmatpush1.bf16.msra.mxu0 %v3245_v28  ;;  %2261 = vmatpush1.bf16.msra.mxu1 %v3254_v38 }
 0x32b   :  { %2231 = vmatprep.subr.bf16.mxu0 %v3268_v26  ;;  %2263 = vmatprep.subr.bf16.mxu1 %v3279_v44 }
 0x32e   :  { %2233 = vmatpush1.bf16.msra.mxu0 %v3281_v51  ;;  %2265 = vmatpush1.bf16.msra.mxu1 %v3290_v63 }
 0x32f   :  { %2267 = vmatprep.subr.bf16.mxu0 %v3016_v52  ;;  %2299 = vmatprep.subr.bf16.mxu1 %v3027_v56 }
 0x3e3   :  { %v855_v15 = vpop.f32.mrb[6].mxu0  ;;  %v926_v25 = vpop.f32.mrb[6].mxu1 }
 0x3e4   :  { %v933_v40 = vadd.f32 %v1921_v7, %v855_v15  ;;  %v857_v41 = vpop.f32.mrb[7].mxu0  ;;  %v928_v47 = vpop.f32.mrb[7].mxu1  ;;  %v945_v54 = vadd.f32 %v1923_v31, %v926_v25  ;;  %v1928_v31 = vld [vmem:[%s3486_s0 + $0x90] sm:$0xff] }
 0x3e5   :  { %v939_v45 = vadd.f32 %v1922_v12, %v857_v41  ;;  %v948_v62 = vadd.f32 %v1924_v61, %v928_v47  ;;  %v1927_v12 = vld [vmem:[%s3486_s0 + $0x88] sm:$0xff]  ;;  %v1929_v61 = vld [vmem:[%s3486_s0 + $0x98] sm:$0xff] }
 0x3e6   :  { %v934_v50 = vmul.f32 0.5, %v933_v40 }
 0x3e7   :  { %v940_v53 = vmul.f32 0.5, %v939_v45  ;;  %v949_v1 = vmul.f32 0.5, %v948_v62 }
 0x3e8   :  { %2489 = vtanh.f32 %v934_v50 }
 0x3e9   :  { %2491 = vtanh.f32 %v940_v53 }
 0x3ea   :  { %2493 = vtanh.f32 %v945_v54 }
 0x3eb   :  { %2495 = vtanh.f32 %v949_v1 }
 0x3f2   :  { %v2490_v5 = vpop.eup %2489 }
 0x3f3   :  { %v2492_v6 = vpop.eup %2491  ;;  %v936_v19 = vmul.f32 0.5, %v2490_v5 }
 0x3f4   :  { %v942_v20 = vmul.f32 0.5, %v2492_v6  ;;  %v2494_v35 = vpop.eup %2493 }
 0x3f5   :  { %v937_v23 = vadd.f32 0.5, %v936_v19  ;;  %v2496_v30 = vpop.eup %2495 }
 0x3f6   :  { %v943_v37 = vadd.f32 0.5, %v942_v20  ;;  %v951_v36 = vmul.f32 0.5, %v2496_v30 }
 0x3f7   :  { %v954_v9 = vmul.f32 %v2494_v35, %v937_v23 }
 0x3f8   :  { %v953_v16 = vmul.f32 %v943_v37, %v2999_v29  ;;  %v952_v39 = vadd.f32 0.5, %v951_v36  ;;  %v1926_v29 = vld [vmem:[%s3486_s0 + $0x80] sm:$0xff] }
 0x3fa   :  { %v3310_v22 = vadd.f32 %v954_v9, %v953_v16 }
 0x3fc   :  { %2497 = vtanh.f32 %v3310_v22 }
 0x406   :  { %v2498_v57 = vpop.eup %2497 }
 0x407   :  { %v957_v60 = vmul.f32 %v2498_v57, %v952_v39 }
 0x409   :  { %v958_v7 = vmax.f32 %v957_v60, 0.0  ;;  %1090 = vmatmul.mubr.f32.vlgmr.msra.gmra.mrb[8].mxu0 %v957_v60  ;;  %1161 = vmatmul.mubr.f32.vlgmr.msra.gmra.mrb[8].mxu1 %v957_v60 }
 0x40a   :  { %2269 = vmatpush1.bf16.msra.mxu0 %v3029_v59  ;;  %2301 = vmatpush1.bf16.msra.mxu1 %v3038_v17 }
 0x40b   :  { %1925 = vst [vmem:[%s3487_s2 + $0x18] sm:$0xff] %v958_v7  ;;  %2271 = vmatprep.subr.bf16.mxu0 %v3052_v2  ;;  %2303 = vmatprep.subr.bf16.mxu1 %v3063_v13 }
 0x40c   :  { %1325 = vmatprep.mubr.f32.mxu0 %v2539_v3  ;;  %1396 = vmatprep.mubr.f32.mxu1 %v2539_v3 }
 0x40e   :  { %2273 = vmatpush1.bf16.msra.mxu0 %v3065_v14  ;;  %2305 = vmatpush1.bf16.msra.mxu1 %v3074_v21 }
 0x40f   :  { %2275 = vmatprep.subr.bf16.mxu0 %v3088_v33  ;;  %2307 = vmatprep.subr.bf16.mxu1 %v3099_v43 }
 0x412   :  { %2277 = vmatpush1.bf16.msra.mxu0 %v3101_v8  ;;  %2309 = vmatpush1.bf16.msra.mxu1 %v3110_v18 }
 0x413   :  { %2279 = vmatprep.subr.bf16.mxu0 %v3124_v32  ;;  %2311 = vmatprep.subr.bf16.mxu1 %v3135_v46 }
 0x416   :  { %2281 = vmatpush1.bf16.msra.mxu0 %v3137_v48  ;;  %2313 = vmatpush1.bf16.msra.mxu1 %v3146_v58 }
 0x417   :  { %2283 = vmatprep.subr.bf16.mxu0 %v3160_v10  ;;  %2315 = vmatprep.subr.bf16.mxu1 %v3171_v27 }
 0x41a   :  { %2285 = vmatpush1.bf16.msra.mxu0 %v3173_v34  ;;  %2317 = vmatpush1.bf16.msra.mxu1 %v3182_v42 }
 0x41b   :  { %2287 = vmatprep.subr.bf16.mxu0 %v3196_v49  ;;  %2319 = vmatprep.subr.bf16.mxu1 %v3207_v55 }
 0x41e   :  { %2289 = vmatpush1.bf16.msra.mxu0 %v3209_v4  ;;  %2321 = vmatpush1.bf16.msra.mxu1 %v3218_v0 }
 0x41f   :  { %2291 = vmatprep.subr.bf16.mxu0 %v3232_v11  ;;  %2323 = vmatprep.subr.bf16.mxu1 %v3243_v24 }
 0x422   :  { %2293 = vmatpush1.bf16.msra.mxu0 %v3245_v28  ;;  %2325 = vmatpush1.bf16.msra.mxu1 %v3254_v38 }
 0x423   :  { %2295 = vmatprep.subr.bf16.mxu0 %v3268_v26  ;;  %2327 = vmatprep.subr.bf16.mxu1 %v3279_v44 }
 0x426   :  { %2297 = vmatpush1.bf16.msra.mxu0 %v3281_v51  ;;  %2329 = vmatpush1.bf16.msra.mxu1 %v3290_v63 }
 0x427   :  { %2331 = vmatprep.subr.bf16.mxu0 %v3016_v52  ;;  %2363 = vmatprep.subr.bf16.mxu1 %v3027_v56 }
 0x4dc   :  { %v1091_v15 = vpop.f32.mrb[8].mxu0  ;;  %v1162_v25 = vpop.f32.mrb[8].mxu1 }
 0x4dd   :  { %v1169_v40 = vadd.f32 %v1926_v29, %v1091_v15  ;;  %v1093_v41 = vpop.f32.mrb[9].mxu0  ;;  %v1164_v47 = vpop.f32.mrb[9].mxu1  ;;  %v1181_v54 = vadd.f32 %v1928_v31, %v1162_v25  ;;  %v1933_v31 = vld [vmem:[%s3486_s0 + $0xb0] sm:$0xff] }
 0x4de   :  { %v1175_v45 = vadd.f32 %v1927_v12, %v1093_v41  ;;  %v1184_v62 = vadd.f32 %v1929_v61, %v1164_v47  ;;  %v1932_v12 = vld [vmem:[%s3486_s0 + $0xa8] sm:$0xff] }
 0x4df   :  { %v1170_v50 = vmul.f32 0.5, %v1169_v40 }
 0x4e0   :  { %v1176_v53 = vmul.f32 0.5, %v1175_v45  ;;  %v1185_v1 = vmul.f32 0.5, %v1184_v62 }
 0x4e1   :  { %2499 = vtanh.f32 %v1170_v50 }
 0x4e2   :  { %2501 = vtanh.f32 %v1176_v53  ;;  %v1934_v53 = vld [vmem:[%s3486_s0 + $0xb8] sm:$0xff] }
 0x4e3   :  { %2503 = vtanh.f32 %v1181_v54 }
 0x4e4   :  { %2505 = vtanh.f32 %v1185_v1 }
 0x4eb   :  { %v2500_v5 = vpop.eup %2499 }
 0x4ec   :  { %v2502_v6 = vpop.eup %2501  ;;  %v1172_v19 = vmul.f32 0.5, %v2500_v5 }
 0x4ed   :  { %v1178_v20 = vmul.f32 0.5, %v2502_v6  ;;  %v2504_v35 = vpop.eup %2503 }
 0x4ee   :  { %v1173_v23 = vadd.f32 0.5, %v1172_v19  ;;  %v2506_v36 = vpop.eup %2505 }
 0x4ef   :  { %v1179_v37 = vadd.f32 0.5, %v1178_v20  ;;  %v1187_v39 = vmul.f32 0.5, %v2506_v36 }
 0x4f0   :  { %v1190_v9 = vmul.f32 %v2504_v35, %v1173_v23 }
 0x4f1   :  { %v1189_v16 = vmul.f32 %v1179_v37, %v3310_v22  ;;  %v1188_v57 = vadd.f32 0.5, %v1187_v39  ;;  %v1931_v22 = vld [vmem:[%s3486_s0 + $0xa0] sm:$0xff] }
 0x4f3   :  { %v3363_v30 = vadd.f32 %v1190_v9, %v1189_v16 }
 0x4f5   :  { %2507 = vtanh.f32 %v3363_v30 }
 0x4ff   :  { %v2508_v60 = vpop.eup %2507 }
 0x500   :  { %v1193_v7 = vmul.f32 %v2508_v60, %v1188_v57 }
 0x502   :  { %v1194_v29 = vmax.f32 %v1193_v7, 0.0  ;;  %1326 = vmatmul.mubr.f32.vlgmr.msra.gmra.mrb[10].mxu0 %v1193_v7  ;;  %1397 = vmatmul.mubr.f32.vlgmr.msra.gmra.mrb[10].mxu1 %v1193_v7 }
 0x503   :  { %2333 = vmatpush1.bf16.msra.mxu0 %v3029_v59  ;;  %2365 = vmatpush1.bf16.msra.mxu1 %v3038_v17 }
 0x504   :  { %1930 = vst [vmem:[%s3487_s2 + $0x20] sm:$0xff] %v1194_v29  ;;  %2335 = vmatprep.subr.bf16.mxu0 %v3052_v2  ;;  %2367 = vmatprep.subr.bf16.mxu1 %v3063_v13  ;;  %v1942_v29 = vld [vmem:[%s3486_s0 + $0xe8] sm:$0xff] }
 0x505   :  { %1561 = vmatprep.mubr.f32.mxu0 %v2539_v3  ;;  %1632 = vmatprep.mubr.f32.mxu1 %v2539_v3 }
 0x507   :  { %2337 = vmatpush1.bf16.msra.mxu0 %v3065_v14  ;;  %2369 = vmatpush1.bf16.msra.mxu1 %v3074_v21 }
 0x508   :  { %2339 = vmatprep.subr.bf16.mxu0 %v3088_v33  ;;  %2371 = vmatprep.subr.bf16.mxu1 %v3099_v43 }
 0x50b   :  { %2341 = vmatpush1.bf16.msra.mxu0 %v3101_v8  ;;  %2373 = vmatpush1.bf16.msra.mxu1 %v3110_v18 }
 0x50c   :  { %2343 = vmatprep.subr.bf16.mxu0 %v3124_v32  ;;  %2375 = vmatprep.subr.bf16.mxu1 %v3135_v46 }
 0x50f   :  { %2345 = vmatpush1.bf16.msra.mxu0 %v3137_v48  ;;  %2377 = vmatpush1.bf16.msra.mxu1 %v3146_v58 }
 0x510   :  { %2347 = vmatprep.subr.bf16.mxu0 %v3160_v10  ;;  %2379 = vmatprep.subr.bf16.mxu1 %v3171_v27 }
 0x513   :  { %2349 = vmatpush1.bf16.msra.mxu0 %v3173_v34  ;;  %2381 = vmatpush1.bf16.msra.mxu1 %v3182_v42 }
 0x514   :  { %2351 = vmatprep.subr.bf16.mxu0 %v3196_v49  ;;  %2383 = vmatprep.subr.bf16.mxu1 %v3207_v55 }
 0x517   :  { %2353 = vmatpush1.bf16.msra.mxu0 %v3209_v4  ;;  %2385 = vmatpush1.bf16.msra.mxu1 %v3218_v0 }
 0x518   :  { %2355 = vmatprep.subr.bf16.mxu0 %v3232_v11  ;;  %2387 = vmatprep.subr.bf16.mxu1 %v3243_v24 }
 0x51b   :  { %2357 = vmatpush1.bf16.msra.mxu0 %v3245_v28  ;;  %2389 = vmatpush1.bf16.msra.mxu1 %v3254_v38 }
 0x51c   :  { %2359 = vmatprep.subr.bf16.mxu0 %v3268_v26  ;;  %2391 = vmatprep.subr.bf16.mxu1 %v3279_v44 }
 0x51f   :  { %2361 = vmatpush1.bf16.msra.mxu0 %v3281_v51  ;;  %2393 = vmatpush1.bf16.msra.mxu1 %v3290_v63 }
 0x520   :  { %2395 = vmatprep.subr.bf16.mxu0 %v3016_v52  ;;  %2427 = vmatprep.subr.bf16.mxu1 %v3027_v56 }
 0x5d5   :  { %v1327_v15 = vpop.f32.mrb[10].mxu0  ;;  %v1398_v25 = vpop.f32.mrb[10].mxu1 }
 0x5d6   :  { %v1405_v40 = vadd.f32 %v1931_v22, %v1327_v15  ;;  %v1329_v41 = vpop.f32.mrb[11].mxu0  ;;  %v1400_v47 = vpop.f32.mrb[11].mxu1  ;;  %v1417_v50 = vadd.f32 %v1933_v31, %v1398_v25 }
 0x5d7   :  { %v1411_v52 = vadd.f32 %v1932_v12, %v1329_v41  ;;  %v1420_v54 = vadd.f32 %v1934_v53, %v1400_v47  ;;  %v1943_v41 = vld [vmem:[%s3486_s0 + $0xf0] sm:$0xff] }
 0x5d8   :  { %v1406_v45 = vmul.f32 0.5, %v1405_v40 }
 0x5d9   :  { %v1412_v56 = vmul.f32 0.5, %v1411_v52  ;;  %v1421_v61 = vmul.f32 0.5, %v1420_v54 }
 0x5da   :  { %2509 = vtanh.f32 %v1406_v45 }
 0x5db   :  { %2511 = vtanh.f32 %v1412_v56  ;;  %v1944_v56 = vld [vmem:[%s3486_s0 + $0xf8] sm:$0xff] }
 0x5dc   :  { %2513 = vtanh.f32 %v1417_v50 }
 0x5dd   :  { %2515 = vtanh.f32 %v1421_v61 }
 0x5e4   :  { %v2510_v62 = vpop.eup %2509 }
 0x5e5   :  { %v2512_v1 = vpop.eup %2511  ;;  %v1408_v5 = vmul.f32 0.5, %v2510_v62 }
 0x5e6   :  { %v1414_v6 = vmul.f32 0.5, %v2512_v1  ;;  %v2514_v20 = vpop.eup %2513 }
 0x5e7   :  { %v1409_v19 = vadd.f32 0.5, %v1408_v5  ;;  %v2516_v16 = vpop.eup %2515 }
 0x5e8   :  { %v1415_v23 = vadd.f32 0.5, %v1414_v6  ;;  %v1423_v36 = vmul.f32 0.5, %v2516_v16 }
 0x5e9   :  { %v1426_v35 = vmul.f32 %v2514_v20, %v1409_v19 }
 0x5ea   :  { %v1425_v37 = vmul.f32 %v1415_v23, %v3363_v30  ;;  %v1424_v39 = vadd.f32 0.5, %v1423_v36  ;;  %v1941_v30 = vld [vmem:[%s3486_s0 + $0xe0] sm:$0xff] }
 0x5ec   :  { %v3416_v9 = vadd.f32 %v1426_v35, %v1425_v37 }
 0x5ee   :  { %2517 = vtanh.f32 %v3416_v9 }
 0x5f8   :  { %v2518_v57 = vpop.eup %2517 }
 0x5f9   :  { %v1429_v60 = vmul.f32 %v2518_v57, %v1424_v39 }
 0x5fb   :  { %v1430_v7 = vmax.f32 %v1429_v60, 0.0  ;;  %1562 = vmatmul.mubr.f32.vlgmr.msra.gmra.mrb[12].mxu0 %v1429_v60  ;;  %1633 = vmatmul.mubr.f32.vlgmr.msra.gmra.mrb[12].mxu1 %v1429_v60 }
 0x5fc   :  { %2397 = vmatpush1.bf16.msra.mxu0 %v3029_v59  ;;  %2429 = vmatpush1.bf16.msra.mxu1 %v3038_v17  ;;  %v1937_v59 = vld [vmem:[%s3486_s0 + $0xc8] sm:$0xff] }
 0x5fd   :  { %1935 = vst [vmem:[%s3487_s2 + $0x28] sm:$0xff] %v1430_v7  ;;  %2399 = vmatprep.subr.bf16.mxu0 %v3052_v2  ;;  %2431 = vmatprep.subr.bf16.mxu1 %v3063_v13 }
 0x5fe   :  { %1797 = vmatprep.mubr.f32.mxu0 %v2539_v3  ;;  %1868 = vmatprep.mubr.f32.mxu1 %v2539_v3  ;;  %v1936_v3 = vld [vmem:[%s3486_s0 + $0xc0] sm:$0xff] }
 0x600   :  { %2401 = vmatpush1.bf16.msra.mxu0 %v3065_v14  ;;  %2433 = vmatpush1.bf16.msra.mxu1 %v3074_v21 }
 0x601   :  { %2403 = vmatprep.subr.bf16.mxu0 %v3088_v33  ;;  %2435 = vmatprep.subr.bf16.mxu1 %v3099_v43  ;;  %v1938_v33 = vld [vmem:[%s3486_s0 + $0xd0] sm:$0xff] }
 0x604   :  { %2405 = vmatpush1.bf16.msra.mxu0 %v3101_v8  ;;  %2437 = vmatpush1.bf16.msra.mxu1 %v3110_v18 }
 0x605   :  { %2407 = vmatprep.subr.bf16.mxu0 %v3124_v32  ;;  %2439 = vmatprep.subr.bf16.mxu1 %v3135_v46  ;;  %v1939_v46 = vld [vmem:[%s3486_s0 + $0xd8] sm:$0xff] }
 0x608   :  { %2409 = vmatpush1.bf16.msra.mxu0 %v3137_v48  ;;  %2441 = vmatpush1.bf16.msra.mxu1 %v3146_v58 }
 0x609   :  { %2411 = vmatprep.subr.bf16.mxu0 %v3160_v10  ;;  %2443 = vmatprep.subr.bf16.mxu1 %v3171_v27 }
 0x60c   :  { %2413 = vmatpush1.bf16.msra.mxu0 %v3173_v34  ;;  %2445 = vmatpush1.bf16.msra.mxu1 %v3182_v42 }
 0x60d   :  { %2415 = vmatprep.subr.bf16.mxu0 %v3196_v49  ;;  %2447 = vmatprep.subr.bf16.mxu1 %v3207_v55 }
 0x610   :  { %2417 = vmatpush1.bf16.msra.mxu0 %v3209_v4  ;;  %2449 = vmatpush1.bf16.msra.mxu1 %v3218_v0 }
 0x611   :  { %2419 = vmatprep.subr.bf16.mxu0 %v3232_v11  ;;  %2451 = vmatprep.subr.bf16.mxu1 %v3243_v24 }
 0x614   :  { %2421 = vmatpush1.bf16.msra.mxu0 %v3245_v28  ;;  %2453 = vmatpush1.bf16.msra.mxu1 %v3254_v38 }
 0x615   :  { %2423 = vmatprep.subr.bf16.mxu0 %v3268_v26  ;;  %2455 = vmatprep.subr.bf16.mxu1 %v3279_v44 }
 0x618   :  { %2425 = vmatpush1.bf16.msra.mxu0 %v3281_v51  ;;  %2457 = vmatpush1.bf16.msra.mxu1 %v3290_v63 }
 0x6ce   :  { %v1563_v17 = vpop.f32.mrb[12].mxu0  ;;  %v1634_v2 = vpop.f32.mrb[12].mxu1 }
 0x6cf   :  { %v1641_v13 = vadd.f32 %v1936_v3, %v1563_v17  ;;  %v1565_v14 = vpop.f32.mrb[13].mxu0  ;;  %v1636_v21 = vpop.f32.mrb[13].mxu1  ;;  %v1653_v32 = vadd.f32 %v1938_v33, %v1634_v2 }
 0x6d0   :  { %v1647_v43 = vadd.f32 %v1937_v59, %v1565_v14  ;;  %v1656_v48 = vadd.f32 %v1939_v46, %v1636_v21 }
 0x6d1   :  { %v1642_v8 = vmul.f32 0.5, %v1641_v13 }
 0x6d2   :  { %v1648_v18 = vmul.f32 0.5, %v1647_v43  ;;  %v1657_v58 = vmul.f32 0.5, %v1656_v48 }
 0x6d3   :  { %2519 = vtanh.f32 %v1642_v8 }
 0x6d4   :  { %2521 = vtanh.f32 %v1648_v18 }
 0x6d5   :  { %2523 = vtanh.f32 %v1653_v32 }
 0x6d6   :  { %2525 = vtanh.f32 %v1657_v58 }
 0x6dd   :  { %v2520_v10 = vpop.eup %2519 }
 0x6de   :  { %v2522_v27 = vpop.eup %2521  ;;  %v1644_v34 = vmul.f32 0.5, %v2520_v10 }
 0x6df   :  { %v1650_v42 = vmul.f32 0.5, %v2522_v27  ;;  %v2524_v55 = vpop.eup %2523 }
 0x6e0   :  { %v1645_v49 = vadd.f32 0.5, %v1644_v34  ;;  %v2526_v28 = vpop.eup %2525 }
 0x6e1   :  { %v1651_v4 = vadd.f32 0.5, %v1650_v42  ;;  %v1659_v38 = vmul.f32 0.5, %v2526_v28 }
 0x6e2   :  { %v1662_v0 = vmul.f32 %v2524_v55, %v1645_v49 }
 0x6e3   :  { %v1661_v11 = vmul.f32 %v1651_v4, %v3416_v9  ;;  %v1660_v26 = vadd.f32 0.5, %v1659_v38 }
 0x6e5   :  { %v1663_v24 = vadd.f32 %v1662_v0, %v1661_v11 }
 0x6e7   :  { %2527 = vtanh.f32 %v1663_v24 }
 0x6f1   :  { %v2528_v44 = vpop.eup %2527 }
 0x6f2   :  { %v1665_v51 = vmul.f32 %v2528_v44, %v1660_v26 }
 0x6f4   :  { %v1666_v63 = vmax.f32 %v1665_v51, 0.0  ;;  %1798 = vmatmul.mubr.f32.vlgmr.msra.gmra.mrb[14].mxu0 %v1665_v51  ;;  %1869 = vmatmul.mubr.f32.vlgmr.msra.gmra.mrb[14].mxu1 %v1665_v51 }
 0x6f6   :  { %1940 = vst [vmem:[%s3487_s2 + $0x30] sm:$0xff] %v1666_v63 }
 0x7c7   :  { %v1799_v22 = vpop.f32.mrb[14].mxu0  ;;  %v1870_v12 = vpop.f32.mrb[14].mxu1 }
 0x7c8   :  { %v1877_v15 = vadd.f32 %v1941_v30, %v1799_v22  ;;  %v1801_v25 = vpop.f32.mrb[15].mxu0  ;;  %v1872_v40 = vpop.f32.mrb[15].mxu1  ;;  %v1889_v45 = vadd.f32 %v1943_v41, %v1870_v12 }
 0x7c9   :  { %v1883_v47 = vadd.f32 %v1942_v29, %v1801_v25  ;;  %v1892_v50 = vadd.f32 %v1944_v56, %v1872_v40 }
 0x7ca   :  { %v1878_v31 = vmul.f32 0.5, %v1877_v15 }
 0x7cb   :  { %v1884_v52 = vmul.f32 0.5, %v1883_v47  ;;  %v1893_v53 = vmul.f32 0.5, %v1892_v50 }
 0x7cc   :  { %2529 = vtanh.f32 %v1878_v31 }
 0x7cd   :  { %2531 = vtanh.f32 %v1884_v52 }
 0x7ce   :  { %2533 = vtanh.f32 %v1889_v45 }
 0x7cf   :  { %2535 = vtanh.f32 %v1893_v53 }
 0x7d6   :  { %v2530_v54 = vpop.eup %2529 }
 0x7d7   :  { %v2532_v61 = vpop.eup %2531  ;;  %v1880_v62 = vmul.f32 0.5, %v2530_v54 }
 0x7d8   :  { %v1886_v1 = vmul.f32 0.5, %v2532_v61  ;;  %v2534_v6 = vpop.eup %2533 }
 0x7d9   :  { %v1881_v5 = vadd.f32 0.5, %v1880_v62  ;;  %v2536_v37 = vpop.eup %2535 }
 0x7da   :  { %v1887_v19 = vadd.f32 0.5, %v1886_v1  ;;  %v1895_v9 = vmul.f32 0.5, %v2536_v37 }
 0x7db   :  { %v1898_v20 = vmul.f32 %v2534_v6, %v1881_v5 }
 0x7dc   :  { %v1897_v23 = vmul.f32 %v1887_v19, %v1663_v24  ;;  %v1896_v16 = vadd.f32 0.5, %v1895_v9 }
 0x7de   :  { %v1899_v35 = vadd.f32 %v1898_v20, %v1897_v23 }
 0x7e0   :  { %2537 = vtanh.f32 %v1899_v35 }
 0x7ea   :  { %v2538_v36 = vpop.eup %2537 }
 0x7eb   :  { %v1901_v39 = vmul.f32 %v2538_v36, %v1896_v16 }
 0x7ed   :  { %v1902_v57 = vmax.f32 %v1901_v39, 0.0 }
 0x7ef   :  { %1945 = vst [vmem:[%s3487_s2 + $0x38] sm:$0xff] %v1902_v57 }

</bundles_post_ra>
